<compile_context>
chip_gen: v7x
topology: tpu7x:2x2x1
jax: 0.10.0
libtpu: 0.0.40
codegen_flags: <defaults>
</compile_context>

<pallas_src>
import functools
import numpy as np

import jax
import jax.numpy as jnp
from jax.experimental import pallas as pl
from jax.experimental.pallas import tpu as pltpu


# ----------------------------------------------------------------------------
# Pallas kernel: one block of WPB windows of W-MSA per grid step.
# ----------------------------------------------------------------------------
def _window_msa_kernel(x_ref, wqkv_t_ref, bqkv_ref, wproj_t_ref, bproj_ref,
                       bias_ref, o_ref, *, num_heads, head_dim, nwin, ntok):
    C = num_heads * head_dim

    x = x_ref[...]                                     # (nwin*ntok, C) bf16

    # Big QKV projection on the MXU: (nwin*ntok, C) @ (C, 3C), f32 accumulate.
    qkv = jnp.dot(x, wqkv_t_ref[...],
                  preferred_element_type=jnp.float32) + bqkv_ref[0]
    qkv_bf = qkv.astype(jnp.bfloat16)                  # (nwin*ntok, 3C)

    acc = jnp.zeros((nwin * ntok, C), dtype=jnp.float32)

    for h in range(num_heads):                         # static unrolled loop
        lo = h * head_dim
        # q scale already folded into the q rows of wqkv/bqkv in the wrapper.
        q = qkv_bf[:, lo:lo + head_dim].reshape(nwin, ntok, head_dim)
        k = qkv_bf[:, C + lo:C + lo + head_dim].reshape(nwin, ntok, head_dim)
        v = qkv_bf[:, 2 * C + lo:2 * C + lo + head_dim].reshape(
            nwin, ntok, head_dim)

        # Batched attention scores over the window axis, f32 accumulation.
        s = jnp.einsum('wqd,wkd->wqk', q, k,
                       preferred_element_type=jnp.float32)   # (nwin, ntok, ntok)
        # Combined (rel-pos bias + shift mask) additive bias; broadcasts over
        # the window axis when no shift mask is present.
        s = s + bias_ref[h]

        # Numerically stable softmax in f32; divide via approx reciprocal (EUP).
        s = s - jnp.max(s, axis=-1, keepdims=True)
        p = jnp.exp(s)
        p = p * pl.reciprocal(jnp.sum(p, axis=-1, keepdims=True), approx=True)

        ho = jnp.einsum('wqk,wkd->wqd', p.astype(jnp.bfloat16), v,
                        preferred_element_type=jnp.float32)  # (nwin, ntok, d)

        # Accumulate output projection per head (replaces the head concat).
        acc = acc + jnp.dot(
            ho.reshape(nwin * ntok, head_dim).astype(jnp.bfloat16),
            wproj_t_ref[lo:lo + head_dim, :],
            preferred_element_type=jnp.float32)

    o_ref[...] = (acc + bproj_ref[0]).astype(o_ref.dtype)


def window_msa_pallas(x_windows, wqkv_t_bf, bqkv2, wproj_t_bf, bproj2, bias,
                      *, num_heads, head_dim, wpb):
    """x_windows: (Bn, N, C) f32; wqkv_t_bf: (C, 3C) bf16 (scale folded);
       wproj_t_bf: (C, C) bf16; bias: (num_heads, 1 or wpb, N, N) f32."""
    Bn, N, C = x_windows.shape
    assert Bn % wpb == 0
    num_blocks = Bn // wpb

    # Flatten windows to a tall 2-D activation so projections are big matmuls.
    x2 = x_windows.reshape(Bn * N, C).astype(jnp.bfloat16)

    kernel = functools.partial(_window_msa_kernel, num_heads=num_heads,
                               head_dim=head_dim, nwin=wpb, ntok=N)

    out2 = pl.pallas_call(
        kernel,
        out_shape=jax.ShapeDtypeStruct((Bn * N, C), x_windows.dtype),
        grid_spec=pltpu.PrefetchScalarGridSpec(
            num_scalar_prefetch=0,
            grid=(num_blocks,),
            in_specs=[
                pl.BlockSpec((wpb * N, C), lambda g: (g, 0)),        # x block
                pl.BlockSpec((C, 3 * C), lambda g: (0, 0)),          # Wqkv^T
                pl.BlockSpec((1, 3 * C), lambda g: (0, 0)),          # bqkv
                pl.BlockSpec((C, C), lambda g: (0, 0)),              # Wproj^T
                pl.BlockSpec((1, C), lambda g: (0, 0)),              # bproj
                pl.BlockSpec(bias.shape, lambda g: (0, 0, 0, 0)),    # bias+mask
            ],
            out_specs=pl.BlockSpec((wpb * N, C), lambda g: (g, 0)),
        ),
        compiler_params=pltpu.CompilerParams(
            dimension_semantics=("parallel",)),
    )(x2, wqkv_t_bf, bqkv2, wproj_t_bf, bproj2, bias)

    return out2.reshape(Bn, N, C)


# ----------------------------------------------------------------------------
# Glue (plain JAX / NumPy): padding, roll, window partition/reverse, masks,
# relative-position bias gather, scale folding.
# ----------------------------------------------------------------------------
def window_partition(x, ws):
    B, H, W, C = x.shape
    x = x.reshape(B, H // ws, ws, W // ws, ws, C)
    return x.transpose(0, 1, 3, 2, 4, 5).reshape(-1, ws, ws, C)


def window_reverse(windows, H, W, ws):
    B = windows.shape[0] // ((H * W) // (ws * ws))
    x = windows.reshape(B, H // ws, W // ws, ws, ws, -1)
    return x.transpose(0, 1, 3, 2, 4, 5).reshape(B, H, W, -1)


def build_relative_position_index(window_size):
    Wh, Ww = window_size, window_size
    seq1 = np.arange(0, (2 * Ww - 1) * Wh, 2 * Ww - 1)
    seq2 = np.arange(0, Ww, 1)
    rel = (seq1[:, None] + seq2[None, :]).reshape(1, -1)          # (1, Wh*Ww)
    rel_pos_index = rel + rel.T                                    # (N, N)
    rel_pos_index = np.flip(rel_pos_index, axis=1).copy()
    return rel_pos_index


def _np_window_partition(x, ws):
    B, H, W, C = x.shape
    x = x.reshape(B, H // ws, ws, W // ws, ws, C)
    return x.transpose(0, 1, 3, 2, 4, 5).reshape(-1, ws, ws, C)


def build_shift_mask(H_pad, W_pad, window_size, shift_size):
    """Returns (nW, N, N) additive mask (0 or -100) as NumPy."""
    ws, ss = window_size, shift_size
    img_mask = np.zeros((1, H_pad, W_pad, 1), dtype=np.float32)
    h_slices = (slice(0, -ws), slice(-ws, -ss), slice(-ss, None))
    w_slices = (slice(0, -ws), slice(-ws, -ss), slice(-ss, None))
    cnt = 0
    for hs in h_slices:
        for wsl in w_slices:
            img_mask[:, hs, wsl, :] = cnt
            cnt += 1
    mask_windows = _np_window_partition(img_mask, ws).reshape(-1, ws * ws)
    attn_mask = mask_windows[:, None, :] - mask_windows[:, :, None]
    attn_mask = np.where(attn_mask != 0, -100.0, 0.0).astype(np.float32)
    return attn_mask


def dynamic_shift_window_msa_forward(query, hw_shape, params, *, window_size,
                                     shift_size, head_dim,
                                     target_rows_per_block=256):
    """query: (B, L, C) float32.  Mirrors DynamicShiftWindowMSA.forward."""
    B, L, C = query.shape
    H, W = hw_shape
    assert L == H * W, 'input feature has wrong size'
    num_heads = C // head_dim
    scale = head_dim ** (-0.5)
    ws = window_size
    N = ws * ws

    x = query.reshape(B, H, W, C)
    pad_r = (ws - W % ws) % ws
    pad_b = (ws - H % ws) % ws
    if pad_r > 0 or pad_b > 0:
        x = jnp.pad(x, ((0, 0), (0, pad_b), (0, pad_r), (0, 0)))
    H_pad, W_pad = x.shape[1], x.shape[2]
    nW = (H_pad // ws) * (W_pad // ws)

    if shift_size > 0:
        x = jnp.roll(x, shift=(-shift_size, -shift_size), axis=(1, 2))
        attn_mask = build_shift_mask(H_pad, W_pad, ws, shift_size)   # (nW,N,N)
    else:
        attn_mask = None

    query_windows = window_partition(x, ws).reshape(-1, N, C)        # (B*nW,N,C)
    Bn = query_windows.shape[0]

    # Windows per grid step: k whole images per block (keeps the shift-mask
    # ordering window-minor and the mask block constant across grid steps).
    k = max(1, min(B, target_rows_per_block // (nW * N)))
    while B % k != 0:
        k -= 1
    wpb = k * nW

    # Relative position bias (parameter gather, not hot path).
    rel_pos_index = build_relative_position_index(ws)                # (N, N)
    table = params['rel_pos_bias_table']                             # (T, maxH)
    rel_bias = table[rel_pos_index.reshape(-1)].reshape(N, N, -1)
    rel_bias = jnp.transpose(rel_bias, (2, 0, 1))[:num_heads]        # (h, N, N)

    # Combined additive bias (rel-pos bias + shift mask), constant across the
    # grid -> DMA'd once.  Unshifted case: window dim is 1, broadcast in-kernel.
    if attn_mask is not None:
        mask_block = jnp.asarray(np.tile(attn_mask, (k, 1, 1)))      # (wpb,N,N)
        bias = rel_bias[:, None, :, :] + mask_block[None, :, :, :]   # (h,wpb,N,N)
    else:
        bias = rel_bias[:, None, :, :]                               # (h,1,N,N)
    bias = bias.astype(jnp.float32)

    # Fold the q scale into the q rows of wqkv/bqkv; pre-transpose + cast bf16.
    q_scale = jnp.concatenate([jnp.full((C,), scale, jnp.float32),
                               jnp.ones((2 * C,), jnp.float32)])
    wqkv_t_bf = (params['wqkv'] * q_scale[:, None]).T.astype(jnp.bfloat16)
    bqkv2 = (params['bqkv'] * q_scale).reshape(1, -1).astype(jnp.float32)
    wproj_t_bf = params['wproj'].T.astype(jnp.bfloat16)
    bproj2 = params['bproj'].reshape(1, -1).astype(jnp.float32)

    attn_windows = window_msa_pallas(
        query_windows, wqkv_t_bf, bqkv2, wproj_t_bf, bproj2, bias,
        num_heads=num_heads, head_dim=head_dim, wpb=wpb)

    attn_windows = attn_windows.reshape(-1, ws, ws, C)
    shifted_x = window_reverse(attn_windows, H_pad, W_pad, ws)
    if shift_size > 0:
        out = jnp.roll(shifted_x, shift=(shift_size, shift_size), axis=(1, 2))
    else:
        out = shifted_x
    if pad_r > 0 or pad_b > 0:
        out = out[:, :H, :W, :]
    # TODO(synk): attn_drop / proj_drop / DropPath all have rate 0.0 -> identity.
    # TODO(synk): GroupedDynamicLinear / DynamicLinear 'order'/'random' channel
    #             sub-selection is evaluated at max width (plain Linear).
    return out.reshape(B, H * W, C)


# ----------------------------------------------------------------------------
# Pure-JAX reference (for a sanity check against the kernel).
# ----------------------------------------------------------------------------
def _reference_forward(query, hw_shape, params, *, window_size, shift_size,
                       head_dim):
    B, L, C = query.shape
    H, W = hw_shape
    num_heads = C // head_dim
    scale = head_dim ** (-0.5)
    ws = window_size
    N = ws * ws

    x = query.reshape(B, H, W, C)
    pad_r = (ws - W % ws) % ws
    pad_b = (ws - H % ws) % ws
    x = jnp.pad(x, ((0, 0), (0, pad_b), (0, pad_r), (0, 0)))
    H_pad, W_pad = x.shape[1], x.shape[2]
    nW = (H_pad // ws) * (W_pad // ws)
    if shift_size > 0:
        x = jnp.roll(x, shift=(-shift_size, -shift_size), axis=(1, 2))
        attn_mask = jnp.asarray(build_shift_mask(H_pad, W_pad, ws, shift_size))
    else:
        attn_mask = jnp.zeros((nW, N, N), dtype=jnp.float32)

    xw = window_partition(x, ws).reshape(-1, N, C)                   # (Bn,N,C)
    Bn = xw.shape[0]

    qkv = xw @ params['wqkv'].T + params['bqkv']                     # (Bn,N,3C)
    qkv = qkv.reshape(Bn, N, 3, num_heads, head_dim).transpose(2, 0, 3, 1, 4)
    q, k, v = qkv[0] * scale, qkv[1], qkv[2]                         # (Bn,h,N,d)
    attn = jnp.einsum('bhqd,bhkd->bhqk', q, k)

    rel_pos_index = build_relative_position_index(ws)
    table = params['rel_pos_bias_table']
    rel_bias = table[rel_pos_index.reshape(-1)].reshape(N, N, -1)
    rel_bias = jnp.transpose(rel_bias, (2, 0, 1))[:num_heads]
    attn = attn + rel_bias[None]
    attn = attn.reshape(B, nW, num_heads, N, N) + attn_mask[None, :, None]
    attn = attn.reshape(Bn, num_heads, N, N)
    attn = jax.nn.softmax(attn, axis=-1)

    out = jnp.einsum('bhqk,bhkd->bhqd', attn, v)
    out = out.transpose(0, 2, 1, 3).reshape(Bn, N, C)
    out = out @ params['wproj'].T + params['bproj']

    out = out.reshape(-1, ws, ws, C)
    shifted = window_reverse(out, H_pad, W_pad, ws)
    if shift_size > 0:
        shifted = jnp.roll(shifted, shift=(shift_size, shift_size), axis=(1, 2))
    if pad_r > 0 or pad_b > 0:
        shifted = shifted[:, :H, :W, :]
    return shifted.reshape(B, H * W, C)


# ----------------------------------------------------------------------------
if __name__ == "__main__":
    # Small, module-consistent shapes.
    B = 2
    H = W = 8
    max_embed_dim = 32          # C
    head_dim = 8                # -> num_heads = 4
    window_size = 4             # N = 16
    C = max_embed_dim
    L = H * W

    key = jax.random.PRNGKey(0)
    k_x, k_t, k_w1, k_b1, k_w2, k_b2 = jax.random.split(key, 6)

    max_num_head = max_embed_dim // head_dim
    table_rows = (2 * window_size - 1) * (2 * window_size - 1)

    params = {
        # trunc_normal_(std=0.02) approximated by normal * 0.02 (synthetic init)
        'rel_pos_bias_table': 0.02 * jax.random.normal(
            k_t, (table_rows, max_num_head), dtype=jnp.float32),
        # GroupedDynamicLinear(max_embed_dim, max_embed_dim, 3) == Linear C -> 3C
        'wqkv': 0.05 * jax.random.normal(k_w1, (3 * C, C), dtype=jnp.float32),
        'bqkv': 0.01 * jax.random.normal(k_b1, (3 * C,), dtype=jnp.float32),
        # DynamicLinear(max_embed_dim, max_embed_dim) == Linear C -> C
        'wproj': 0.05 * jax.random.normal(k_w2, (C, C), dtype=jnp.float32),
        'bproj': 0.01 * jax.random.normal(k_b2, (C,), dtype=jnp.float32),
    }

    x = jax.random.normal(k_x, (B, L, C), dtype=jnp.float32)

    # Exercise both the shifted (mask) and unshifted (no-mask) paths.
    for shift_size in (2, 0):
        out = dynamic_shift_window_msa_forward(
            x, (H, W), params,
            window_size=window_size, shift_size=shift_size, head_dim=head_dim)
        out = jax.block_until_ready(out)

        ref = jax.block_until_ready(_reference_forward(
            x, (H, W), params,
            window_size=window_size, shift_size=shift_size, head_dim=head_dim))

        assert out.shape == (B, L, C), out.shape
        np.testing.assert_allclose(np.asarray(out), np.asarray(ref),
                                   rtol=2e-2, atol=2e-2)
    print("KERNEL_OK")
</pallas_src>

<mosaic_0001>
module attributes {stable_mosaic.version = 11 : i64} {
  func.func @_window_msa_kernel(%arg0: i32, %arg1: memref<128x32xbf16, #tpu.memory_space<vmem>>, %arg2: memref<32x96xbf16, #tpu.memory_space<vmem>>, %arg3: memref<1x96xf32, #tpu.memory_space<vmem>>, %arg4: memref<32x32xbf16, #tpu.memory_space<vmem>>, %arg5: memref<1x32xf32, #tpu.memory_space<vmem>>, %arg6: memref<4x8x16x16xf32, #tpu.memory_space<vmem>>, %arg7: memref<128x32xf32, #tpu.memory_space<vmem>>) attributes {dimension_semantics = [#tpu.dimension_semantics<parallel>], iteration_bounds = array<i64: 1>, scalar_prefetch = 0 : i64, scratch_operands = 0 : i64, tpu.core_type = #tpu.core_type<tc>, window_params = [{transform_indices = @transform_0, window_bounds = array<i64: 128, 32>}, {pipeline_mode = #tpu.pipeline_mode<synchronous>, transform_indices = @transform_1, window_bounds = array<i64: 32, 96>}, {pipeline_mode = #tpu.pipeline_mode<synchronous>, transform_indices = @transform_2, window_bounds = array<i64: 1, 96>}, {pipeline_mode = #tpu.pipeline_mode<synchronous>, transform_indices = @transform_3, window_bounds = array<i64: 32, 32>}, {pipeline_mode = #tpu.pipeline_mode<synchronous>, transform_indices = @transform_4, window_bounds = array<i64: 1, 32>}, {pipeline_mode = #tpu.pipeline_mode<synchronous>, transform_indices = @transform_5, window_bounds = array<i64: 4, 8, 16, 16>}, {transform_indices = @transform_6, window_bounds = array<i64: 128, 32>}]} {
    %c0 = arith.constant 0 : index
    %c0_0 = arith.constant 0 : index
    %0 = vector.load %arg1[%c0, %c0_0] : memref<128x32xbf16, #tpu.memory_space<vmem>>, vector<128x32xbf16>
    %c0_1 = arith.constant 0 : index
    %c0_2 = arith.constant 0 : index
    %1 = vector.load %arg2[%c0_1, %c0_2] : memref<32x96xbf16, #tpu.memory_space<vmem>>, vector<32x96xbf16>
    %cst = arith.constant dense<0.000000e+00> : vector<128x96xf32>
    %2 = tpu.matmul %0, %1, %cst {dimension_numbers = #tpu.dot_dimension_numbers<[1], [0], [0], [1], [0, 0, 1, 1], [], []>} : vector<128x32xbf16>, vector<32x96xbf16>, vector<128x96xf32> -> vector<128x96xf32>
    %c0_3 = arith.constant 0 : index
    %c0_4 = arith.constant 0 : index
    %3 = vector.load %arg3[%c0_3, %c0_4] : memref<1x96xf32, #tpu.memory_space<vmem>>, vector<1x96xf32>
    %4 = vector.shape_cast %3 : vector<1x96xf32> to vector<96xf32>
    %5 = vector.shape_cast %4 : vector<96xf32> to vector<1x96xf32>
    %6 = vector.broadcast %5 : vector<1x96xf32> to vector<128x96xf32>
    %7 = arith.addf %2, %6 : vector<128x96xf32>
    %8 = arith.truncf %7 : vector<128x96xf32> to vector<128x96xbf16>
    %cst_5 = arith.constant 0.000000e+00 : f32
    %9 = vector.broadcast %cst_5 : f32 to vector<128x32xf32>
    %10 = vector.extract_strided_slice %8 {offsets = [0, 0], sizes = [128, 8], strides = [1, 1]} : vector<128x96xbf16> to vector<128x8xbf16>
    %11 = vector.shape_cast %10 : vector<128x8xbf16> to vector<8x16x8xbf16>
    %12 = vector.extract_strided_slice %8 {offsets = [0, 32], sizes = [128, 8], strides = [1, 1]} : vector<128x96xbf16> to vector<128x8xbf16>
    %13 = vector.shape_cast %12 : vector<128x8xbf16> to vector<8x16x8xbf16>
    %14 = vector.extract_strided_slice %8 {offsets = [0, 64], sizes = [128, 8], strides = [1, 1]} : vector<128x96xbf16> to vector<128x8xbf16>
    %15 = vector.shape_cast %14 : vector<128x8xbf16> to vector<8x16x8xbf16>
    "tpu.trace_start"() <{level = 10 : i32, message = "wqd,wkd->wqk"}> : () -> ()
    %cst_6 = arith.constant dense<0.000000e+00> : vector<8x16x16xf32>
    %16 = tpu.matmul %11, %13, %cst_6 {dimension_numbers = #tpu.dot_dimension_numbers<[2], [2], [1], [1], [0, 0, 0, 1, 1, 1], [0], [0]>} : vector<8x16x8xbf16>, vector<8x16x8xbf16>, vector<8x16x16xf32> -> vector<8x16x16xf32>
    "tpu.trace_stop"() : () -> ()
    %c0_7 = arith.constant 0 : index
    %c0_8 = arith.constant 0 : index
    %c0_9 = arith.constant 0 : index
    %c0_10 = arith.constant 0 : index
    %17 = vector.load %arg6[%c0_7, %c0_8, %c0_9, %c0_10] : memref<4x8x16x16xf32, #tpu.memory_space<vmem>>, vector<1x8x16x16xf32>
    %18 = vector.shape_cast %17 : vector<1x8x16x16xf32> to vector<8x16x16xf32>
    %19 = arith.addf %16, %18 : vector<8x16x16xf32>
    %cst_11 = arith.constant dense<0xFF800000> : vector<8x16xf32>
    %20 = vector.multi_reduction <maximumf>, %19, %cst_11 [2] : vector<8x16x16xf32> to vector<8x16xf32>
    %21 = vector.shape_cast %20 : vector<8x16xf32> to vector<8x16x1xf32>
    %22 = vector.broadcast %21 : vector<8x16x1xf32> to vector<8x16x16xf32>
    %23 = arith.subf %19, %22 : vector<8x16x16xf32>
    %24 = math.exp %23 : vector<8x16x16xf32>
    %cst_12 = arith.constant dense<0.000000e+00> : vector<8x16xf32>
    %25 = vector.multi_reduction <add>, %24, %cst_12 [2] : vector<8x16x16xf32> to vector<8x16xf32>
    %26 = vector.shape_cast %25 : vector<8x16xf32> to vector<8x16x1xf32>
    %27 = tpu.reciprocal %26 {approx = true} : vector<8x16x1xf32> -> vector<8x16x1xf32>
    %28 = vector.broadcast %27 : vector<8x16x1xf32> to vector<8x16x16xf32>
    %29 = arith.mulf %24, %28 : vector<8x16x16xf32>
    %30 = arith.truncf %29 : vector<8x16x16xf32> to vector<8x16x16xbf16>
    "tpu.trace_start"() <{level = 10 : i32, message = "wqk,wkd->wqd"}> : () -> ()
    %cst_13 = arith.constant dense<0.000000e+00> : vector<8x16x8xf32>
    %31 = tpu.matmul %30, %15, %cst_13 {dimension_numbers = #tpu.dot_dimension_numbers<[2], [1], [1], [2], [0, 0, 0, 1, 1, 2], [0], [0]>} : vector<8x16x16xbf16>, vector<8x16x8xbf16>, vector<8x16x8xf32> -> vector<8x16x8xf32>
    "tpu.trace_stop"() : () -> ()
    %32 = vector.shape_cast %31 : vector<8x16x8xf32> to vector<128x8xf32>
    %33 = arith.truncf %32 : vector<128x8xf32> to vector<128x8xbf16>
    %c0_14 = arith.constant 0 : index
    %c0_15 = arith.constant 0 : index
    %34 = vector.load %arg4[%c0_14, %c0_15] : memref<32x32xbf16, #tpu.memory_space<vmem>>, vector<8x32xbf16>
    %cst_16 = arith.constant dense<0.000000e+00> : vector<128x32xf32>
    %35 = tpu.matmul %33, %34, %cst_16 {dimension_numbers = #tpu.dot_dimension_numbers<[1], [0], [0], [1], [0, 0, 1, 1], [], []>} : vector<128x8xbf16>, vector<8x32xbf16>, vector<128x32xf32> -> vector<128x32xf32>
    %36 = arith.addf %9, %35 : vector<128x32xf32>
    %37 = vector.extract_strided_slice %8 {offsets = [0, 8], sizes = [128, 8], strides = [1, 1]} : vector<128x96xbf16> to vector<128x8xbf16>
    %38 = vector.shape_cast %37 : vector<128x8xbf16> to vector<8x16x8xbf16>
    %39 = vector.extract_strided_slice %8 {offsets = [0, 40], sizes = [128, 8], strides = [1, 1]} : vector<128x96xbf16> to vector<128x8xbf16>
    %40 = vector.shape_cast %39 : vector<128x8xbf16> to vector<8x16x8xbf16>
    %41 = vector.extract_strided_slice %8 {offsets = [0, 72], sizes = [128, 8], strides = [1, 1]} : vector<128x96xbf16> to vector<128x8xbf16>
    %42 = vector.shape_cast %41 : vector<128x8xbf16> to vector<8x16x8xbf16>
    "tpu.trace_start"() <{level = 10 : i32, message = "wqd,wkd->wqk"}> : () -> ()
    %cst_17 = arith.constant dense<0.000000e+00> : vector<8x16x16xf32>
    %43 = tpu.matmul %38, %40, %cst_17 {dimension_numbers = #tpu.dot_dimension_numbers<[2], [2], [1], [1], [0, 0, 0, 1, 1, 1], [0], [0]>} : vector<8x16x8xbf16>, vector<8x16x8xbf16>, vector<8x16x16xf32> -> vector<8x16x16xf32>
    "tpu.trace_stop"() : () -> ()
    %c1 = arith.constant 1 : index
    %c0_18 = arith.constant 0 : index
    %c0_19 = arith.constant 0 : index
    %c0_20 = arith.constant 0 : index
    %44 = vector.load %arg6[%c1, %c0_18, %c0_19, %c0_20] : memref<4x8x16x16xf32, #tpu.memory_space<vmem>>, vector<1x8x16x16xf32>
    %45 = vector.shape_cast %44 : vector<1x8x16x16xf32> to vector<8x16x16xf32>
    %46 = arith.addf %43, %45 : vector<8x16x16xf32>
    %cst_21 = arith.constant dense<0xFF800000> : vector<8x16xf32>
    %47 = vector.multi_reduction <maximumf>, %46, %cst_21 [2] : vector<8x16x16xf32> to vector<8x16xf32>
    %48 = vector.shape_cast %47 : vector<8x16xf32> to vector<8x16x1xf32>
    %49 = vector.broadcast %48 : vector<8x16x1xf32> to vector<8x16x16xf32>
    %50 = arith.subf %46, %49 : vector<8x16x16xf32>
    %51 = math.exp %50 : vector<8x16x16xf32>
    %cst_22 = arith.constant dense<0.000000e+00> : vector<8x16xf32>
    %52 = vector.multi_reduction <add>, %51, %cst_22 [2] : vector<8x16x16xf32> to vector<8x16xf32>
    %53 = vector.shape_cast %52 : vector<8x16xf32> to vector<8x16x1xf32>
    %54 = tpu.reciprocal %53 {approx = true} : vector<8x16x1xf32> -> vector<8x16x1xf32>
    %55 = vector.broadcast %54 : vector<8x16x1xf32> to vector<8x16x16xf32>
    %56 = arith.mulf %51, %55 : vector<8x16x16xf32>
    %57 = arith.truncf %56 : vector<8x16x16xf32> to vector<8x16x16xbf16>
    "tpu.trace_start"() <{level = 10 : i32, message = "wqk,wkd->wqd"}> : () -> ()
    %cst_23 = arith.constant dense<0.000000e+00> : vector<8x16x8xf32>
    %58 = tpu.matmul %57, %42, %cst_23 {dimension_numbers = #tpu.dot_dimension_numbers<[2], [1], [1], [2], [0, 0, 0, 1, 1, 2], [0], [0]>} : vector<8x16x16xbf16>, vector<8x16x8xbf16>, vector<8x16x8xf32> -> vector<8x16x8xf32>
    "tpu.trace_stop"() : () -> ()
    %59 = vector.shape_cast %58 : vector<8x16x8xf32> to vector<128x8xf32>
    %60 = arith.truncf %59 : vector<128x8xf32> to vector<128x8xbf16>
    %c8 = arith.constant 8 : index
    %c0_24 = arith.constant 0 : index
    %61 = vector.load %arg4[%c8, %c0_24] : memref<32x32xbf16, #tpu.memory_space<vmem>>, vector<8x32xbf16>
    %cst_25 = arith.constant dense<0.000000e+00> : vector<128x32xf32>
    %62 = tpu.matmul %60, %61, %cst_25 {dimension_numbers = #tpu.dot_dimension_numbers<[1], [0], [0], [1], [0, 0, 1, 1], [], []>} : vector<128x8xbf16>, vector<8x32xbf16>, vector<128x32xf32> -> vector<128x32xf32>
    %63 = arith.addf %36, %62 : vector<128x32xf32>
    %64 = vector.extract_strided_slice %8 {offsets = [0, 16], sizes = [128, 8], strides = [1, 1]} : vector<128x96xbf16> to vector<128x8xbf16>
    %65 = vector.shape_cast %64 : vector<128x8xbf16> to vector<8x16x8xbf16>
    %66 = vector.extract_strided_slice %8 {offsets = [0, 48], sizes = [128, 8], strides = [1, 1]} : vector<128x96xbf16> to vector<128x8xbf16>
    %67 = vector.shape_cast %66 : vector<128x8xbf16> to vector<8x16x8xbf16>
    %68 = vector.extract_strided_slice %8 {offsets = [0, 80], sizes = [128, 8], strides = [1, 1]} : vector<128x96xbf16> to vector<128x8xbf16>
    %69 = vector.shape_cast %68 : vector<128x8xbf16> to vector<8x16x8xbf16>
    "tpu.trace_start"() <{level = 10 : i32, message = "wqd,wkd->wqk"}> : () -> ()
    %cst_26 = arith.constant dense<0.000000e+00> : vector<8x16x16xf32>
    %70 = tpu.matmul %65, %67, %cst_26 {dimension_numbers = #tpu.dot_dimension_numbers<[2], [2], [1], [1], [0, 0, 0, 1, 1, 1], [0], [0]>} : vector<8x16x8xbf16>, vector<8x16x8xbf16>, vector<8x16x16xf32> -> vector<8x16x16xf32>
    "tpu.trace_stop"() : () -> ()
    %c2 = arith.constant 2 : index
    %c0_27 = arith.constant 0 : index
    %c0_28 = arith.constant 0 : index
    %c0_29 = arith.constant 0 : index
    %71 = vector.load %arg6[%c2, %c0_27, %c0_28, %c0_29] : memref<4x8x16x16xf32, #tpu.memory_space<vmem>>, vector<1x8x16x16xf32>
    %72 = vector.shape_cast %71 : vector<1x8x16x16xf32> to vector<8x16x16xf32>
    %73 = arith.addf %70, %72 : vector<8x16x16xf32>
    %cst_30 = arith.constant dense<0xFF800000> : vector<8x16xf32>
    %74 = vector.multi_reduction <maximumf>, %73, %cst_30 [2] : vector<8x16x16xf32> to vector<8x16xf32>
    %75 = vector.shape_cast %74 : vector<8x16xf32> to vector<8x16x1xf32>
    %76 = vector.broadcast %75 : vector<8x16x1xf32> to vector<8x16x16xf32>
    %77 = arith.subf %73, %76 : vector<8x16x16xf32>
    %78 = math.exp %77 : vector<8x16x16xf32>
    %cst_31 = arith.constant dense<0.000000e+00> : vector<8x16xf32>
    %79 = vector.multi_reduction <add>, %78, %cst_31 [2] : vector<8x16x16xf32> to vector<8x16xf32>
    %80 = vector.shape_cast %79 : vector<8x16xf32> to vector<8x16x1xf32>
    %81 = tpu.reciprocal %80 {approx = true} : vector<8x16x1xf32> -> vector<8x16x1xf32>
    %82 = vector.broadcast %81 : vector<8x16x1xf32> to vector<8x16x16xf32>
    %83 = arith.mulf %78, %82 : vector<8x16x16xf32>
    %84 = arith.truncf %83 : vector<8x16x16xf32> to vector<8x16x16xbf16>
    "tpu.trace_start"() <{level = 10 : i32, message = "wqk,wkd->wqd"}> : () -> ()
    %cst_32 = arith.constant dense<0.000000e+00> : vector<8x16x8xf32>
    %85 = tpu.matmul %84, %69, %cst_32 {dimension_numbers = #tpu.dot_dimension_numbers<[2], [1], [1], [2], [0, 0, 0, 1, 1, 2], [0], [0]>} : vector<8x16x16xbf16>, vector<8x16x8xbf16>, vector<8x16x8xf32> -> vector<8x16x8xf32>
    "tpu.trace_stop"() : () -> ()
    %86 = vector.shape_cast %85 : vector<8x16x8xf32> to vector<128x8xf32>
    %87 = arith.truncf %86 : vector<128x8xf32> to vector<128x8xbf16>
    %c16 = arith.constant 16 : index
    %c0_33 = arith.constant 0 : index
    %88 = vector.load %arg4[%c16, %c0_33] : memref<32x32xbf16, #tpu.memory_space<vmem>>, vector<8x32xbf16>
    %cst_34 = arith.constant dense<0.000000e+00> : vector<128x32xf32>
    %89 = tpu.matmul %87, %88, %cst_34 {dimension_numbers = #tpu.dot_dimension_numbers<[1], [0], [0], [1], [0, 0, 1, 1], [], []>} : vector<128x8xbf16>, vector<8x32xbf16>, vector<128x32xf32> -> vector<128x32xf32>
    %90 = arith.addf %63, %89 : vector<128x32xf32>
    %91 = vector.extract_strided_slice %8 {offsets = [0, 24], sizes = [128, 8], strides = [1, 1]} : vector<128x96xbf16> to vector<128x8xbf16>
    %92 = vector.shape_cast %91 : vector<128x8xbf16> to vector<8x16x8xbf16>
    %93 = vector.extract_strided_slice %8 {offsets = [0, 56], sizes = [128, 8], strides = [1, 1]} : vector<128x96xbf16> to vector<128x8xbf16>
    %94 = vector.shape_cast %93 : vector<128x8xbf16> to vector<8x16x8xbf16>
    %95 = vector.extract_strided_slice %8 {offsets = [0, 88], sizes = [128, 8], strides = [1, 1]} : vector<128x96xbf16> to vector<128x8xbf16>
    %96 = vector.shape_cast %95 : vector<128x8xbf16> to vector<8x16x8xbf16>
    "tpu.trace_start"() <{level = 10 : i32, message = "wqd,wkd->wqk"}> : () -> ()
    %cst_35 = arith.constant dense<0.000000e+00> : vector<8x16x16xf32>
    %97 = tpu.matmul %92, %94, %cst_35 {dimension_numbers = #tpu.dot_dimension_numbers<[2], [2], [1], [1], [0, 0, 0, 1, 1, 1], [0], [0]>} : vector<8x16x8xbf16>, vector<8x16x8xbf16>, vector<8x16x16xf32> -> vector<8x16x16xf32>
    "tpu.trace_stop"() : () -> ()
    %c3 = arith.constant 3 : index
    %c0_36 = arith.constant 0 : index
    %c0_37 = arith.constant 0 : index
    %c0_38 = arith.constant 0 : index
    %98 = vector.load %arg6[%c3, %c0_36, %c0_37, %c0_38] : memref<4x8x16x16xf32, #tpu.memory_space<vmem>>, vector<1x8x16x16xf32>
    %99 = vector.shape_cast %98 : vector<1x8x16x16xf32> to vector<8x16x16xf32>
    %100 = arith.addf %97, %99 : vector<8x16x16xf32>
    %cst_39 = arith.constant dense<0xFF800000> : vector<8x16xf32>
    %101 = vector.multi_reduction <maximumf>, %100, %cst_39 [2] : vector<8x16x16xf32> to vector<8x16xf32>
    %102 = vector.shape_cast %101 : vector<8x16xf32> to vector<8x16x1xf32>
    %103 = vector.broadcast %102 : vector<8x16x1xf32> to vector<8x16x16xf32>
    %104 = arith.subf %100, %103 : vector<8x16x16xf32>
    %105 = math.exp %104 : vector<8x16x16xf32>
    %cst_40 = arith.constant dense<0.000000e+00> : vector<8x16xf32>
    %106 = vector.multi_reduction <add>, %105, %cst_40 [2] : vector<8x16x16xf32> to vector<8x16xf32>
    %107 = vector.shape_cast %106 : vector<8x16xf32> to vector<8x16x1xf32>
    %108 = tpu.reciprocal %107 {approx = true} : vector<8x16x1xf32> -> vector<8x16x1xf32>
    %109 = vector.broadcast %108 : vector<8x16x1xf32> to vector<8x16x16xf32>
    %110 = arith.mulf %105, %109 : vector<8x16x16xf32>
    %111 = arith.truncf %110 : vector<8x16x16xf32> to vector<8x16x16xbf16>
    "tpu.trace_start"() <{level = 10 : i32, message = "wqk,wkd->wqd"}> : () -> ()
    %cst_41 = arith.constant dense<0.000000e+00> : vector<8x16x8xf32>
    %112 = tpu.matmul %111, %96, %cst_41 {dimension_numbers = #tpu.dot_dimension_numbers<[2], [1], [1], [2], [0, 0, 0, 1, 1, 2], [0], [0]>} : vector<8x16x16xbf16>, vector<8x16x8xbf16>, vector<8x16x8xf32> -> vector<8x16x8xf32>
    "tpu.trace_stop"() : () -> ()
    %113 = vector.shape_cast %112 : vector<8x16x8xf32> to vector<128x8xf32>
    %114 = arith.truncf %113 : vector<128x8xf32> to vector<128x8xbf16>
    %c24 = arith.constant 24 : index
    %c0_42 = arith.constant 0 : index
    %115 = vector.load %arg4[%c24, %c0_42] : memref<32x32xbf16, #tpu.memory_space<vmem>>, vector<8x32xbf16>
    %cst_43 = arith.constant dense<0.000000e+00> : vector<128x32xf32>
    %116 = tpu.matmul %114, %115, %cst_43 {dimension_numbers = #tpu.dot_dimension_numbers<[1], [0], [0], [1], [0, 0, 1, 1], [], []>} : vector<128x8xbf16>, vector<8x32xbf16>, vector<128x32xf32> -> vector<128x32xf32>
    %117 = arith.addf %90, %116 : vector<128x32xf32>
    %c0_44 = arith.constant 0 : index
    %c0_45 = arith.constant 0 : index
    %118 = vector.load %arg5[%c0_44, %c0_45] : memref<1x32xf32, #tpu.memory_space<vmem>>, vector<1x32xf32>
    %119 = vector.shape_cast %118 : vector<1x32xf32> to vector<32xf32>
    %120 = vector.shape_cast %119 : vector<32xf32> to vector<1x32xf32>
    %121 = vector.broadcast %120 : vector<1x32xf32> to vector<128x32xf32>
    %122 = arith.addf %117, %121 : vector<128x32xf32>
    %c0_46 = arith.constant 0 : index
    %c0_47 = arith.constant 0 : index
    %123 = vector.load %arg7[%c0_46, %c0_47] : memref<128x32xf32, #tpu.memory_space<vmem>>, vector<128x32xf32>
    tpu.vector_store %arg7[%c0_46, %c0_47], %122 {strides = array<i32>} : memref<128x32xf32, #tpu.memory_space<vmem>>, vector<128x32xf32>,
    return
  }
  func.func @transform_0(%arg0: i32) -> (i32, i32) {
    %c0_i32 = arith.constant 0 : i32
    %c0_i32_0 = arith.constant 0 : i32
    return %arg0, %c0_i32 : i32, i32
  }
  func.func @transform_1(%arg0: i32) -> (i32, i32) {
    %c0_i32 = arith.constant 0 : i32
    %c0_i32_0 = arith.constant 0 : i32
    %c0_i32_1 = arith.constant 0 : i32
    return %c0_i32, %c0_i32_0 : i32, i32
  }
  func.func @transform_2(%arg0: i32) -> (i32, i32) {
    %c0_i32 = arith.constant 0 : i32
    %c0_i32_0 = arith.constant 0 : i32
    %c0_i32_1 = arith.constant 0 : i32
    return %c0_i32, %c0_i32_0 : i32, i32
  }
  func.func @transform_3(%arg0: i32) -> (i32, i32) {
    %c0_i32 = arith.constant 0 : i32
    %c0_i32_0 = arith.constant 0 : i32
    %c0_i32_1 = arith.constant 0 : i32
    return %c0_i32, %c0_i32_0 : i32, i32
  }
  func.func @transform_4(%arg0: i32) -> (i32, i32) {
    %c0_i32 = arith.constant 0 : i32
    %c0_i32_0 = arith.constant 0 : i32
    %c0_i32_1 = arith.constant 0 : i32
    return %c0_i32, %c0_i32_0 : i32, i32
  }
  func.func @transform_5(%arg0: i32) -> (i32, i32, i32, i32) {
    %c0_i32 = arith.constant 0 : i32
    %c0_i32_0 = arith.constant 0 : i32
    %c0_i32_1 = arith.constant 0 : i32
    %c0_i32_2 = arith.constant 0 : i32
    %c0_i32_3 = arith.constant 0 : i32
    return %c0_i32, %c0_i32_0, %c0_i32_1, %c0_i32_2 : i32, i32, i32, i32
  }
  func.func @transform_6(%arg0: i32) -> (i32, i32) {
    %c0_i32 = arith.constant 0 : i32
    %c0_i32_0 = arith.constant 0 : i32
    return %arg0, %c0_i32 : i32, i32
  }
}

</mosaic_0001>

<bundles_post_ra>
// kernel: tpu_custom_call.1
= control target key start
LH: loop header
LB: loop body
LE: loop exit
PB: predicated region body
PF: predicated region fallthrough
CT: control target
= control target key end

     0   :  { %11 = vsyncpa [#allocation3], 0  ;;  %s5917_s21 = smov [#allocation2]   ;;  %s7459_s0 = inlined_call_operand.vmem [shape: bf16[128,32], index: 0, kind: input, shape index: {}]   ;;  %s7460_s1 = inlined_call_operand.vmem [shape: bf16[32,96], index: 1, kind: input, shape index: {}]   ;;  %s7461_s2 = inlined_call_operand.vmem [shape: f32[1,96], index: 2, kind: input, shape index: {}]   ;;  %s7462_s3 = inlined_call_operand.vmem [shape: bf16[32,32], index: 3, kind: input, shape index: {}]   ;;  %s7463_s4 = inlined_call_operand.vmem [shape: f32[1,32], index: 4, kind: input, shape index: {}]   ;;  %s7464_s5 = inlined_call_operand.hbm [shape: f32[4,8,16,16], index: 5, kind: input, shape index: {}]   ;;  %s7465_s6 = inlined_call_operand.vmem [shape: f32[128,32], index: 6, kind: output, shape index: {}]  }
   0x1   :  { %s27_s22 = sshll.u32 %s5917_s21, 4  ;;  %s5893_s25 = scalar_lea.hbm %s7464_s5, 8192  ;;  %s28_s22 = int_to_ptr.vmem [resolvable:$true] %s27_s22 }
   0x2   :  { %p5894_p0 = scmp.ne.s32.totalorder %s7464_s5, %s5893_s25  ;;  %p5897_p1 = scmp.lt.u32.totalorder %s5893_s25, %s7464_s5 }
   0x4   :  { %p5899_p2 = pnand %p5897_p1, %p5894_p0 }
   0x6   :  { %5902 = shalt.err (!%p5899_p2)
}
   0x7   :  { %s5903_s30 = scalar_lea.vmem %s28_s22, 8192  ;;  %p5908_p4 = scmp.lt.s32.totalorder %s28_s22, %s28_s22 }
   0x8   :  { %p5904_p3 = scmp.ne.s32.totalorder %s28_s22, %s5903_s30  ;;  %p5909_p5 = scmp.lt.s32.totalorder %s5903_s30, %s5903_s30 }
   0xa   :  { %p5910_p6 = por %p5909_p5, %p5908_p4 }
   0xc   :  { %p5911_p7 = pnand %p5910_p6, %p5904_p3 }
   0xe   :  { %5914 = shalt.err (!%p5911_p7)
}
   0xf   :  { %s5918_s7 = smov 128   ;;  %s5919_s8 = smov 8  }
  0x10   :  { %33 = dma.hbm_to_vmem [thread:$0]  %s7464_s5, 8192, %s28_s22, [#allocation3], %s5918_s7, %s5918_s7, %s5919_s8  }
  0x11   :  { %5915 = dma.done.wait [#allocation3], 8192  }
  0x12   :  { %5916 = vsyncadd [#allocation3], 4294959104  ;;  %v5627_v0 = vld [vmem:[%s7460_s1] sm:$0xff]   ;;  %v5628_v1 = vld [vmem:[%s7460_s1 + $0x8] sm:$0xff]   ;;  %vm117_vm0 = vcmask 261120   ;;  %v7466_v10 = vmov 0.0  }
  0x13   :  { %5079 = vmatprep.subr.bf16.mxu0 %v5627_v0  ;;  %v5629_v2 = vld [vmem:[%s7459_s0] sm:$0xff]   ;;  %5555 = vmatprep.subr.bf16.mxu1 %v5627_v0  ;;  %v5630_v3 = vld [vmem:[%s7459_s0 + $0x8] sm:$0xff]   ;;  %v5631_v4 = vld [vmem:[%s7459_s0 + $0x10] sm:$0xff]   ;;  %vm5921_vm1 = vmmov 0   ;;  %vm266_vm2 = vcmask 64512   ;;  %vm664_vm3 = vcmask 130048  }
  0x14   :  { %5080 = vmatpush3.bf16.msra.mxu0 %v5627_v0  ;;  %5557 = vmatpush3.bf16.msra.mxu1 %v5627_v0  ;;  %v5633_v5 = vld [vmem:[%s7459_s0 + $0x20] sm:$0xff]   ;;  %v5634_v6 = vld [vmem:[%s7459_s0 + $0x28] sm:$0xff]   ;;  %v5635_v7 = vld [vmem:[%s7459_s0 + $0x30] sm:$0xff]   ;;  %s5924_s7 = smov 120   ;;  %s5925_s8 = smov 88   ;;  %vm2252_vm4 = vcmask 1043456  }
  0x15   :  { %5081 = vmatprep.subr.bf16.mxu0 %v5628_v1  ;;  %5083 = vmatprep.mubr.msk.bf16.mxu0 %vm117_vm0, %v5629_v2  ;;  %v5632_v8 = vld [vmem:[%s7459_s0 + $0x18] sm:$0xff]   ;;  %v4789_v12 = vld [vmem:[%s7461_s2] ss:$0 sm:$0xff]  ;;  %s5923_s2 = smov 64   ;;  %s5926_s9 = smov 56  }
  0x16   :  { %5556 = vmatprep.subr.bf16.mxu1 %v5628_v1  ;;  %5091 = vmatprep.mubr.msk.bf16.mxu1 %vm117_vm0, %v5633_v5  ;;  %v5636_v9 = vld [vmem:[%s7459_s0 + $0x38] sm:$0xff]   ;;  %s5922_s0 = smov 96   ;;  %s5927_s10 = smov 80  }
  0x17   :  { %s5928_s11 = smov 112   ;;  %s5929_s12 = smov 48  }
  0x18   :  { %5082 = vmatpush3.bf16.msra.mxu0 %v5628_v1  ;;  %5558 = vmatpush3.bf16.msra.mxu1 %v5628_v1  ;;  %s5930_s5 = smov 72   ;;  %s5931_s17 = smov 104  }
  0x19   :  { %5099 = vmatprep.subr.bf16.mxu1 %v7466_v10  ;;  %5123 = vmatprep.subr.bf16.mxu0 %v7466_v10  ;;  %s5932_s1 = smov 40  }
  0x1b   :  { %5084 = vmatmul.mubr.msk.bf16.vlgmr.msra.gmra.mrb[0].mxu0 %vm117_vm0, %v5630_v3  ;;  %5092 = vmatmul.mubr.msk.bf16.vlgmr.msra.gmra.mrb[0].mxu1 %vm117_vm0, %v5634_v6 }
  0x1c   :  { %5087 = vmatprep.mubr.msk.bf16.mxu0 %vm117_vm0, %v5631_v4  ;;  %5095 = vmatprep.mubr.msk.bf16.mxu1 %vm117_vm0, %v5635_v7 }
  0x23   :  { %5088 = vmatmul.mubr.msk.bf16.gmra.mrb[4].mxu0 %vm117_vm0, %v5632_v8  ;;  %5096 = vmatmul.mubr.msk.bf16.gmra.mrb[4].mxu1 %vm117_vm0, %v5636_v9  ;;  %v249_v8 = vld [vmem:[#allocation2 + $0x10] sm:$0xff] }
  0x24   :  { %5101 = vmatprep.mubr.msk.bf16.mxu1 %vm5921_vm1, %v7466_v10  ;;  %5125 = vmatprep.mubr.msk.bf16.mxu0 %vm5921_vm1, %v7466_v10 }
  0xee   :  { %v5085_v11 = vpop.f32.mrb[0].mxu0  ;;  %v5093_v13 = vpop.f32.mrb[0].mxu1 }
  0xef   :  { %v176_v14 = vpop.f32.mrb[1].mxu0  ;;  %v217_v15 = vadd.f32 %v5093_v13, %v4789_v12  ;;  %v208_v16 = vpop.f32.mrb[1].mxu1  ;;  %v185_v20 = vadd.f32 %v5085_v11, %v4789_v12  ;;  %v250_v11 = vld [vmem:[#allocation2 + $0x18] sm:$0xff] }
  0xf0   :  { %v5086_v17 = vpop.f32.mrb[2].mxu0  ;;  %v209_v18 = vadd.f32 %v4789_v12, %v208_v16  ;;  %v5094_v19 = vpop.f32.mrb[2].mxu1  ;;  %v177_v25 = vadd.f32 %v4789_v12, %v176_v14 }
  0xf1   :  { %v188_v21 = vadd.f32 %v5086_v17, %v4789_v12  ;;  %v179_v22 = vpop.f32.mrb[3].mxu0  ;;  %v220_v23 = vadd.f32 %v5094_v19, %v4789_v12  ;;  %v211_v24 = vpop.f32.mrb[3].mxu1 }
  0xf2   :  { %v180_v26 = vadd.f32 %v4789_v12, %v179_v22  ;;  %v212_v27 = vadd.f32 %v4789_v12, %v211_v24 }
  0xf3   :  { %v6027_v28 = vpack.c.bf16 %v188_v21, %v185_v20  ;;  %v6029_v29 = vpack.c.bf16 %v220_v23, %v217_v15 }
  0xf4   :  { %v6031_v30 = vpack.c.bf16 %v180_v26, %v177_v25  ;;  %v6033_v31 = vpack.c.bf16 %v212_v27, %v209_v18 }
  0xf6   :  { %v5089_v32 = vpop.f32.mrb[4].mxu0  ;;  %264 = vrot.lane.b32.xlu0 %v6031_v30, %s5922_s0  ;;  %v5097_v33 = vpop.f32.mrb[4].mxu1 }
  0xf7   :  { %v201_v34 = vadd.f32 %v5089_v32, %v4789_v12  ;;  %v192_v35 = vpop.f32.mrb[5].mxu0  ;;  %v233_v36 = vadd.f32 %v5097_v33, %v4789_v12  ;;  %v224_v37 = vpop.f32.mrb[5].mxu1 }
  0xf8   :  { %v193_v38 = vadd.f32 %v4789_v12, %v192_v35  ;;  %v5090_v39 = vpop.f32.mrb[6].mxu0  ;;  %v225_v40 = vadd.f32 %v4789_v12, %v224_v37  ;;  %v5098_v41 = vpop.f32.mrb[6].mxu1  ;;  %v254_v37 = vld [vmem:[#allocation2 + $0x38] sm:$0xff] }
  0xf9   :  { %v204_v42 = vadd.f32 %v5090_v39, %v4789_v12  ;;  %v195_v43 = vpop.f32.mrb[7].mxu0  ;;  %v236_v44 = vadd.f32 %v5098_v41, %v4789_v12  ;;  %v227_v45 = vpop.f32.mrb[7].mxu1 }
  0xfa   :  { %v196_v46 = vadd.f32 %v4789_v12, %v195_v43  ;;  %315 = vrot.lane.b32.xlu0 %v6027_v28, %s5922_s0  ;;  %v228_v47 = vadd.f32 %v4789_v12, %v227_v45 }
  0xfb   :  { %v6037_v48 = vpack.c.bf16 %v204_v42, %v201_v34  ;;  %v6039_v49 = vpack.c.bf16 %v236_v44, %v233_v36  ;;  %v253_v34 = vld [vmem:[#allocation2 + $0x30] sm:$0xff] }
  0xfc   :  { %v6041_v50 = vpack.c.bf16 %v196_v46, %v193_v38  ;;  %v6043_v51 = vpack.c.bf16 %v228_v47, %v225_v40  ;;  %v257_v44 = vld [vmem:[#allocation2 + $0x50] sm:$0xff]  ;;  %v258_v47 = vld [vmem:[#allocation2 + $0x58] sm:$0xff] }
  0xfe   :  { %365 = vrot.lane.b32.xlu1 %v6041_v50, %s5922_s0  ;;  %515 = vrot.lane.b32.xlu0 %v6029_v29, %s5922_s0 }
 0x102   :  { %415 = vrot.lane.b32.xlu1 %v6037_v48, %s5922_s0  ;;  %465 = vrot.lane.b32.xlu0 %v6033_v31, %s5922_s0 }
 0x106   :  { %615 = vrot.lane.b32.xlu1 %v6039_v49, %s5922_s0 }
 0x10a   :  { %565 = vrot.lane.b32.xlu1 %v6043_v51, %s5922_s0 }
 0x168   :  { %v265_v52 = vpop.permute.xlu0 %264 }
 0x169   :  { %v271_v53 = vsel %vm266_vm2, %v265_v52, 0 }
 0x16a   :  { %5100 = vmatpush3.bf16.xpose.msra.mxu1 %v271_v53 }
 0x16b   :  { %5105 = vmatprep.subr.bf16.mxu1 %v7466_v10 }
 0x16c   :  { %v316_v54 = vpop.permute.xlu0 %315 }
 0x16d   :  { %v321_v57 = vsel %vm266_vm2, %v316_v54, 0 }
 0x170   :  { %v366_v55 = vpop.permute.xlu1 %365  ;;  %v516_v56 = vpop.permute.xlu0 %515 }
 0x171   :  { %5102 = vmatmul.mubr.msk.bf16.vlgmr.msra.gmra.mrb[8].mxu1 %vm266_vm2, %v6031_v30  ;;  %v371_v62 = vsel %vm266_vm2, %v366_v55, 0  ;;  %v521_v2 = vsel %vm266_vm2, %v516_v56, 0 }
 0x172   :  { %5106 = vmatpush3.bf16.xpose.msra.mxu1 %v321_v57  ;;  %5107 = vmatprep.mubr.msk.bf16.mxu1 %vm5921_vm1, %v7466_v10 }
 0x173   :  { %5111 = vmatprep.subr.bf16.mxu1 %v7466_v10 }
 0x174   :  { %v416_v58 = vpop.permute.xlu1 %415  ;;  %v466_v59 = vpop.permute.xlu0 %465 }
 0x175   :  { %v471_v60 = vsel %vm266_vm2, %v466_v59, 0  ;;  %v421_v1 = vsel %vm266_vm2, %v416_v58, 0  ;;  %v261_v59 = vld [vmem:[#allocation2 + $0x70] sm:$0xff] }
 0x176   :  { %5124 = vmatpush3.bf16.xpose.msra.mxu0 %v471_v60 }
 0x177   :  { %5135 = vmatprep.subr.bf16.mxu0 %v7466_v10 }
 0x178   :  { %v616_v61 = vpop.permute.xlu1 %615 }
 0x179   :  { %5108 = vmatmul.mubr.msk.bf16.vlgmr.msra.gmra.mrb[12].mxu1 %vm266_vm2, %v6027_v28  ;;  %v621_v3 = vsel %vm266_vm2, %v616_v61, 0  ;;  %v262_v61 = vld [vmem:[#allocation2 + $0x78] sm:$0xff] }
 0x17a   :  { %5112 = vmatpush3.bf16.xpose.msra.mxu1 %v371_v62  ;;  %5113 = vmatprep.mubr.msk.bf16.mxu1 %vm5921_vm1, %v7466_v10 }
 0x17b   :  { %5117 = vmatprep.subr.bf16.mxu1 %v7466_v10 }
 0x17c   :  { %v566_v63 = vpop.permute.xlu1 %565 }
 0x17d   :  { %v571_v0 = vsel %vm266_vm2, %v566_v63, 0  ;;  %5126 = vmatmul.mubr.msk.bf16.vlgmr.msra.gmra.mrb[8].mxu0 %vm266_vm2, %v6033_v31 }
 0x17e   :  { %5136 = vmatpush3.bf16.xpose.msra.mxu0 %v571_v0  ;;  %5137 = vmatprep.mubr.msk.bf16.mxu0 %vm5921_vm1, %v7466_v10 }
 0x17f   :  { %5147 = vmatprep.subr.bf16.mxu0 %v7466_v10 }
 0x181   :  { %5114 = vmatmul.mubr.msk.bf16.vlgmr.msra.gmra.mrb[16].mxu1 %vm266_vm2, %v6041_v50 }
 0x182   :  { %5118 = vmatpush3.bf16.xpose.msra.mxu1 %v421_v1  ;;  %5119 = vmatprep.mubr.msk.bf16.mxu1 %vm5921_vm1, %v7466_v10 }
 0x183   :  { %5129 = vmatprep.subr.bf16.mxu1 %v7466_v10 }
 0x185   :  { %5138 = vmatmul.mubr.msk.bf16.vlgmr.msra.gmra.mrb[12].mxu0 %vm266_vm2, %v6043_v51 }
 0x186   :  { %5149 = vmatprep.mubr.msk.bf16.mxu0 %vm5921_vm1, %v7466_v10 }
 0x189   :  { %5120 = vmatmul.mubr.msk.bf16.vlgmr.msra.gmra.mrb[20].mxu1 %vm266_vm2, %v6037_v48 }
 0x18a   :  { %5130 = vmatpush3.bf16.xpose.msra.mxu1 %v521_v2  ;;  %5131 = vmatprep.mubr.msk.bf16.mxu1 %vm5921_vm1, %v7466_v10 }
 0x18b   :  { %5141 = vmatprep.subr.bf16.mxu1 %v7466_v10 }
 0x191   :  { %5132 = vmatmul.mubr.msk.bf16.vlgmr.msra.gmra.mrb[24].mxu1 %vm266_vm2, %v6029_v29 }
 0x192   :  { %5142 = vmatpush3.bf16.xpose.msra.mxu1 %v621_v3  ;;  %5143 = vmatprep.mubr.msk.bf16.mxu1 %vm5921_vm1, %v7466_v10 }
 0x193   :  { %5153 = vmatprep.subr.bf16.mxu1 %v7466_v10 }
 0x199   :  { %5144 = vmatmul.mubr.msk.bf16.vlgmr.msra.gmra.mrb[28].mxu1 %vm266_vm2, %v6039_v49 }
 0x19a   :  { %5155 = vmatprep.mubr.msk.bf16.mxu1 %vm5921_vm1, %v7466_v10 }
 0x244   :  { %v6099_v4 = vpop.f32.mrb[8].mxu1 }
 0x245   :  { %v5103_v5 = vpop.f32.mrb[9].mxu1 }
 0x246   :  { %v6101_v6 = vpop.f32.mrb[10].mxu1 }
 0x247   :  { %v5104_v7 = vpop.f32.mrb[11].mxu1 }
 0x24c   :  { %v357_v9 = vpop.f32.mrb[12].mxu1 }
 0x24d   :  { %v6103_v12 = vadd.f32 %v357_v9, %v249_v8  ;;  %v5109_v13 = vpop.f32.mrb[13].mxu1 }
 0x24e   :  { %v360_v14 = vpop.f32.mrb[14].mxu1 }
 0x24f   :  { %v361_v15 = vadd.f32 %v360_v14, %v250_v11  ;;  %v5110_v16 = vpop.f32.mrb[15].mxu1  ;;  %v671_v17 = vsel %vm664_vm3, %v6103_v12, -inf }
 0x250   :  { %672 = vmax.xlane.f32.xlu0 %v671_v17  ;;  %v6107_v18 = vpop.f32.mrb[8].mxu0 }
 0x251   :  { %v5127_v19 = vpop.f32.mrb[9].mxu0  ;;  %v674_v20 = vsel %vm664_vm3, %v361_v15, -inf }
 0x252   :  { %675 = vmax.xlane.f32.xlu1 %v674_v20  ;;  %v6110_v21 = vpop.f32.mrb[10].mxu0 }
 0x253   :  { %v5128_v22 = vpop.f32.mrb[11].mxu0 }
 0x254   :  { %v6112_v23 = vpop.f32.mrb[16].mxu1 }
 0x255   :  { %v5115_v24 = vpop.f32.mrb[17].mxu1 }
 0x256   :  { %v6114_v25 = vpop.f32.mrb[18].mxu1 }
 0x257   :  { %v5116_v26 = vpop.f32.mrb[19].mxu1 }
 0x258   :  { %v6116_v27 = vpop.f32.mrb[12].mxu0 }
 0x259   :  { %v5139_v32 = vpop.f32.mrb[13].mxu0 }
 0x25a   :  { %v6118_v33 = vpop.f32.mrb[14].mxu0 }
 0x25b   :  { %v5140_v35 = vpop.f32.mrb[15].mxu0 }
 0x25c   :  { %v457_v36 = vpop.f32.mrb[20].mxu1 }
 0x25d   :  { %v458_v38 = vadd.f32 %v457_v36, %v253_v34  ;;  %v5121_v39 = vpop.f32.mrb[21].mxu1 }
 0x25e   :  { %v460_v40 = vpop.f32.mrb[22].mxu1 }
 0x25f   :  { %v461_v41 = vadd.f32 %v460_v40, %v254_v37  ;;  %v5122_v42 = vpop.f32.mrb[23].mxu1  ;;  %v683_v43 = vsel %vm664_vm3, %v458_v38, -inf }
 0x260   :  { %684 = vmax.xlane.f32.xlu0 %v683_v43 }
 0x261   :  { %v686_v45 = vsel %vm664_vm3, %v461_v41, -inf }
 0x264   :  { %687 = vmax.xlane.f32.xlu0 %v686_v45  ;;  %v557_v46 = vpop.f32.mrb[24].mxu1 }
 0x265   :  { %v558_v52 = vadd.f32 %v557_v46, %v257_v44  ;;  %v5133_v53 = vpop.f32.mrb[25].mxu1 }
 0x266   :  { %v560_v54 = vpop.f32.mrb[26].mxu1 }
 0x267   :  { %v561_v55 = vadd.f32 %v560_v54, %v258_v47  ;;  %v5134_v56 = vpop.f32.mrb[27].mxu1  ;;  %v695_v57 = vsel %vm664_vm3, %v558_v52, -inf }
 0x268   :  { %696 = vmax.xlane.f32.xlu1 %v695_v57 }
 0x269   :  { %v698_v58 = vsel %vm664_vm3, %v561_v55, -inf }
 0x26a   :  { %699 = vmax.xlane.f32.xlu0 %v698_v58 }
 0x26c   :  { %v657_v60 = vpop.f32.mrb[28].mxu1 }
 0x26d   :  { %v6124_v62 = vadd.f32 %v657_v60, %v261_v59  ;;  %v5145_v63 = vpop.f32.mrb[29].mxu1 }
 0x26e   :  { %v660_v0 = vpop.f32.mrb[30].mxu1 }
 0x26f   :  { %v661_v1 = vadd.f32 %v660_v0, %v262_v61  ;;  %v5146_v2 = vpop.f32.mrb[31].mxu1  ;;  %v707_v3 = vsel %vm664_vm3, %v6124_v62, -inf  ;;  %v248_v0 = vld [vmem:[#allocation2 + $0x8] sm:$0xff] }
 0x270   :  { %708 = vmax.xlane.f32.xlu1 %v707_v3  ;;  %v251_v2 = vld [vmem:[#allocation2 + $0x20] sm:$0xff]  ;;  %v6192_v3 = vadd.f32 %v6101_v6, %v248_v0 }
 0x271   :  { %v710_v5 = vsel %vm664_vm3, %v661_v1, -inf }
 0x272   :  { %711 = vmax.xlane.f32.xlu0 %v710_v5  ;;  %v668_v6 = vsel %vm664_vm3, %v6192_v3, -inf }
 0x281   :  { %896 = vrot.lane.b32.xlu1 %v6027_v28, %s5923_s2 }
 0x2dd   :  { %v673_v7 = vpop.xlane.xlu0 %672 }
 0x2de   :  { %v715_v8 = vsub.f32 %v6103_v12, %v673_v7  ;;  %v255_v7 = vld [vmem:[#allocation2 + $0x40] sm:$0xff] }
 0x2df   :  { %v676_v9 = vpop.xlane.xlu1 %675 }
 0x2e0   :  { %v733_v11 = vmul.f32 1.442695, %v715_v8  ;;  %v716_v13 = vsub.f32 %v361_v15, %v676_v9  ;;  %v6195_v8 = vadd.f32 %v6112_v23, %v251_v2 }
 0x2e2   :  { %5637 = vpow2.f32 %v733_v11  ;;  %v735_v14 = vmul.f32 1.442695, %v716_v13  ;;  %v252_v13 = vld [vmem:[#allocation2 + $0x28] sm:$0xff]  ;;  %v677_v23 = vsel %vm664_vm3, %v6195_v8, -inf }
 0x2e4   :  { %5639 = vpow2.f32 %v735_v14  ;;  %v259_v14 = vld [vmem:[#allocation2 + $0x60] sm:$0xff] }
 0x2ec   :  { %v6132_v16 = vpop.eup %5637 }
 0x2ed   :  { %v685_v17 = vpop.xlane.xlu0 %684  ;;  %v767_v19 = vsel %vm664_vm3, %v6132_v16, 0.0 }
 0x2ee   :  { %v6136_v20 = vpop.eup %5639  ;;  %v719_v22 = vsub.f32 %v458_v38, %v685_v17  ;;  %768 = vadd.xlane.f32.xlu1 %v767_v19  ;;  %v6205_v17 = vadd.f32 %v6114_v25, %v252_v13  ;;  %v256_v19 = vld [vmem:[#allocation2 + $0x48] sm:$0xff] }
 0x2ef   :  { %v770_v24 = vsel %vm664_vm3, %v6136_v20, 0.0 }
 0x2f0   :  { %v741_v12 = vmul.f32 1.442695, %v719_v22  ;;  %771 = vadd.xlane.f32.xlu0 %v770_v24  ;;  %v6210_v22 = vadd.f32 %v6116_v27, %v259_v14  ;;  %v6215_v24 = vadd.f32 %v6110_v21, %v256_v19 }
 0x2f1   :  { %v688_v26 = vpop.xlane.xlu0 %687 }
 0x2f2   :  { %5641 = vpow2.f32 %v741_v12  ;;  %v720_v15 = vsub.f32 %v461_v41, %v688_v26  ;;  %v680_v12 = vsel %vm664_vm3, %v6205_v17, -inf  ;;  %v260_v26 = vld [vmem:[#allocation2 + $0x68] sm:$0xff]  ;;  %v692_v21 = vsel %vm664_vm3, %v6215_v24, -inf }
 0x2f3   :  { %v6222_v27 = vadd.f32 %v6118_v33, %v260_v26 }
 0x2f4   :  { %v743_v32 = vmul.f32 1.442695, %v720_v15  ;;  %v701_v15 = vsel %vm664_vm3, %v6210_v22, -inf }
 0x2f5   :  { %v697_v34 = vpop.xlane.xlu1 %696 }
 0x2f6   :  { %5643 = vpow2.f32 %v743_v32  ;;  %v723_v35 = vsub.f32 %v558_v52, %v697_v34 }
 0x2f7   :  { %v700_v36 = vpop.xlane.xlu0 %699 }
 0x2f8   :  { %v749_v37 = vmul.f32 1.442695, %v723_v35  ;;  %v724_v39 = vsub.f32 %v561_v55, %v700_v36 }
 0x2fa   :  { %5645 = vpow2.f32 %v749_v37  ;;  %v751_v40 = vmul.f32 1.442695, %v724_v39  ;;  %v704_v39 = vsel %vm664_vm3, %v6222_v27, -inf }
 0x2fc   :  { %v6140_v42 = vpop.eup %5641  ;;  %5647 = vpow2.f32 %v751_v40 }
 0x2fd   :  { %v709_v38 = vpop.xlane.xlu1 %708  ;;  %v779_v43 = vsel %vm664_vm3, %v6140_v42, 0.0 }
 0x2fe   :  { %780 = vadd.xlane.f32.xlu1 %v779_v43  ;;  %v727_v56 = vsub.f32 %v6124_v62, %v709_v38  ;;  %v247_v62 = vld [vmem:[#allocation2] sm:$0xff] }
 0x2ff   :  { %v712_v54 = vpop.xlane.xlu0 %711 }
 0x300   :  { %v6144_v44 = vpop.eup %5643  ;;  %v728_v55 = vsub.f32 %v661_v1, %v712_v54  ;;  %v757_v58 = vmul.f32 1.442695, %v727_v56  ;;  %v6189_v1 = vadd.f32 %v6099_v4, %v247_v62  ;;  %v6200_v4 = vadd.f32 %v6107_v18, %v255_v7 }
 0x301   :  { %v897_v41 = vpop.permute.xlu1 %896  ;;  %v782_v45 = vsel %vm664_vm3, %v6144_v44, 0.0 }
 0x302   :  { %5154 = vmatpush3.bf16.msra.mxu1 %v897_v41  ;;  %783 = vadd.xlane.f32.xlu0 %v782_v45  ;;  %v759_v57 = vmul.f32 1.442695, %v728_v55  ;;  %v665_v11 = vsel %vm664_vm3, %v6189_v1, -inf  ;;  %v689_v18 = vsel %vm664_vm3, %v6200_v4, -inf }
 0x303   :  { %5165 = vmatprep.subr.bf16.mxu1 %v7466_v10 }
 0x304   :  { %v6149_v46 = vpop.eup %5645  ;;  %5649 = vpow2.f32 %v759_v57 }
 0x305   :  { %v791_v47 = vsel %vm664_vm3, %v6149_v46, 0.0  ;;  %5651 = vpow2.f32 %v757_v58 }
 0x306   :  { %v6153_v52 = vpop.eup %5647  ;;  %792 = vadd.xlane.f32.xlu1 %v791_v47 }
 0x307   :  { %v794_v53 = vsel %vm664_vm3, %v6153_v52, 0.0 }
 0x308   :  { %795 = vadd.xlane.f32.xlu0 %v794_v53 }
 0x30e   :  { %v6164_v59 = vpop.eup %5649 }
 0x30f   :  { %v6166_v60 = vpop.eup %5651  ;;  %v806_v61 = vsel %vm664_vm3, %v6164_v59, 0.0 }
 0x310   :  { %v803_v63 = vsel %vm664_vm3, %v6166_v60, 0.0 }
 0x317   :  { %1084 = vrot.lane.b32.xlu1 %v6029_v29, %s5923_s2 }
 0x31b   :  { %1178 = vrot.lane.b32.xlu1 %v6039_v49, %s5923_s2 }
 0x31e   :  { %990 = vrot.lane.b32.xlu0 %v6037_v48, %s5923_s2 }
 0x33d   :  { %807 = vadd.xlane.f32.xlu0 %v806_v61 }
 0x33f   :  { %804 = vadd.xlane.f32.xlu1 %v803_v63 }
 0x350   :  { %1302 = vrot.lane.b32.xlu1 %v6027_v28, %s5924_s7 }
 0x353   :  { %1304 = vrot.lane.b32.xlu0 %v6027_v28, %s5925_s8 }
 0x354   :  { %1404 = vrot.lane.b32.xlu1 %v6037_v48, %s5924_s7 }
 0x357   :  { %1406 = vrot.lane.b32.xlu0 %v6037_v48, %s5925_s8 }
 0x358   :  { %1506 = vrot.lane.b32.xlu1 %v6029_v29, %s5924_s7 }
 0x35b   :  { %1508 = vrot.lane.b32.xlu0 %v6029_v29, %s5925_s8 }
 0x35c   :  { %1608 = vrot.lane.b32.xlu1 %v6039_v49, %s5924_s7 }
 0x35f   :  { %1610 = vrot.lane.b32.xlu0 %v6039_v49, %s5925_s8 }
 0x37b   :  { %v769_v5 = vpop.xlane.xlu1 %768 }
 0x37c   :  { %5653 = vrcp.f32 %v769_v5 }
 0x37d   :  { %v772_v9 = vpop.xlane.xlu0 %771 }
 0x37e   :  { %5655 = vrcp.f32 %v772_v9  ;;  %666 = vmax.xlane.f32.xlu0 %v665_v11 }
 0x380   :  { %669 = vmax.xlane.f32.xlu1 %v668_v6 }
 0x382   :  { %678 = vmax.xlane.f32.xlu0 %v677_v23 }
 0x384   :  { %690 = vmax.xlane.f32.xlu1 %v689_v18 }
 0x386   :  { %v5654_v25 = vpop.eup %5653  ;;  %681 = vmax.xlane.f32.xlu0 %v680_v12 }
 0x387   :  { %v827_v34 = vmul.f32 %v5654_v25, %v6132_v16 }
 0x388   :  { %v5656_v32 = vpop.eup %5655  ;;  %702 = vmax.xlane.f32.xlu1 %v701_v15 }
 0x389   :  { %v828_v35 = vmul.f32 %v5656_v32, %v6136_v20 }
 0x38a   :  { %693 = vmax.xlane.f32.xlu0 %v692_v21 }
 0x38b   :  { %v781_v36 = vpop.xlane.xlu1 %780  ;;  %v842_v37 = vpack.c.bf16 %v828_v35, %v827_v34 }
 0x38c   :  { %5657 = vrcp.f32 %v781_v36 }
 0x38d   :  { %5156 = vmatmul.mubr.msk.bf16.vlgmr.msra.gmra.mrb[32].mxu1 %vm664_vm3, %v842_v37 }
 0x38e   :  { %705 = vmax.xlane.f32.xlu0 %v704_v39  ;;  %5167 = vmatprep.mubr.msk.bf16.mxu1 %vm5921_vm1, %v7466_v10 }
 0x38f   :  { %v784_v33 = vpop.xlane.xlu0 %783 }
 0x390   :  { %5659 = vrcp.f32 %v784_v33 }
 0x393   :  { %v793_v16 = vpop.xlane.xlu1 %792 }
 0x394   :  { %5661 = vrcp.f32 %v793_v16 }
 0x395   :  { %v796_v20 = vpop.xlane.xlu0 %795 }
 0x396   :  { %5663 = vrcp.f32 %v796_v20  ;;  %v5658_v40 = vpop.eup %5657 }
 0x397   :  { %v831_v41 = vmul.f32 %v5658_v40, %v6140_v42  ;;  %v1085_v54 = vpop.permute.xlu1 %1084 }
 0x399   :  { %v991_v38 = vpop.permute.xlu0 %990 }
 0x39a   :  { %v5660_v43 = vpop.eup %5659  ;;  %5166 = vmatpush3.bf16.msra.mxu1 %v991_v38 }
 0x39b   :  { %v832_v45 = vmul.f32 %v5660_v43, %v6144_v44  ;;  %5177 = vmatprep.subr.bf16.mxu1 %v7466_v10  ;;  %v1179_v44 = vpop.permute.xlu1 %1178 }
 0x39d   :  { %v844_v47 = vpack.c.bf16 %v832_v45, %v831_v41 }
 0x39e   :  { %v5662_v53 = vpop.eup %5661 }
 0x39f   :  { %5168 = vmatmul.mubr.msk.bf16.vlgmr.msra.gmra.mrb[36].mxu1 %vm664_vm3, %v844_v47  ;;  %v835_v42 = vmul.f32 %v5662_v53, %v6149_v46 }
 0x3a0   :  { %v5664_v55 = vpop.eup %5663  ;;  %5178 = vmatpush3.bf16.msra.mxu1 %v1085_v54  ;;  %5179 = vmatprep.mubr.msk.bf16.mxu1 %vm5921_vm1, %v7466_v10 }
 0x3a1   :  { %v836_v56 = vmul.f32 %v5664_v55, %v6153_v52  ;;  %5189 = vmatprep.subr.bf16.mxu1 %v7466_v10 }
 0x3a3   :  { %v846_v57 = vpack.c.bf16 %v836_v56, %v835_v42 }
 0x3a7   :  { %5180 = vmatmul.mubr.msk.bf16.vlgmr.msra.gmra.mrb[40].mxu1 %vm664_vm3, %v846_v57 }
 0x3a8   :  { %5190 = vmatpush3.bf16.msra.mxu1 %v1179_v44  ;;  %5191 = vmatprep.mubr.msk.bf16.mxu1 %vm5921_vm1, %v7466_v10 }
 0x3a9   :  { %5201 = vmatprep.subr.bf16.mxu1 %v7466_v10 }
 0x3ca   :  { %v808_v58 = vpop.xlane.xlu0 %807 }
 0x3cb   :  { %5665 = vrcp.f32 %v808_v58 }
 0x3cc   :  { %v805_v61 = vpop.xlane.xlu1 %804 }
 0x3cd   :  { %5667 = vrcp.f32 %v805_v61 }
 0x3ce   :  { %v1305_v0 = vpop.permute.xlu0 %1304 }
 0x3cf   :  { %v1310_v5 = vsel %vm266_vm2, %v1305_v0, 0 }
 0x3d0   :  { %v1303_v9 = vpop.permute.xlu1 %1302 }
 0x3d2   :  { %v1407_v7 = vpop.permute.xlu0 %1406 }
 0x3d3   :  { %v1412_v11 = vsel %vm266_vm2, %v1407_v7, 0 }
 0x3d5   :  { %v5666_v63 = vpop.eup %5665 }
 0x3d6   :  { %v840_v62 = vmul.f32 %v5666_v63, %v6164_v59  ;;  %v1509_v59 = vpop.permute.xlu0 %1508 }
 0x3d7   :  { %v5668_v52 = vpop.eup %5667  ;;  %v1514_v13 = vsel %vm266_vm2, %v1509_v59, 0 }
 0x3d8   :  { %v839_v46 = vmul.f32 %v5668_v52, %v6166_v60  ;;  %v1405_v60 = vpop.permute.xlu1 %1404 }
 0x3da   :  { %v848_v2 = vpack.c.bf16 %v840_v62, %v839_v46  ;;  %v1611_v6 = vpop.permute.xlu0 %1610 }
 0x3db   :  { %v1616_v23 = vsel %vm266_vm2, %v1611_v6, 0 }
 0x3dc   :  { %5192 = vmatmul.mubr.msk.bf16.vlgmr.msra.gmra.mrb[44].mxu1 %vm664_vm3, %v848_v2  ;;  %v1507_v14 = vpop.permute.xlu1 %1506 }
 0x3dd   :  { %5202 = vmatpush3.bf16.xpose.msra.mxu1 %v1310_v5  ;;  %5203 = vmatprep.mubr.msk.bf16.mxu1 %vm5921_vm1, %v7466_v10 }
 0x3de   :  { %5213 = vmatprep.subr.bf16.mxu1 %v7466_v10 }
 0x3e0   :  { %v1609_v19 = vpop.permute.xlu1 %1608 }
 0x3e4   :  { %5204 = vmatmul.mubr.msk.bf16.vlgmr.msra.gmra.mrb[48].mxu1 %vm266_vm2, %v1303_v9 }
 0x3e5   :  { %5214 = vmatpush3.bf16.xpose.msra.mxu1 %v1412_v11  ;;  %5215 = vmatprep.mubr.msk.bf16.mxu1 %vm5921_vm1, %v7466_v10 }
 0x3e6   :  { %5225 = vmatprep.subr.bf16.mxu1 %v7466_v10 }
 0x3ec   :  { %5216 = vmatmul.mubr.msk.bf16.vlgmr.msra.gmra.mrb[52].mxu1 %vm266_vm2, %v1405_v60 }
 0x3ed   :  { %5226 = vmatpush3.bf16.xpose.msra.mxu1 %v1514_v13  ;;  %5227 = vmatprep.mubr.msk.bf16.mxu1 %vm5921_vm1, %v7466_v10 }
 0x3ee   :  { %5237 = vmatprep.subr.bf16.mxu1 %v7466_v10 }
 0x3f4   :  { %5228 = vmatmul.mubr.msk.bf16.vlgmr.msra.gmra.mrb[56].mxu1 %vm266_vm2, %v1507_v14 }
 0x3f5   :  { %5238 = vmatpush3.bf16.xpose.msra.mxu1 %v1616_v23  ;;  %5239 = vmatprep.mubr.msk.bf16.mxu1 %vm5921_vm1, %v7466_v10 }
 0x3f6   :  { %5249 = vmatprep.subr.bf16.mxu1 %v7466_v10 }
 0x3fc   :  { %5240 = vmatmul.mubr.msk.bf16.vlgmr.msra.gmra.mrb[60].mxu1 %vm266_vm2, %v1609_v19 }
 0x3fd   :  { %5251 = vmatprep.mubr.msk.bf16.mxu1 %vm5921_vm1, %v7466_v10 }
 0x40b   :  { %v667_v18 = vpop.xlane.xlu0 %666 }
 0x40c   :  { %v713_v12 = vsub.f32 %v6189_v1, %v667_v18 }
 0x40d   :  { %v670_v25 = vpop.xlane.xlu1 %669 }
 0x40e   :  { %v729_v26 = vmul.f32 1.442695, %v713_v12  ;;  %v714_v15 = vsub.f32 %v6192_v3, %v670_v25 }
 0x40f   :  { %v679_v32 = vpop.xlane.xlu0 %678 }
 0x410   :  { %5669 = vpow2.f32 %v729_v26  ;;  %v731_v34 = vmul.f32 1.442695, %v714_v15  ;;  %v717_v35 = vsub.f32 %v6195_v8, %v679_v32 }
 0x411   :  { %v691_v21 = vpop.xlane.xlu1 %690 }
 0x412   :  { %5671 = vpow2.f32 %v731_v34  ;;  %v737_v36 = vmul.f32 1.442695, %v717_v35  ;;  %v721_v37 = vsub.f32 %v6200_v4, %v691_v21 }
 0x413   :  { %v682_v39 = vpop.xlane.xlu0 %681 }
 0x414   :  { %5673 = vpow2.f32 %v737_v36  ;;  %v745_v33 = vmul.f32 1.442695, %v721_v37  ;;  %v718_v16 = vsub.f32 %v6205_v17, %v682_v39 }
 0x415   :  { %v703_v1 = vpop.xlane.xlu1 %702 }
 0x416   :  { %5675 = vpow2.f32 %v745_v33  ;;  %v739_v20 = vmul.f32 1.442695, %v718_v16  ;;  %v725_v3 = vsub.f32 %v6210_v22, %v703_v1  ;;  %v1237_v33 = vld [vmem:[#allocation2 + $0x90] sm:$0xff] }
 0x417   :  { %v694_v40 = vpop.xlane.xlu0 %693 }
 0x418   :  { %5677 = vpow2.f32 %v739_v20  ;;  %v753_v38 = vmul.f32 1.442695, %v725_v3  ;;  %v722_v8 = vsub.f32 %v6215_v24, %v694_v40  ;;  %v1238_v40 = vld [vmem:[#allocation2 + $0x98] sm:$0xff] }
 0x41a   :  { %v6278_v43 = vpop.eup %5669  ;;  %5679 = vpow2.f32 %v753_v38  ;;  %v747_v41 = vmul.f32 1.442695, %v722_v8 }
 0x41b   :  { %v706_v4 = vpop.xlane.xlu0 %705  ;;  %v761_v45 = vsel %vm664_vm3, %v6278_v43, 0.0 }
 0x41c   :  { %v6282_v47 = vpop.eup %5671  ;;  %5681 = vpow2.f32 %v747_v41  ;;  %v726_v17 = vsub.f32 %v6222_v27, %v706_v4  ;;  %762 = vadd.xlane.f32.xlu1 %v761_v45 }
 0x41d   :  { %v764_v22 = vsel %vm664_vm3, %v6282_v47, 0.0 }
 0x41e   :  { %v6287_v53 = vpop.eup %5673  ;;  %v755_v24 = vmul.f32 1.442695, %v726_v17  ;;  %765 = vadd.xlane.f32.xlu0 %v764_v22 }
 0x41f   :  { %v773_v54 = vsel %vm664_vm3, %v6287_v53, 0.0 }
 0x420   :  { %v6291_v55 = vpop.eup %5675  ;;  %5683 = vpow2.f32 %v755_v24  ;;  %774 = vadd.xlane.f32.xlu1 %v773_v54 }
 0x421   :  { %v785_v27 = vsel %vm664_vm3, %v6291_v55, 0.0 }
 0x422   :  { %v6293_v56 = vpop.eup %5677 }
 0x423   :  { %v776_v42 = vsel %vm664_vm3, %v6293_v56, 0.0 }
 0x424   :  { %v6299_v57 = vpop.eup %5679  ;;  %786 = vadd.xlane.f32.xlu1 %v785_v27  ;;  %777 = vadd.xlane.f32.xlu0 %v776_v42 }
 0x425   :  { %v797_v58 = vsel %vm664_vm3, %v6299_v57, 0.0 }
 0x426   :  { %v6301_v44 = vpop.eup %5681 }
 0x427   :  { %v788_v61 = vsel %vm664_vm3, %v6301_v44, 0.0 }
 0x428   :  { %798 = vadd.xlane.f32.xlu1 %v797_v58  ;;  %789 = vadd.xlane.f32.xlu0 %v788_v61 }
 0x42a   :  { %v6307_v63 = vpop.eup %5683 }
 0x42b   :  { %v800_v52 = vsel %vm664_vm3, %v6307_v63, 0.0 }
 0x42c   :  { %801 = vadd.xlane.f32.xlu0 %v800_v52 }
 0x439   :  { %849 = vrot.lane.b32.xlu1 %v6031_v30, %s5923_s2 }
 0x43d   :  { %1037 = vrot.lane.b32.xlu1 %v6033_v31, %s5923_s2 }
 0x441   :  { %1131 = vrot.lane.b32.xlu1 %v6043_v51, %s5923_s2 }
 0x442   :  { %943 = vrot.lane.b32.xlu0 %v6041_v50, %s5923_s2 }
 0x445   :  { %1251 = vrot.lane.b32.xlu1 %v6031_v30, %s5924_s7 }
 0x446   :  { %1253 = vrot.lane.b32.xlu0 %v6031_v30, %s5925_s8 }
 0x449   :  { %1353 = vrot.lane.b32.xlu1 %v6041_v50, %s5924_s7 }
 0x44a   :  { %1355 = vrot.lane.b32.xlu0 %v6041_v50, %s5925_s8 }
 0x44d   :  { %1455 = vrot.lane.b32.xlu1 %v6033_v31, %s5924_s7 }
 0x44e   :  { %1457 = vrot.lane.b32.xlu0 %v6033_v31, %s5925_s8 }
 0x451   :  { %1557 = vrot.lane.b32.xlu1 %v6043_v51, %s5924_s7 }
 0x452   :  { %1559 = vrot.lane.b32.xlu0 %v6043_v51, %s5925_s8 }
 0x455   :  { %1890 = vrot.lane.b32.xlu1 %v6027_v28, %s5926_s9 }
 0x456   :  { %1984 = vrot.lane.b32.xlu0 %v6037_v48, %s5926_s9 }
 0x459   :  { %2078 = vrot.lane.b32.xlu1 %v6029_v29, %s5926_s9 }
 0x45a   :  { %2496 = vrot.lane.b32.xlu0 %v6031_v30, %s5927_s10 }
 0x45d   :  { %2172 = vrot.lane.b32.xlu1 %v6039_v49, %s5926_s9 }
 0x45e   :  { %2547 = vrot.lane.b32.xlu0 %v6027_v28, %s5927_s10 }
 0x460   :  { %v6347_v62 = vpop.f32.mrb[32].mxu1 }
 0x461   :  { %v5157_v46 = vpop.f32.mrb[33].mxu1  ;;  %2494 = vrot.lane.b32.xlu1 %v6031_v30, %s5928_s11 }
 0x462   :  { %v6351_v0 = vpop.f32.mrb[34].mxu1  ;;  %2598 = vrot.lane.b32.xlu0 %v6041_v50, %s5927_s10 }
 0x463   :  { %v5158_v5 = vpop.f32.mrb[35].mxu1 }
 0x465   :  { %2545 = vrot.lane.b32.xlu1 %v6027_v28, %s5928_s11 }
 0x466   :  { %2649 = vrot.lane.b32.xlu0 %v6037_v48, %s5927_s10 }
 0x469   :  { %2596 = vrot.lane.b32.xlu1 %v6041_v50, %s5928_s11 }
 0x472   :  { %v6363_v7 = vpop.f32.mrb[36].mxu1 }
 0x473   :  { %v5169_v9 = vpop.f32.mrb[37].mxu1 }
 0x474   :  { %v6365_v11 = vpop.f32.mrb[38].mxu1 }
 0x475   :  { %v5170_v60 = vpop.f32.mrb[39].mxu1 }
 0x47a   :  { %v6369_v13 = vpop.f32.mrb[40].mxu1 }
 0x47b   :  { %7474 = vst [vmem:[#allocation5_spill] sm:$0xff] %v6369_v13  ;;  %v5181_v6 = vpop.f32.mrb[41].mxu1 }
 0x47c   :  { %v6371_v14 = vpop.f32.mrb[42].mxu1 }
 0x47d   :  { %7475 = vst [vmem:[#allocation6_spill] sm:$0xff] %v6371_v14  ;;  %v5182_v19 = vpop.f32.mrb[43].mxu1 }
 0x4a9   :  { %v763_v18 = vpop.xlane.xlu1 %762 }
 0x4aa   :  { %5685 = vrcp.f32 %v763_v18 }
 0x4ab   :  { %v766_v12 = vpop.xlane.xlu0 %765 }
 0x4ac   :  { %5687 = vrcp.f32 %v766_v12 }
 0x4ad   :  { %v775_v25 = vpop.xlane.xlu1 %774 }
 0x4af   :  { %v6375_v26 = vpop.f32.mrb[44].mxu1 }
 0x4b0   :  { %7476 = vst [vmem:[#allocation7_spill] sm:$0xff] %v6375_v26  ;;  %v5193_v15 = vpop.f32.mrb[45].mxu1 }
 0x4b1   :  { %v6377_v32 = vpop.f32.mrb[46].mxu1  ;;  %v787_v34 = vpop.xlane.xlu1 %786 }
 0x4b2   :  { %7477 = vst [vmem:[#allocation8_spill] sm:$0xff] %v6377_v32  ;;  %v778_v21 = vpop.xlane.xlu0 %777  ;;  %v5194_v36 = vpop.f32.mrb[47].mxu1  ;;  %v1239_v32 = vld [vmem:[#allocation2 + $0xa0] sm:$0xff] }
 0x4b3   :  { %5689 = vrcp.f32 %v778_v21 }
 0x4b4   :  { %5691 = vrcp.f32 %v775_v25  ;;  %v5686_v37 = vpop.eup %5685 }
 0x4b5   :  { %v799_v39 = vpop.xlane.xlu1 %798  ;;  %v825_v41 = vmul.f32 %v5686_v37, %v6278_v43 }
 0x4b6   :  { %v5688_v16 = vpop.eup %5687  ;;  %v790_v1 = vpop.xlane.xlu0 %789 }
 0x4b7   :  { %v826_v20 = vmul.f32 %v5688_v16, %v6282_v47  ;;  %v1346_v3 = vpop.f32.mrb[48].mxu1  ;;  %5693 = vrcp.f32 %v790_v1 }
 0x4b8   :  { %v6382_v38 = vadd.f32 %v1346_v3, %v1237_v33  ;;  %v5205_v8 = vpop.f32.mrb[49].mxu1  ;;  %5695 = vrcp.f32 %v787_v34 }
 0x4b9   :  { %v1349_v4 = vpop.f32.mrb[50].mxu1  ;;  %v850_v45 = vpop.permute.xlu1 %849  ;;  %v841_v47 = vpack.c.bf16 %v826_v20, %v825_v41 }
 0x4ba   :  { %v6385_v17 = vadd.f32 %v1349_v4, %v1238_v40  ;;  %v802_v22 = vpop.xlane.xlu0 %801  ;;  %5148 = vmatpush3.bf16.msra.mxu0 %v850_v45  ;;  %v5206_v24 = vpop.f32.mrb[51].mxu1  ;;  %v1665_v54 = vsel %vm664_vm3, %v6382_v38, -inf }
 0x4bb   :  { %1666 = vmax.xlane.f32.xlu0 %v1665_v54  ;;  %5159 = vmatprep.subr.bf16.mxu0 %v7466_v10  ;;  %5697 = vrcp.f32 %v802_v22 }
 0x4bc   :  { %v1668_v27 = vsel %vm664_vm3, %v6385_v17, -inf  ;;  %5699 = vrcp.f32 %v799_v39 }
 0x4bd   :  { %v5690_v43 = vpop.eup %5689  ;;  %1669 = vmax.xlane.f32.xlu1 %v1668_v27  ;;  %v1038_v42 = vpop.permute.xlu1 %1037  ;;  %5150 = vmatmul.mubr.msk.bf16.vlgmr.msra.gmra.mrb[16].mxu0 %vm664_vm3, %v841_v47 }
 0x4be   :  { %v5692_v58 = vpop.eup %5691  ;;  %v944_v61 = vpop.permute.xlu0 %943  ;;  %5161 = vmatprep.mubr.msk.bf16.mxu0 %vm5921_vm1, %v7466_v10  ;;  %v830_v52 = vmul.f32 %v5690_v43, %v6293_v56  ;;  %v1241_v43 = vld [vmem:[#allocation2 + $0xb0] sm:$0xff] }
 0x4bf   :  { %5160 = vmatpush3.bf16.msra.mxu0 %v944_v61  ;;  %v6396_v46 = vpop.f32.mrb[52].mxu1  ;;  %v829_v9 = vmul.f32 %v5692_v58, %v6287_v53 }
 0x4c0   :  { %v5217_v5 = vpop.f32.mrb[53].mxu1  ;;  %5171 = vmatprep.subr.bf16.mxu0 %v7466_v10  ;;  %v6441_v58 = vadd.f32 %v6396_v46, %v1241_v43 }
 0x4c1   :  { %v6400_v60 = vpop.f32.mrb[54].mxu1  ;;  %v1132_v6 = vpop.permute.xlu1 %1131  ;;  %v843_v18 = vpack.c.bf16 %v830_v52, %v829_v9  ;;  %v1242_v52 = vld [vmem:[#allocation2 + $0xb8] sm:$0xff] }
 0x4c2   :  { %v5218_v19 = vpop.f32.mrb[55].mxu1  ;;  %v5694_v12 = vpop.eup %5693 }
 0x4c3   :  { %v5696_v56 = vpop.eup %5695  ;;  %v834_v15 = vmul.f32 %v5694_v12, %v6301_v44  ;;  %v1254_v45 = vpop.permute.xlu0 %1253  ;;  %v1677_v19 = vsel %vm664_vm3, %v6441_v58, -inf }
 0x4c4   :  { %v833_v21 = vmul.f32 %v5696_v56, %v6291_v55  ;;  %v1259_v24 = vsel %vm266_vm2, %v1254_v45, 0 }
 0x4c5   :  { %v1252_v25 = vpop.permute.xlu1 %1251  ;;  %5162 = vmatmul.mubr.msk.bf16.vlgmr.msra.gmra.mrb[20].mxu0 %vm664_vm3, %v843_v18  ;;  %v5698_v16 = vpop.eup %5697 }
 0x4c6   :  { %5172 = vmatpush3.bf16.msra.mxu0 %v1038_v42  ;;  %5173 = vmatprep.mubr.msk.bf16.mxu0 %vm5921_vm1, %v7466_v10  ;;  %v845_v33 = vpack.c.bf16 %v834_v15, %v833_v21  ;;  %v5700_v20 = vpop.eup %5699  ;;  %v838_v44 = vmul.f32 %v5698_v16, %v6307_v63  ;;  %v1245_v42 = vld [vmem:[#allocation2 + $0xd0] sm:$0xff] }
 0x4c7   :  { %v1550_v34 = vpop.f32.mrb[56].mxu1  ;;  %5183 = vmatprep.subr.bf16.mxu0 %v7466_v10  ;;  %v837_v40 = vmul.f32 %v5700_v20, %v6299_v57  ;;  %v1356_v57 = vpop.permute.xlu0 %1355 }
 0x4c8   :  { %v5229_v53 = vpop.f32.mrb[57].mxu1  ;;  %v1361_v54 = vsel %vm266_vm2, %v1356_v57, 0  ;;  %v6443_v5 = vadd.f32 %v1550_v34, %v1245_v42  ;;  %v1236_v57 = vld [vmem:[#allocation2 + $0x88] sm:$0xff] }
 0x4c9   :  { %v6408_v36 = vpop.f32.mrb[58].mxu1  ;;  %v1354_v37 = vpop.permute.xlu1 %1353  ;;  %v847_v22 = vpack.c.bf16 %v838_v44, %v837_v40 }
 0x4ca   :  { %v5230_v39 = vpop.f32.mrb[59].mxu1  ;;  %v1689_v46 = vsel %vm664_vm3, %v6443_v5, -inf }
 0x4cb   :  { %v1458_v47 = vpop.permute.xlu0 %1457 }
 0x4cc   :  { %v1463_v27 = vsel %vm266_vm2, %v1458_v47, 0 }
 0x4cd   :  { %v1456_v1 = vpop.permute.xlu1 %1455  ;;  %5174 = vmatmul.mubr.msk.bf16.vlgmr.msra.gmra.mrb[24].mxu0 %vm664_vm3, %v845_v33 }
 0x4ce   :  { %5184 = vmatpush3.bf16.msra.mxu0 %v1132_v6  ;;  %2647 = vrot.lane.b32.xlu1 %v6037_v48, %s5928_s11  ;;  %v6448_v6 = vadd.f32 %v6400_v60, %v1242_v52 }
 0x4cf   :  { %v6414_v3 = vpop.f32.mrb[60].mxu1  ;;  %5185 = vmatprep.mubr.msk.bf16.mxu0 %vm5921_vm1, %v7466_v10  ;;  %5195 = vmatprep.subr.bf16.mxu0 %v7466_v10  ;;  %v1560_v61 = vpop.permute.xlu0 %1559 }
 0x4d0   :  { %v5241_v55 = vpop.f32.mrb[61].mxu1  ;;  %v1565_v9 = vsel %vm266_vm2, %v1560_v61, 0  ;;  %v1680_v18 = vsel %vm664_vm3, %v6448_v6, -inf }
 0x4d1   :  { %v6420_v8 = vpop.f32.mrb[62].mxu1  ;;  %v1558_v41 = vpop.permute.xlu1 %1557  ;;  %2700 = vrot.lane.b32.xlu0 %v6033_v31, %s5927_s10 }
 0x4d2   :  { %v5242_v4 = vpop.f32.mrb[63].mxu1 }
 0x4d5   :  { %v1891_v63 = vpop.permute.xlu1 %1890  ;;  %5186 = vmatmul.mubr.msk.bf16.vlgmr.msra.gmra.mrb[28].mxu0 %vm664_vm3, %v847_v22  ;;  %v1235_v22 = vld [vmem:[#allocation2 + $0x80] sm:$0xff] }
 0x4d6   :  { %5250 = vmatpush3.bf16.msra.mxu1 %v1891_v63  ;;  %5197 = vmatprep.mubr.msk.bf16.mxu0 %vm5921_vm1, %v7466_v10  ;;  %v1249_v63 = vld [vmem:[#allocation2 + $0xf0] sm:$0xff] }
 0x4d7   :  { %5196 = vmatpush3.bf16.xpose.msra.mxu0 %v1259_v24  ;;  %5261 = vmatprep.subr.bf16.mxu1 %v7466_v10  ;;  %v6489_v42 = vadd.f32 %v6414_v3, %v1249_v63 }
 0x4d8   :  { %5207 = vmatprep.subr.bf16.mxu0 %v7466_v10 }
 0x4d9   :  { %v1701_v3 = vsel %vm664_vm3, %v6489_v42, -inf }
 0x4de   :  { %5198 = vmatmul.mubr.msk.bf16.vlgmr.msra.gmra.mrb[32].mxu0 %vm266_vm2, %v1252_v25 }
 0x4df   :  { %5208 = vmatpush3.bf16.xpose.msra.mxu0 %v1361_v54  ;;  %5209 = vmatprep.mubr.msk.bf16.mxu0 %vm5921_vm1, %v7466_v10 }
 0x4e0   :  { %5219 = vmatprep.subr.bf16.mxu0 %v7466_v10 }
 0x4e6   :  { %5210 = vmatmul.mubr.msk.bf16.vlgmr.msra.gmra.mrb[36].mxu0 %vm266_vm2, %v1354_v37 }
 0x4e7   :  { %5220 = vmatpush3.bf16.xpose.msra.mxu0 %v1463_v27  ;;  %5221 = vmatprep.mubr.msk.bf16.mxu0 %vm5921_vm1, %v7466_v10  ;;  %v1246_v27 = vld [vmem:[#allocation2 + $0xd8] sm:$0xff] }
 0x4e8   :  { %5231 = vmatprep.subr.bf16.mxu0 %v7466_v10 }
 0x4ee   :  { %5222 = vmatmul.mubr.msk.bf16.vlgmr.msra.gmra.mrb[40].mxu0 %vm266_vm2, %v1456_v1 }
 0x4ef   :  { %5232 = vmatpush3.bf16.xpose.msra.mxu0 %v1565_v9  ;;  %5233 = vmatprep.mubr.msk.bf16.mxu0 %vm5921_vm1, %v7466_v10 }
 0x4f0   :  { %1678 = vmax.xlane.f32.xlu0 %v1677_v19  ;;  %5243 = vmatprep.subr.bf16.mxu0 %v7466_v10  ;;  %v6496_v19 = vadd.f32 %v6408_v36, %v1246_v27 }
 0x4f2   :  { %1690 = vmax.xlane.f32.xlu1 %v1689_v46  ;;  %v1692_v36 = vsel %vm664_vm3, %v6496_v19, -inf }
 0x4f4   :  { %1681 = vmax.xlane.f32.xlu0 %v1680_v18  ;;  %v1250_v18 = vld [vmem:[#allocation2 + $0xf8] sm:$0xff] }
 0x4f6   :  { %5234 = vmatmul.mubr.msk.bf16.vlgmr.msra.gmra.mrb[44].mxu0 %vm266_vm2, %v1558_v41 }
 0x4f7   :  { %5245 = vmatprep.mubr.msk.bf16.mxu0 %vm5921_vm1, %v7466_v10 }
 0x590   :  { %v6462_v60 = vpop.f32.mrb[16].mxu0 }
 0x591   :  { %v5151_v12 = vpop.f32.mrb[17].mxu0 }
 0x592   :  { %v6464_v25 = vpop.f32.mrb[18].mxu0  ;;  %v6500_v12 = vpop.permute.xlu0 %1984 }
 0x593   :  { %v5152_v15 = vpop.f32.mrb[19].mxu0 }
 0x598   :  { %v6468_v34 = vpop.f32.mrb[20].mxu0 }
 0x599   :  { %v5163_v53 = vpop.f32.mrb[21].mxu0 }
 0x59a   :  { %v6470_v21 = vpop.f32.mrb[22].mxu0  ;;  %v6505_v53 = vadd.f32 %v6420_v8, %v1250_v18 }
 0x59b   :  { %v5164_v39 = vpop.f32.mrb[23].mxu0 }
 0x5a0   :  { %v6474_v33 = vpop.f32.mrb[24].mxu0 }
 0x5a1   :  { %v5175_v16 = vpop.f32.mrb[25].mxu0 }
 0x5a2   :  { %v6476_v1 = vpop.f32.mrb[26].mxu0  ;;  %v6509_v16 = vpop.permute.xlu1 %2078 }
 0x5a3   :  { %v5176_v44 = vpop.f32.mrb[27].mxu0 }
 0x5a6   :  { %v6515_v63 = vpop.permute.xlu1 %2172 }
 0x5a8   :  { %v6480_v55 = vpop.f32.mrb[28].mxu0 }
 0x5a9   :  { %7478 = vst [vmem:[#allocation9_spill] sm:$0xff] %v6480_v55  ;;  %v5187_v40 = vpop.f32.mrb[29].mxu0 }
 0x5aa   :  { %v6482_v41 = vpop.f32.mrb[30].mxu0 }
 0x5ab   :  { %7479 = vst [vmem:[#allocation10_spill] sm:$0xff] %v6482_v41  ;;  %v5188_v45 = vpop.f32.mrb[31].mxu0 }
 0x5ac   :  { %v6511_v45 = vpop.permute.xlu0 %2496 }
 0x5b1   :  { %v1295_v24 = vpop.f32.mrb[32].mxu0 }
 0x5b2   :  { %v6486_v54 = vadd.f32 %v1295_v24, %v1235_v22  ;;  %v5199_v47 = vpop.f32.mrb[33].mxu0  ;;  %v1704_v22 = vsel %vm664_vm3, %v6505_v53, -inf }
 0x5b3   :  { %v1298_v43 = vpop.f32.mrb[34].mxu0 }
 0x5b4   :  { %v6491_v61 = vadd.f32 %v1298_v43, %v1236_v57  ;;  %v5200_v52 = vpop.f32.mrb[35].mxu0  ;;  %v1659_v9 = vsel %vm664_vm3, %v6486_v54, -inf  ;;  %v6519_v57 = vpop.permute.xlu0 %2547 }
 0x5b5   :  { %1660 = vmax.xlane.f32.xlu1 %v1659_v9  ;;  %v6523_v43 = vpop.permute.xlu1 %2494 }
 0x5b6   :  { %v1662_v46 = vsel %vm664_vm3, %v6491_v61, -inf }
 0x5b7   :  { %1663 = vmax.xlane.f32.xlu0 %v1662_v46 }
 0x5b8   :  { %v6525_v52 = vpop.permute.xlu0 %2598 }
 0x5b9   :  { %1702 = vmax.xlane.f32.xlu1 %v1701_v3  ;;  %v1397_v15 = vpop.f32.mrb[36].mxu0 }
 0x5ba   :  { %v5211_v39 = vpop.f32.mrb[37].mxu0 }
 0x5bb   :  { %1693 = vmax.xlane.f32.xlu0 %v1692_v36  ;;  %v1400_v44 = vpop.f32.mrb[38].mxu0  ;;  %v6533_v39 = vpop.permute.xlu1 %2545 }
 0x5bc   :  { %v5212_v40 = vpop.f32.mrb[39].mxu0  ;;  %v6535_v36 = vpop.permute.xlu0 %2649 }
 0x5bf   :  { %1705 = vmax.xlane.f32.xlu0 %v1704_v22  ;;  %v6537_v40 = vpop.permute.xlu1 %2596 }
 0x5c0   :  { %v1667_v22 = vpop.xlane.xlu0 %1666 }
 0x5c1   :  { %v6517_v24 = vpop.f32.mrb[40].mxu0  ;;  %v1709_v35 = vsub.f32 %v6382_v38, %v1667_v22  ;;  %v6550_v22 = vadd.f32 %v1397_v15, %v1239_v32 }
 0x5c2   :  { %v5223_v8 = vpop.f32.mrb[41].mxu0 }
 0x5c3   :  { %v6521_v47 = vpop.f32.mrb[42].mxu0  ;;  %v1670_v8 = vpop.xlane.xlu1 %1669  ;;  %v1727_v23 = vmul.f32 1.442695, %v1709_v35 }
 0x5c4   :  { %v5224_v27 = vpop.f32.mrb[43].mxu0  ;;  %v1710_v59 = vsub.f32 %v6385_v17, %v1670_v8  ;;  %v1671_v17 = vsel %vm664_vm3, %v6550_v22, -inf }
 0x5c5   :  { %v6541_v27 = vpop.permute.xlu0 %2700  ;;  %5701 = vpow2.f32 %v1727_v23 }
 0x5c6   :  { %v1729_v10 = vmul.f32 1.442695, %v1710_v59 }
 0x5c7   :  { %v6544_v4 = vpop.permute.xlu1 %2647 }
 0x5c9   :  { %v6527_v9 = vpop.f32.mrb[44].mxu0 }
 0x5ca   :  { %2751 = vrot.lane.b32.xlu1 %v6029_v29, %s5927_s10  ;;  %v5235_v46 = vpop.f32.mrb[45].mxu0 }
 0x5cb   :  { %v6531_v18 = vpop.f32.mrb[46].mxu0  ;;  %v1679_v46 = vpop.xlane.xlu0 %1678 }
 0x5cc   :  { %v5236_v3 = vpop.f32.mrb[47].mxu0  ;;  %v1691_v20 = vpop.xlane.xlu1 %1690 }
 0x5cd   :  { %v1713_v3 = vsub.f32 %v6441_v58, %v1679_v46  ;;  %v1717_v56 = vsub.f32 %v6443_v5, %v1691_v20  ;;  %v1240_v58 = vld [vmem:[#allocation2 + $0xa8] sm:$0xff] }
 0x5ce   :  { %v6556_v23 = vadd.f32 %v1400_v44, %v1240_v58 }
 0x5cf   :  { %v1682_v37 = vpop.xlane.xlu0 %1681  ;;  %v1735_v2 = vmul.f32 1.442695, %v1713_v3  ;;  %v1743_v38 = vmul.f32 1.442695, %v1717_v56  ;;  %v6554_v8 = vpop.eup %5701 }
 0x5d0   :  { %v1714_v26 = vsub.f32 %v6448_v6, %v1682_v37  ;;  %v1761_v59 = vsel %vm664_vm3, %v6554_v8, 0.0 }
 0x5d1   :  { %5703 = vpow2.f32 %v1735_v2 }
 0x5d2   :  { %5705 = vpow2.f32 %v1729_v10  ;;  %v1737_v35 = vmul.f32 1.442695, %v1714_v26  ;;  %v1674_v10 = vsel %vm664_vm3, %v6556_v23, -inf }
 0x5d3   :  { %5707 = vpow2.f32 %v1743_v38 }
 0x5d4   :  { %5709 = vpow2.f32 %v1737_v35 }
 0x5d5   :  { %2698 = vrot.lane.b32.xlu0 %v6033_v31, %s5928_s11 }
 0x5db   :  { %v6560_v2 = vpop.eup %5703 }
 0x5dc   :  { %v5706_v26 = vpop.eup %5705  ;;  %v1773_v32 = vsel %vm664_vm3, %v6560_v2, 0.0 }
 0x5dd   :  { %v6566_v5 = vpop.eup %5707  ;;  %v1764_v6 = vsel %vm664_vm3, %v5706_v26, 0.0 }
 0x5de   :  { %v5710_v56 = vpop.eup %5709  ;;  %v1785_v37 = vsel %vm664_vm3, %v6566_v5, 0.0 }
 0x5df   :  { %v1776_v20 = vsel %vm664_vm3, %v5710_v56, 0.0 }
 0x5ee   :  { %1672 = vmax.xlane.f32.xlu1 %v1671_v17 }
 0x5f2   :  { %1762 = vadd.xlane.f32.xlu1 %v1761_v59 }
 0x5f4   :  { %1675 = vmax.xlane.f32.xlu0 %v1674_v10 }
 0x5f6   :  { %1774 = vadd.xlane.f32.xlu1 %v1773_v32 }
 0x5f8   :  { %1765 = vadd.xlane.f32.xlu0 %v1764_v6 }
 0x5fa   :  { %1786 = vadd.xlane.f32.xlu1 %v1785_v37 }
 0x5fc   :  { %1777 = vadd.xlane.f32.xlu0 %v1776_v20 }
 0x642   :  { %v6572_v15 = vpop.xlane.xlu1 %1660 }
 0x644   :  { %v6574_v44 = vpop.xlane.xlu0 %1663 }
 0x646   :  { %v1703_v46 = vpop.xlane.xlu1 %1702 }
 0x647   :  { %v1721_v3 = vsub.f32 %v6489_v42, %v1703_v46 }
 0x648   :  { %v1694_v38 = vpop.xlane.xlu0 %1693 }
 0x649   :  { %v1751_v35 = vmul.f32 1.442695, %v1721_v3  ;;  %v1718_v58 = vsub.f32 %v6496_v19, %v1694_v38 }
 0x64b   :  { %5711 = vpow2.f32 %v1751_v35  ;;  %v1745_v17 = vmul.f32 1.442695, %v1718_v58 }
 0x64c   :  { %v1706_v59 = vpop.xlane.xlu0 %1705 }
 0x64d   :  { %5713 = vpow2.f32 %v1745_v17  ;;  %v1722_v10 = vsub.f32 %v6505_v53, %v1706_v59  ;;  %v6595_v53 = vpop.permute.xlu1 %2751  ;;  %v1243_v17 = vld [vmem:[#allocation2 + $0xc0] sm:$0xff] }
 0x64f   :  { %v1753_v32 = vmul.f32 1.442695, %v1722_v10  ;;  %v6600_v10 = vadd.f32 %v6517_v24, %v1243_v17 }
 0x650   :  { %v6597_v38 = vpop.permute.xlu0 %2698 }
 0x651   :  { %5715 = vpow2.f32 %v1753_v32 }
 0x655   :  { %v6579_v6 = vpop.eup %5711 }
 0x656   :  { %v1797_v37 = vsel %vm664_vm3, %v6579_v6, 0.0 }
 0x657   :  { %v6583_v20 = vpop.eup %5713  ;;  %1798 = vadd.xlane.f32.xlu1 %v1797_v37  ;;  %v1244_v37 = vld [vmem:[#allocation2 + $0xc8] sm:$0xff] }
 0x658   :  { %v1788_v42 = vsel %vm664_vm3, %v6583_v20, 0.0  ;;  %v6605_v55 = vadd.f32 %v6521_v47, %v1244_v37 }
 0x659   :  { %1789 = vadd.xlane.f32.xlu0 %v1788_v42 }
 0x65b   :  { %v6587_v19 = vpop.eup %5715 }
 0x65c   :  { %v1800_v46 = vsel %vm664_vm3, %v6587_v19, 0.0 }
 0x65d   :  { %1801 = vadd.xlane.f32.xlu0 %v1800_v46  ;;  %v1683_v46 = vsel %vm664_vm3, %v6600_v10, -inf }
 0x668   :  { %2802 = vrot.lane.b32.xlu1 %v6043_v51, %s5927_s10 }
 0x673   :  { %2749 = vrot.lane.b32.xlu0 %v6029_v29, %s5928_s11 }
 0x67b   :  { %v1673_v3 = vpop.xlane.xlu1 %1672 }
 0x67f   :  { %v1763_v58 = vpop.xlane.xlu1 %1762 }
 0x680   :  { %5717 = vrcp.f32 %v1763_v58  ;;  %v1686_v58 = vsel %vm664_vm3, %v6605_v55, -inf }
 0x681   :  { %v1676_v35 = vpop.xlane.xlu0 %1675 }
 0x683   :  { %v1775_v42 = vpop.xlane.xlu1 %1774 }
 0x685   :  { %v1766_v59 = vpop.xlane.xlu0 %1765 }
 0x686   :  { %5719 = vrcp.f32 %v1766_v59 }
 0x689   :  { %v1778_v32 = vpop.xlane.xlu0 %1777 }
 0x68a   :  { %5721 = vrcp.f32 %v1778_v32  ;;  %v5718_v41 = vpop.eup %5717 }
 0x68b   :  { %5723 = vrcp.f32 %v1775_v42  ;;  %v1821_v24 = vmul.f32 %v5718_v41, %v6554_v8  ;;  %v1708_v41 = vsub.f32 %v6491_v61, %v6574_v44  ;;  %v1711_v8 = vsub.f32 %v6550_v22, %v1673_v3 }
 0x68c   :  { %1684 = vmax.xlane.f32.xlu1 %v1683_v46  ;;  %v7480_v46 = vmov 0.0  }
 0x690   :  { %v5720_v13 = vpop.eup %5719 }
 0x691   :  { %v1822_v17 = vmul.f32 %v5720_v13, %v5706_v26  ;;  %v1707_v13 = vsub.f32 %v6486_v54, %v6572_v15  ;;  %v1712_v26 = vsub.f32 %v6556_v23, %v1676_v35 }
 0x692   :  { %1687 = vmax.xlane.f32.xlu0 %v1686_v58  ;;  %v1248_v58 = vld [vmem:[#allocation2 + $0xe8] sm:$0xff] }
 0x693   :  { %v1836_v59 = vpack.c.bf16 %v1822_v17, %v1821_v24  ;;  %v1733_v24 = vmul.f32 1.442695, %v1712_v26  ;;  %v6639_v61 = vadd.f32 %v6531_v18, %v1248_v58 }
 0x694   :  { %v5722_v14 = vpop.eup %5721 }
 0x695   :  { %5252 = vmatmul.mubr.msk.bf16.vlgmr.msra.gmra.mrb[64].mxu1 %vm664_vm3, %v1836_v59  ;;  %v5724_v32 = vpop.eup %5723  ;;  %v1826_v47 = vmul.f32 %v5722_v14, %v5710_v56  ;;  %v1723_v14 = vmul.f32 1.442695, %v1707_v13  ;;  %v1787_v59 = vpop.xlane.xlu1 %1786 }
 0x696   :  { %5262 = vmatpush3.bf16.msra.mxu1 %v6500_v12  ;;  %5263 = vmatprep.mubr.msk.bf16.mxu1 %vm5921_vm1, %v7480_v46  ;;  %v1825_v37 = vmul.f32 %v5724_v32, %v6560_v2  ;;  %v1725_v12 = vmul.f32 1.442695, %v1708_v41  ;;  %v1731_v2 = vmul.f32 1.442695, %v1711_v8 }
 0x697   :  { %5273 = vmatprep.subr.bf16.mxu1 %v7480_v46  ;;  %5725 = vpow2.f32 %v1723_v14 }
 0x698   :  { %v1838_v42 = vpack.c.bf16 %v1826_v47, %v1825_v37  ;;  %5727 = vpow2.f32 %v1725_v12 }
 0x699   :  { %5729 = vpow2.f32 %v1731_v2 }
 0x69a   :  { %5731 = vpow2.f32 %v1733_v24 }
 0x69b   :  { %5733 = vrcp.f32 %v1787_v59 }
 0x69d   :  { %2853 = vrot.lane.b32.xlu1 %v6039_v49, %s5927_s10  ;;  %5264 = vmatmul.mubr.msk.bf16.vlgmr.msra.gmra.mrb[68].mxu1 %vm664_vm3, %v1838_v42 }
 0x69e   :  { %5274 = vmatpush3.bf16.msra.mxu1 %v6509_v16  ;;  %5275 = vmatprep.mubr.msk.bf16.mxu1 %vm5921_vm1, %v7480_v46  ;;  %v1247_v16 = vld [vmem:[#allocation2 + $0xe0] sm:$0xff] }
 0x69f   :  { %5285 = vmatprep.subr.bf16.mxu1 %v7480_v46  ;;  %v6632_v56 = vadd.f32 %v6527_v9, %v1247_v16  ;;  %v1698_v9 = vsel %vm664_vm3, %v6639_v61, -inf }
 0x6a1   :  { %v1695_v54 = vsel %vm664_vm3, %v6632_v56, -inf  ;;  %v6636_v15 = vpop.eup %5725 }
 0x6a2   :  { %v1755_v22 = vsel %vm664_vm3, %v6636_v15, 0.0  ;;  %v6643_v23 = vpop.eup %5727 }
 0x6a3   :  { %v1758_v44 = vsel %vm664_vm3, %v6643_v23, 0.0  ;;  %v6649_v3 = vpop.eup %5729 }
 0x6a4   :  { %v1767_v18 = vsel %vm664_vm3, %v6649_v3, 0.0  ;;  %v6653_v35 = vpop.eup %5731 }
 0x6a5   :  { %v1770_v17 = vsel %vm664_vm3, %v6653_v35, 0.0  ;;  %v5734_v42 = vpop.eup %5733 }
 0x6a6   :  { %v1829_v14 = vmul.f32 %v5734_v42, %v6566_v5  ;;  %v2502_v5 = vsel %vm266_vm2, %v6511_v45, 0  ;;  %v2604_v45 = vsel %vm266_vm2, %v6525_v52, 0 }
 0x6a8   :  { %2800 = vrot.lane.b32.xlu0 %v6043_v51, %s5928_s11 }
 0x6c1   :  { %1696 = vmax.xlane.f32.xlu1 %v1695_v54 }
 0x6c5   :  { %1756 = vadd.xlane.f32.xlu1 %v1755_v22 }
 0x6c7   :  { %1699 = vmax.xlane.f32.xlu0 %v1698_v9 }
 0x6c9   :  { %1759 = vadd.xlane.f32.xlu1 %v1758_v44 }
 0x6cd   :  { %1768 = vadd.xlane.f32.xlu1 %v1767_v18 }
 0x6d1   :  { %1771 = vadd.xlane.f32.xlu1 %v1770_v17 }
 0x6dd   :  { %2851 = vrot.lane.b32.xlu0 %v6039_v49, %s5928_s11 }
 0x6e4   :  { %v1799_v47 = vpop.xlane.xlu1 %1798 }
 0x6e6   :  { %v1790_v32 = vpop.xlane.xlu0 %1789 }
 0x6e7   :  { %5735 = vrcp.f32 %v1790_v32 }
 0x6ea   :  { %v1802_v37 = vpop.xlane.xlu0 %1801 }
 0x6eb   :  { %5737 = vrcp.f32 %v1802_v37 }
 0x6ec   :  { %5739 = vrcp.f32 %v1799_v47 }
 0x6f1   :  { %v5736_v13 = vpop.eup %5735 }
 0x6f2   :  { %v1830_v41 = vmul.f32 %v5736_v13, %v6583_v20 }
 0x6f4   :  { %v1840_v12 = vpack.c.bf16 %v1830_v41, %v1829_v14 }
 0x6f5   :  { %v5738_v8 = vpop.eup %5737 }
 0x6f6   :  { %5276 = vmatmul.mubr.msk.bf16.vlgmr.msra.gmra.mrb[72].mxu1 %vm664_vm3, %v1840_v12  ;;  %v5740_v16 = vpop.eup %5739  ;;  %v1834_v2 = vmul.f32 %v5738_v8, %v6587_v19  ;;  %v2706_v19 = vsel %vm266_vm2, %v6541_v27, 0 }
 0x6f7   :  { %5286 = vmatpush3.bf16.msra.mxu1 %v6515_v63  ;;  %5287 = vmatprep.mubr.msk.bf16.mxu1 %vm5921_vm1, %v7480_v46  ;;  %v1833_v26 = vmul.f32 %v5740_v16, %v6579_v6  ;;  %v2553_v63 = vsel %vm266_vm2, %v6519_v57, 0  ;;  %v2803_v57 = vpop.permute.xlu1 %2802  ;;  %v2750_v6 = vpop.permute.xlu0 %2749 }
 0x6f8   :  { %5327 = vmatprep.subr.bf16.mxu1 %v7480_v46  ;;  %v2808_v54 = vsel %vm266_vm2, %v2803_v57, 0 }
 0x6f9   :  { %v1842_v58 = vpack.c.bf16 %v1834_v2, %v1833_v26 }
 0x6fe   :  { %5288 = vmatmul.mubr.msk.bf16.vlgmr.msra.gmra.mrb[76].mxu1 %vm664_vm3, %v1842_v58 }
 0x6ff   :  { %5329 = vmatprep.mubr.msk.bf16.mxu1 %vm5921_vm1, %v7480_v46 }
 0x700   :  { %5328 = vmatpush3.bf16.xpose.msra.mxu1 %v2502_v5 }
 0x701   :  { %5333 = vmatprep.subr.bf16.mxu1 %v7480_v46 }
 0x707   :  { %5330 = vmatmul.mubr.msk.bf16.vlgmr.msra.gmra.mrb[80].mxu1 %vm266_vm2, %v6523_v43  ;;  %v2655_v43 = vsel %vm266_vm2, %v6535_v36, 0 }
 0x708   :  { %5334 = vmatpush3.bf16.xpose.msra.mxu1 %v2553_v63  ;;  %5335 = vmatprep.mubr.msk.bf16.mxu1 %vm5921_vm1, %v7480_v46 }
 0x709   :  { %5339 = vmatprep.subr.bf16.mxu1 %v7480_v46 }
 0x70f   :  { %5336 = vmatmul.mubr.msk.bf16.vlgmr.msra.gmra.mrb[84].mxu1 %vm266_vm2, %v6533_v39 }
 0x710   :  { %5340 = vmatpush3.bf16.xpose.msra.mxu1 %v2604_v45  ;;  %5341 = vmatprep.mubr.msk.bf16.mxu1 %vm5921_vm1, %v7480_v46 }
 0x711   :  { %5345 = vmatprep.subr.bf16.mxu1 %v7480_v46 }
 0x717   :  { %5342 = vmatmul.mubr.msk.bf16.vlgmr.msra.gmra.mrb[88].mxu1 %vm266_vm2, %v6537_v40 }
 0x718   :  { %5346 = vmatpush3.bf16.xpose.msra.mxu1 %v2655_v43  ;;  %5347 = vmatprep.mubr.msk.bf16.mxu1 %vm5921_vm1, %v7480_v46 }
 0x719   :  { %v1685_v52 = vpop.xlane.xlu1 %1684  ;;  %5351 = vmatprep.subr.bf16.mxu1 %v7480_v46 }
 0x71a   :  { %v1715_v39 = vsub.f32 %v6600_v10, %v1685_v52  ;;  %v2757_v10 = vsel %vm266_vm2, %v6595_v53, 0 }
 0x71c   :  { %v1739_v20 = vmul.f32 1.442695, %v1715_v39 }
 0x71e   :  { %5741 = vpow2.f32 %v1739_v20 }
 0x71f   :  { %5348 = vmatmul.mubr.msk.bf16.vlgmr.msra.gmra.mrb[92].mxu1 %vm266_vm2, %v6544_v4  ;;  %v1688_v36 = vpop.xlane.xlu0 %1687 }
 0x720   :  { %5352 = vmatpush3.bf16.xpose.msra.mxu1 %v2706_v19  ;;  %v1716_v40 = vsub.f32 %v6605_v55, %v1688_v36  ;;  %5353 = vmatprep.mubr.msk.bf16.mxu1 %vm5921_vm1, %v7480_v46 }
 0x721   :  { %5357 = vmatprep.subr.bf16.mxu1 %v7480_v46 }
 0x722   :  { %v1741_v24 = vmul.f32 1.442695, %v1716_v40 }
 0x723   :  { %v2801_v22 = vpop.permute.xlu0 %2800 }
 0x724   :  { %5743 = vpow2.f32 %v1741_v24 }
 0x727   :  { %5354 = vmatmul.mubr.msk.bf16.vlgmr.msra.gmra.mrb[96].mxu1 %vm266_vm2, %v6597_v38  ;;  %v2854_v38 = vpop.permute.xlu1 %2853 }
 0x728   :  { %v6708_v27 = vpop.eup %5741  ;;  %5358 = vmatpush3.bf16.xpose.msra.mxu1 %v2757_v10  ;;  %5359 = vmatprep.mubr.msk.bf16.mxu1 %vm5921_vm1, %v7480_v46  ;;  %v2859_v9 = vsel %vm266_vm2, %v2854_v38, 0  ;;  %v2478_v10 = vld [vmem:[#allocation2 + $0x100] sm:$0xff] }
 0x729   :  { %v1779_v55 = vsel %vm664_vm3, %v6708_v27, 0.0  ;;  %5363 = vmatprep.subr.bf16.mxu1 %v7480_v46 }
 0x72a   :  { %1780 = vadd.xlane.f32.xlu1 %v1779_v55 }
 0x72e   :  { %v6715_v4 = vpop.eup %5743 }
 0x72f   :  { %5360 = vmatmul.mubr.msk.bf16.vlgmr.msra.gmra.mrb[100].mxu1 %vm266_vm2, %v2750_v6  ;;  %v1782_v53 = vsel %vm664_vm3, %v6715_v4, 0.0 }
 0x730   :  { %5364 = vmatpush3.bf16.xpose.msra.mxu1 %v2808_v54  ;;  %1783 = vadd.xlane.f32.xlu1 %v1782_v53  ;;  %v2479_v53 = vld [vmem:[#allocation2 + $0x108] sm:$0xff] }
 0x731   :  { %5365 = vmatprep.mubr.msk.bf16.mxu1 %vm5921_vm1, %v7480_v46  ;;  %5369 = vmatprep.subr.bf16.mxu1 %v7480_v46 }
 0x737   :  { %5366 = vmatmul.mubr.msk.bf16.vlgmr.msra.gmra.mrb[104].mxu1 %vm266_vm2, %v2801_v22 }
 0x738   :  { %5370 = vmatpush3.bf16.xpose.msra.mxu1 %v2859_v9  ;;  %5371 = vmatprep.mubr.msk.bf16.mxu1 %vm5921_vm1, %v7480_v46 }
 0x739   :  { %5381 = vmatprep.subr.bf16.mxu1 %v7480_v46 }
 0x74e   :  { %v1697_v44 = vpop.xlane.xlu1 %1696 }
 0x74f   :  { %v1719_v18 = vsub.f32 %v6632_v56, %v1697_v44 }
 0x751   :  { %v1747_v17 = vmul.f32 1.442695, %v1719_v18 }
 0x752   :  { %v1757_v36 = vpop.xlane.xlu1 %1756 }
 0x753   :  { %5745 = vpow2.f32 %v1747_v17 }
 0x754   :  { %v1700_v59 = vpop.xlane.xlu0 %1699 }
 0x755   :  { %v1720_v32 = vsub.f32 %v6639_v61, %v1700_v59 }
 0x756   :  { %v1760_v55 = vpop.xlane.xlu1 %1759 }
 0x757   :  { %v1749_v47 = vmul.f32 1.442695, %v1720_v32 }
 0x758   :  { %v2852_v37 = vpop.permute.xlu0 %2851 }
 0x759   :  { %5747 = vpow2.f32 %v1749_v47  ;;  %5372 = vmatmul.mubr.msk.bf16.vlgmr.msra.gmra.mrb[108].mxu1 %vm266_vm2, %v2852_v37  ;;  %v2480_v47 = vld [vmem:[#allocation2 + $0x110] sm:$0xff] }
 0x75a   :  { %5383 = vmatprep.mubr.msk.bf16.mxu1 %vm5921_vm1, %v7480_v46  ;;  %v1769_v32 = vpop.xlane.xlu1 %1768  ;;  %5749 = vrcp.f32 %v1760_v55 }
 0x75b   :  { %5751 = vrcp.f32 %v1757_v36  ;;  %v2484_v36 = vld [vmem:[#allocation2 + $0x130] sm:$0xff] }
 0x75d   :  { %v6734_v42 = vpop.eup %5745 }
 0x75e   :  { %v1791_v13 = vsel %vm664_vm3, %v6734_v42, 0.0 }
 0x75f   :  { %1792 = vadd.xlane.f32.xlu0 %v1791_v13  ;;  %v2481_v13 = vld [vmem:[#allocation2 + $0x118] sm:$0xff] }
 0x763   :  { %v6738_v56 = vpop.eup %5747 }
 0x764   :  { %v1794_v14 = vsel %vm664_vm3, %v6738_v56, 0.0 }
 0x765   :  { %1795 = vadd.xlane.f32.xlu1 %v1794_v14 }
 0x768   :  { %v6742_v61 = vpop.f32.mrb[64].mxu1 }
 0x769   :  { %v5253_v41 = vpop.f32.mrb[65].mxu1 }
 0x76a   :  { %v6744_v12 = vpop.f32.mrb[66].mxu1 }
 0x76b   :  { %v2220_v8 = vpack.c.bf16 %v6744_v12, %v6742_v61  ;;  %v5254_v16 = vpop.f32.mrb[67].mxu1 }
 0x770   :  { %v6748_v2 = vpop.f32.mrb[68].mxu1 }
 0x771   :  { %v5265_v26 = vpop.f32.mrb[69].mxu1 }
 0x772   :  { %v6750_v58 = vpop.f32.mrb[70].mxu1 }
 0x773   :  { %v2222_v5 = vpack.c.bf16 %v6750_v58, %v6748_v2  ;;  %v5266_v63 = vpop.f32.mrb[71].mxu1 }
 0x775   :  { %2125 = vrot.lane.b32.xlu0 %v6043_v51, %s5926_s9 }
 0x776   :  { %1843 = vrot.lane.b32.xlu1 %v6031_v30, %s5926_s9 }
 0x77a   :  { %1937 = vrot.lane.b32.xlu1 %v6041_v50, %s5926_s9 }
 0x77e   :  { %2031 = vrot.lane.b32.xlu1 %v6033_v31, %s5926_s9 }
 0x7c9   :  { %v6762_v45 = vpop.f32.mrb[72].mxu1 }
 0x7ca   :  { %v5277_v57 = vpop.f32.mrb[73].mxu1 }
 0x7cb   :  { %v6764_v43 = vpop.f32.mrb[74].mxu1 }
 0x7cc   :  { %v2224_v52 = vpack.c.bf16 %v6764_v43, %v6762_v45  ;;  %v5278_v39 = vpop.f32.mrb[75].mxu1  ;;  %v7481_v43 = vpack.c.bf16 %v6464_v25, %v6462_v60  ;;  %v7489_v25 = vld [vmem:[#allocation10_spill] sm:$0xff] }
 0x7cd   :  { %v1772_v39 = vpop.xlane.xlu1 %1771 }
 0x7ce   :  { %5753 = vrcp.f32 %v1772_v39 }
 0x7cf   :  { %5755 = vrcp.f32 %v1769_v32 }
 0x7d1   :  { %v6768_v6 = vpop.f32.mrb[76].mxu1 }
 0x7d2   :  { %v5289_v20 = vpop.f32.mrb[77].mxu1 }
 0x7d3   :  { %v6770_v19 = vpop.f32.mrb[78].mxu1  ;;  %v2482_v20 = vld [vmem:[#allocation2 + $0x120] sm:$0xff] }
 0x7d4   :  { %v2226_v40 = vpack.c.bf16 %v6770_v19, %v6768_v6  ;;  %v5290_v24 = vpop.f32.mrb[79].mxu1  ;;  %v7483_v6 = vpack.c.bf16 %v6470_v21, %v6468_v34  ;;  %v7490_v34 = vld [vmem:[#allocation9_spill] sm:$0xff] }
 0x7d5   :  { %v7491_v21 = vpack.c.bf16 %v7489_v25, %v7490_v34 }
 0x7da   :  { %v2538_v54 = vpop.f32.mrb[80].mxu1 }
 0x7db   :  { %v6774_v38 = vadd.f32 %v2538_v54, %v2478_v10  ;;  %v5331_v22 = vpop.f32.mrb[81].mxu1  ;;  %v1781_v10 = vpop.xlane.xlu1 %1780 }
 0x7dc   :  { %v2541_v9 = vpop.f32.mrb[82].mxu1 }
 0x7dd   :  { %v6776_v44 = vadd.f32 %v2541_v9, %v2479_v53  ;;  %v5332_v18 = vpop.f32.mrb[83].mxu1  ;;  %v2902_v17 = vsel %vm664_vm3, %v6774_v38, -inf  ;;  %v2483_v53 = vld [vmem:[#allocation2 + $0x128] sm:$0xff] }
 0x7de   :  { %2903 = vmax.xlane.f32.xlu1 %v2902_v17 }
 0x7df   :  { %v2905_v59 = vsel %vm664_vm3, %v6776_v44, -inf  ;;  %v1784_v55 = vpop.xlane.xlu1 %1783 }
 0x7e0   :  { %2906 = vmax.xlane.f32.xlu0 %v2905_v59  ;;  %5757 = vrcp.f32 %v1784_v55 }
 0x7e1   :  { %5759 = vrcp.f32 %v1781_v10 }
 0x7e2   :  { %v2589_v37 = vpop.f32.mrb[84].mxu1 }
 0x7e3   :  { %v6782_v14 = vadd.f32 %v2589_v37, %v2480_v47  ;;  %v5337_v41 = vpop.f32.mrb[85].mxu1  ;;  %v5750_v37 = vpop.eup %5749 }
 0x7e4   :  { %v2592_v16 = vpop.f32.mrb[86].mxu1 }
 0x7e5   :  { %v6784_v26 = vadd.f32 %v2592_v16, %v2481_v13  ;;  %v5338_v63 = vpop.f32.mrb[87].mxu1  ;;  %v2908_v57 = vsel %vm664_vm3, %v6782_v14, -inf }
 0x7e6   :  { %2909 = vmax.xlane.f32.xlu1 %v2908_v57  ;;  %v2485_v63 = vld [vmem:[#allocation2 + $0x138] sm:$0xff]  ;;  %v5752_v57 = vpop.eup %5751 }
 0x7e7   :  { %v2911_v24 = vsel %vm664_vm3, %v6784_v26, -inf }
 0x7ea   :  { %v2640_v54 = vpop.f32.mrb[88].mxu1  ;;  %2912 = vmax.xlane.f32.xlu1 %v2911_v24 }
 0x7eb   :  { %v6790_v22 = vadd.f32 %v2640_v54, %v2482_v20  ;;  %v5343_v9 = vpop.f32.mrb[89].mxu1  ;;  %v1820_v54 = vmul.f32 %v5750_v37, %v6643_v23  ;;  %v5754_v23 = vpop.eup %5753 }
 0x7ec   :  { %v2643_v18 = vpop.f32.mrb[90].mxu1 }
 0x7ed   :  { %v6792_v17 = vadd.f32 %v2643_v18, %v2483_v53  ;;  %v5344_v59 = vpop.f32.mrb[91].mxu1  ;;  %v2914_v47 = vsel %vm664_vm3, %v6790_v22, -inf  ;;  %v1819_v18 = vmul.f32 %v5752_v57, %v6636_v15  ;;  %v5756_v15 = vpop.eup %5755 }
 0x7ee   :  { %2915 = vmax.xlane.f32.xlu1 %v2914_v47 }
 0x7ef   :  { %v2917_v13 = vsel %vm664_vm3, %v6792_v17, -inf }
 0x7f2   :  { %v2691_v41 = vpop.f32.mrb[92].mxu1  ;;  %2918 = vmax.xlane.f32.xlu1 %v2917_v13  ;;  %v1796_v16 = vpop.xlane.xlu1 %1795  ;;  %v1835_v13 = vpack.c.bf16 %v1820_v54, %v1819_v18 }
 0x7f3   :  { %v6798_v20 = vadd.f32 %v2691_v41, %v2484_v36  ;;  %v5349_v24 = vpop.f32.mrb[93].mxu1  ;;  %v2486_v36 = vld [vmem:[#allocation2 + $0x140] sm:$0xff]  ;;  %v1793_v18 = vpop.xlane.xlu0 %1792  ;;  %5761 = vrcp.f32 %v1796_v16 }
 0x7f4   :  { %v2694_v53 = vpop.f32.mrb[94].mxu1  ;;  %v1824_v24 = vmul.f32 %v5754_v23, %v6653_v35  ;;  %5763 = vrcp.f32 %v1793_v18 }
 0x7f5   :  { %v6801_v9 = vadd.f32 %v2694_v53, %v2485_v63  ;;  %v5350_v39 = vpop.f32.mrb[95].mxu1  ;;  %v2920_v32 = vsel %vm664_vm3, %v6798_v20, -inf  ;;  %v2487_v63 = vld [vmem:[#allocation2 + $0x148] sm:$0xff] }
 0x7f6   :  { %2921 = vmax.xlane.f32.xlu0 %v2920_v32  ;;  %v1844_v59 = vpop.permute.xlu1 %1843  ;;  %v1823_v32 = vmul.f32 %v5756_v15, %v6649_v3 }
 0x7f7   :  { %v2923_v47 = vsel %vm664_vm3, %v6801_v9, -inf  ;;  %5244 = vmatpush3.bf16.msra.mxu0 %v1844_v59 }
 0x7f8   :  { %2924 = vmax.xlane.f32.xlu1 %v2923_v47  ;;  %5255 = vmatprep.subr.bf16.mxu0 %v7480_v46  ;;  %v2488_v47 = vld [vmem:[#allocation2 + $0x150] sm:$0xff]  ;;  %v1837_v35 = vpack.c.bf16 %v1824_v24, %v1823_v32  ;;  %v2490_v32 = vld [vmem:[#allocation2 + $0x160] sm:$0xff] }
 0x7fa   :  { %v2742_v37 = vpop.f32.mrb[96].mxu1  ;;  %5246 = vmatmul.mubr.msk.bf16.vlgmr.msra.gmra.mrb[48].mxu0 %vm664_vm3, %v1835_v13  ;;  %v1938_v41 = vpop.permute.xlu1 %1937 }
 0x7fb   :  { %v6810_v57 = vadd.f32 %v2742_v37, %v2486_v36  ;;  %v5355_v55 = vpop.f32.mrb[97].mxu1  ;;  %5256 = vmatpush3.bf16.msra.mxu0 %v1938_v41  ;;  %5257 = vmatprep.mubr.msk.bf16.mxu0 %vm5921_vm1, %v7480_v46  ;;  %v5758_v36 = vpop.eup %5757  ;;  %v2489_v37 = vld [vmem:[#allocation2 + $0x158] sm:$0xff] }
 0x7fc   :  { %v2745_v54 = vpop.f32.mrb[98].mxu1  ;;  %5267 = vmatprep.subr.bf16.mxu0 %v7480_v46  ;;  %v5760_v41 = vpop.eup %5759  ;;  %v1828_v16 = vmul.f32 %v5758_v36, %v6715_v4 }
 0x7fd   :  { %v6816_v53 = vadd.f32 %v2745_v54, %v2487_v63  ;;  %v5356_v10 = vpop.f32.mrb[99].mxu1  ;;  %v2926_v39 = vsel %vm664_vm3, %v6810_v57, -inf  ;;  %v2126_v4 = vpop.permute.xlu0 %2125 }
 0x7fe   :  { %2927 = vmax.xlane.f32.xlu0 %v2926_v39  ;;  %v2032_v13 = vpop.permute.xlu1 %2031  ;;  %v1827_v10 = vmul.f32 %v5760_v41, %v6708_v27 }
 0x7ff   :  { %v2929_v59 = vsel %vm664_vm3, %v6816_v53, -inf }
 0x800   :  { %2930 = vmax.xlane.f32.xlu1 %v2929_v59  ;;  %v1839_v18 = vpack.c.bf16 %v1828_v16, %v1827_v10  ;;  %v5762_v59 = vpop.eup %5761 }
 0x801   :  { %v5764_v36 = vpop.eup %5763  ;;  %v1832_v27 = vmul.f32 %v5762_v59, %v6738_v56  ;;  %v2492_v56 = vld [vmem:[#allocation2 + $0x170] sm:$0xff] }
 0x802   :  { %v2793_v23 = vpop.f32.mrb[100].mxu1  ;;  %5258 = vmatmul.mubr.msk.bf16.vlgmr.msra.gmra.mrb[52].mxu0 %vm664_vm3, %v1837_v35  ;;  %v2491_v35 = vld [vmem:[#allocation2 + $0x168] sm:$0xff] }
 0x803   :  { %v6824_v63 = vadd.f32 %v2793_v23, %v2488_v47  ;;  %5268 = vmatpush3.bf16.msra.mxu0 %v2032_v13  ;;  %v5361_v3 = vpop.f32.mrb[101].mxu1  ;;  %5269 = vmatprep.mubr.msk.bf16.mxu0 %vm5921_vm1, %v7480_v46 }
 0x804   :  { %v2796_v15 = vpop.f32.mrb[102].mxu1  ;;  %5279 = vmatprep.subr.bf16.mxu0 %v7480_v46 }
 0x805   :  { %v6830_v55 = vadd.f32 %v2796_v15, %v2489_v37  ;;  %v5362_v24 = vpop.f32.mrb[103].mxu1  ;;  %v2932_v54 = vsel %vm664_vm3, %v6824_v63, -inf  ;;  %v1831_v15 = vmul.f32 %v5764_v36, %v6734_v42  ;;  %v2227_v36 = vld [vmem:[%s7462_s3 + $0x4] sm:$0xf] }
 0x806   :  { %2933 = vmax.xlane.f32.xlu0 %v2932_v54 }
 0x807   :  { %v2935_v39 = vsel %vm664_vm3, %v6830_v55, -inf  ;;  %v1841_v54 = vpack.c.bf16 %v1832_v27, %v1831_v15 }
 0x808   :  { %2936 = vmax.xlane.f32.xlu1 %v2935_v39 }
 0x80a   :  { %v2844_v47 = vpop.f32.mrb[104].mxu1  ;;  %5270 = vmatmul.mubr.msk.bf16.vlgmr.msra.gmra.mrb[56].mxu0 %vm664_vm3, %v1839_v18 }
 0x80b   :  { %v6838_v13 = vadd.f32 %v2844_v47, %v2490_v32  ;;  %5280 = vmatpush3.bf16.msra.mxu0 %v2126_v4  ;;  %v5367_v23 = vpop.f32.mrb[105].mxu1  ;;  %5281 = vmatprep.mubr.msk.bf16.mxu0 %vm5921_vm1, %v7480_v46  ;;  %v2493_v4 = vld [vmem:[#allocation2 + $0x178] sm:$0xff] }
 0x80c   :  { %v2847_v37 = vpop.f32.mrb[106].mxu1  ;;  %5607 = vmatprep.subr.msk.bf16.mxu0 %vm2252_vm4, %v2227_v36  ;;  %v2254_v23 = vsel %vm2252_vm4, %v2227_v36, 0 }
 0x80d   :  { %v6843_v41 = vadd.f32 %v2847_v37, %v2491_v35  ;;  %v5368_v3 = vpop.f32.mrb[107].mxu1  ;;  %v2938_v16 = vsel %vm664_vm3, %v6838_v13, -inf }
 0x80e   :  { %2939 = vmax.xlane.f32.xlu0 %v2938_v16  ;;  %v6880_v3 = vld [vmem:[%s7462_s3] sm:$0xf] }
 0x80f   :  { %v2941_v24 = vsel %vm664_vm3, %v6843_v41, -inf }
 0x810   :  { %2942 = vmax.xlane.f32.xlu1 %v2941_v24 }
 0x812   :  { %5282 = vmatmul.mubr.msk.bf16.vlgmr.msra.gmra.mrb[60].mxu0 %vm664_vm3, %v1841_v54 }
 0x813   :  { %5292 = vmatpush3.bf16.msra.mxu0 %v2254_v23 }
 0x814   :  { %5608 = vmatprep.subr.msk.bf16.mxu0 %vm2252_vm4, %v6880_v3 }
 0x821   :  { %3133 = vrot.lane.b32.xlu1 %v6027_v28, %s5929_s12 }
 0x825   :  { %3180 = vrot.lane.b32.xlu1 %v6041_v50, %s5929_s12 }
 0x829   :  { %3227 = vrot.lane.b32.xlu1 %v6037_v48, %s5929_s12 }
 0x82c   :  { %v2895_v42 = vpop.f32.mrb[108].mxu1 }
 0x82d   :  { %v6857_v10 = vadd.f32 %v2895_v42, %v2492_v56  ;;  %v5373_v39 = vpop.f32.mrb[109].mxu1 }
 0x82e   :  { %v2898_v32 = vpop.f32.mrb[110].mxu1 }
 0x82f   :  { %v5374_v18 = vpop.f32.mrb[111].mxu1  ;;  %v2944_v59 = vsel %vm664_vm3, %v6857_v10, -inf  ;;  %v6863_v47 = vadd.f32 %v2898_v32, %v2493_v4 }
 0x830   :  { %2945 = vmax.xlane.f32.xlu0 %v2944_v59 }
 0x831   :  { %v2947_v35 = vsel %vm664_vm3, %v6863_v47, -inf }
 0x846   :  { %3086 = vrot.lane.b32.xlu0 %v6031_v30, %s5929_s12 }
 0x84a   :  { %3274 = vrot.lane.b32.xlu0 %v6033_v31, %s5929_s12 }
 0x84d   :  { %2948 = vmax.xlane.f32.xlu1 %v2947_v35 }
 0x85e   :  { %3321 = vrot.lane.b32.xlu1 %v6029_v29, %s5929_s12 }
 0x86b   :  { %v2904_v27 = vpop.xlane.xlu1 %2903 }
 0x86c   :  { %v2950_v37 = vsub.f32 %v6774_v38, %v2904_v27 }
 0x86d   :  { %v2907_v16 = vpop.xlane.xlu0 %2906 }
 0x86e   :  { %v2966_v15 = vmul.f32 1.442695, %v2950_v37  ;;  %v2951_v24 = vsub.f32 %v6776_v44, %v2907_v16 }
 0x870   :  { %5765 = vpow2.f32 %v2966_v15  ;;  %v2968_v54 = vmul.f32 1.442695, %v2951_v24 }
 0x872   :  { %5767 = vpow2.f32 %v2968_v54 }
 0x873   :  { %v2910_v56 = vpop.xlane.xlu1 %2909 }
 0x874   :  { %v2952_v42 = vsub.f32 %v6782_v14, %v2910_v56 }
 0x876   :  { %v2970_v39 = vmul.f32 1.442695, %v2952_v42 }
 0x877   :  { %v2913_v38 = vpop.xlane.xlu1 %2912 }
 0x878   :  { %5769 = vpow2.f32 %v2970_v39  ;;  %v2953_v32 = vsub.f32 %v6784_v26, %v2913_v38 }
 0x87a   :  { %v6887_v18 = vpop.eup %5765  ;;  %v2972_v59 = vmul.f32 1.442695, %v2953_v32 }
 0x87b   :  { %v2916_v4 = vpop.xlane.xlu1 %2915  ;;  %v2998_v35 = vsel %vm664_vm3, %v6887_v18, 0.0 }
 0x87c   :  { %5771 = vpow2.f32 %v2972_v59  ;;  %v2954_v44 = vsub.f32 %v6790_v22, %v2916_v4  ;;  %2999 = vadd.xlane.f32.xlu0 %v2998_v35  ;;  %v6892_v36 = vpop.eup %5767 }
 0x87d   :  { %v3001_v26 = vsel %vm664_vm3, %v6892_v36, 0.0 }
 0x87e   :  { %v2974_v23 = vmul.f32 1.442695, %v2954_v44 }
 0x87f   :  { %v2919_v14 = vpop.xlane.xlu1 %2918 }
 0x880   :  { %5773 = vpow2.f32 %v2974_v23  ;;  %v2955_v27 = vsub.f32 %v6792_v17, %v2919_v14 }
 0x882   :  { %v6897_v37 = vpop.eup %5769  ;;  %v2976_v16 = vmul.f32 1.442695, %v2955_v27  ;;  %3002 = vadd.xlane.f32.xlu1 %v3001_v26 }
 0x883   :  { %v2922_v15 = vpop.xlane.xlu0 %2921  ;;  %v3004_v24 = vsel %vm664_vm3, %v6897_v37, 0.0 }
 0x884   :  { %5775 = vpow2.f32 %v2976_v16  ;;  %v2956_v22 = vsub.f32 %v6798_v20, %v2922_v15  ;;  %3005 = vadd.xlane.f32.xlu0 %v3004_v24 }
 0x885   :  { %v2925_v54 = vpop.xlane.xlu1 %2924 }
 0x886   :  { %v6902_v56 = vpop.eup %5771  ;;  %v2978_v42 = vmul.f32 1.442695, %v2956_v22  ;;  %v2957_v17 = vsub.f32 %v6801_v9, %v2925_v54 }
 0x887   :  { %v3007_v39 = vsel %vm664_vm3, %v6902_v56, 0.0 }
 0x888   :  { %5777 = vpow2.f32 %v2978_v42  ;;  %v2980_v38 = vmul.f32 1.442695, %v2957_v17  ;;  %3008 = vadd.xlane.f32.xlu1 %v3007_v39 }
 0x88a   :  { %v6907_v32 = vpop.eup %5773  ;;  %5779 = vpow2.f32 %v2980_v38 }
 0x88b   :  { %v2928_v59 = vpop.xlane.xlu0 %2927  ;;  %v3010_v20 = vsel %vm664_vm3, %v6907_v32, 0.0 }
 0x88c   :  { %v2958_v4 = vsub.f32 %v6810_v57, %v2928_v59  ;;  %3011 = vadd.xlane.f32.xlu0 %v3010_v20 }
 0x88d   :  { %v2931_v35 = vpop.xlane.xlu1 %2930 }
 0x88e   :  { %v6912_v44 = vpop.eup %5775  ;;  %v2982_v9 = vmul.f32 1.442695, %v2958_v4  ;;  %v2959_v23 = vsub.f32 %v6816_v53, %v2931_v35 }
 0x88f   :  { %v3013_v14 = vsel %vm664_vm3, %v6912_v44, 0.0 }
 0x890   :  { %5781 = vpow2.f32 %v2982_v9  ;;  %v2984_v27 = vmul.f32 1.442695, %v2959_v23  ;;  %3014 = vadd.xlane.f32.xlu1 %v3013_v14 }
 0x892   :  { %v6917_v26 = vpop.eup %5777  ;;  %5783 = vpow2.f32 %v2984_v27 }
 0x893   :  { %v2934_v16 = vpop.xlane.xlu0 %2933  ;;  %v3016_v57 = vsel %vm664_vm3, %v6917_v26, 0.0 }
 0x894   :  { %v6921_v15 = vpop.eup %5779  ;;  %v2960_v24 = vsub.f32 %v6824_v63, %v2934_v16  ;;  %3017 = vadd.xlane.f32.xlu0 %v3016_v57 }
 0x895   :  { %v2937_v22 = vpop.xlane.xlu1 %2936  ;;  %v3019_v53 = vsel %vm664_vm3, %v6921_v15, 0.0 }
 0x896   :  { %v2986_v54 = vmul.f32 1.442695, %v2960_v24  ;;  %v2961_v42 = vsub.f32 %v6830_v55, %v2937_v22  ;;  %3020 = vadd.xlane.f32.xlu1 %v3019_v53 }
 0x898   :  { %5785 = vpow2.f32 %v2986_v54  ;;  %v2988_v17 = vmul.f32 1.442695, %v2961_v42 }
 0x89a   :  { %v6927_v39 = vpop.eup %5781  ;;  %5787 = vpow2.f32 %v2988_v17 }
 0x89b   :  { %v2940_v38 = vpop.xlane.xlu0 %2939  ;;  %v3022_v59 = vsel %vm664_vm3, %v6927_v39, 0.0 }
 0x89c   :  { %v6931_v20 = vpop.eup %5783  ;;  %v2962_v63 = vsub.f32 %v6838_v13, %v2940_v38  ;;  %3023 = vadd.xlane.f32.xlu0 %v3022_v59 }
 0x89d   :  { %v2943_v4 = vpop.xlane.xlu1 %2942  ;;  %v3025_v35 = vsel %vm664_vm3, %v6931_v20, 0.0 }
 0x89e   :  { %v2990_v55 = vmul.f32 1.442695, %v2962_v63  ;;  %v2963_v9 = vsub.f32 %v6843_v41, %v2943_v4  ;;  %3026 = vadd.xlane.f32.xlu1 %v3025_v35 }
 0x8a0   :  { %5789 = vpow2.f32 %v2990_v55  ;;  %v2992_v23 = vmul.f32 1.442695, %v2963_v9 }
 0x8a1   :  { %v3134_v14 = vpop.permute.xlu1 %3133 }
 0x8a2   :  { %v6937_v27 = vpop.eup %5785  ;;  %5791 = vpow2.f32 %v2992_v23  ;;  %5382 = vmatpush3.bf16.msra.mxu1 %v3134_v14  ;;  %v2378_v14 = vsel %vm2252_vm4, %v6880_v3, 0 }
 0x8a3   :  { %v3028_v16 = vsel %vm664_vm3, %v6937_v27, 0.0  ;;  %5393 = vmatprep.subr.bf16.mxu1 %v7480_v46 }
 0x8a4   :  { %v6942_v13 = vpop.eup %5787  ;;  %3029 = vadd.xlane.f32.xlu0 %v3028_v16 }
 0x8a5   :  { %v3031_v57 = vsel %vm664_vm3, %v6942_v13, 0.0  ;;  %v6959_v55 = vpop.permute.xlu1 %3180 }
 0x8a6   :  { %3032 = vadd.xlane.f32.xlu1 %v3031_v57 }
 0x8a9   :  { %v6969_v16 = vpop.permute.xlu1 %3227 }
 0x8aa   :  { %v6946_v41 = vpop.eup %5789 }
 0x8ab   :  { %v3034_v24 = vsel %vm664_vm3, %v6946_v41, 0.0 }
 0x8ac   :  { %v6950_v22 = vpop.eup %5791  ;;  %3035 = vadd.xlane.f32.xlu0 %v3034_v24 }
 0x8ad   :  { %v3037_v53 = vsel %vm664_vm3, %v6950_v22, 0.0 }
 0x8ae   :  { %3038 = vadd.xlane.f32.xlu1 %v3037_v53 }
 0x8bd   :  { %v2946_v54 = vpop.xlane.xlu0 %2945 }
 0x8be   :  { %v2964_v42 = vsub.f32 %v6857_v10, %v2946_v54 }
 0x8c0   :  { %v2994_v17 = vmul.f32 1.442695, %v2964_v42 }
 0x8c2   :  { %5793 = vpow2.f32 %v2994_v17 }
 0x8cc   :  { %v6955_v38 = vpop.eup %5793 }
 0x8cd   :  { %v1883_v59 = vpop.f32.mrb[48].mxu0  ;;  %v3040_v63 = vsel %vm664_vm3, %v6955_v38, 0.0 }
 0x8ce   :  { %v5247_v4 = vpop.f32.mrb[49].mxu0  ;;  %3041 = vadd.xlane.f32.xlu0 %v3040_v63 }
 0x8cf   :  { %v1886_v35 = vpop.f32.mrb[50].mxu0 }
 0x8d0   :  { %v2219_v9 = vpack.c.bf16 %v1886_v35, %v1883_v59  ;;  %v5248_v23 = vpop.f32.mrb[51].mxu0 }
 0x8d1   :  { %v7493_v23 = vld [vmem:[#allocation7_spill] sm:$0xff] }
 0x8d2   :  { %5293 = vmatprep.mubr.msk.bf16.mxu0 %vm266_vm2, %v2219_v9  ;;  %v7482_v9 = vpack.c.bf16 %v6351_v0, %v6347_v62  ;;  %v7484_v62 = vpack.c.bf16 %v6365_v11, %v6363_v7  ;;  %v7485_v0 = vpack.c.bf16 %v6476_v1, %v6474_v33  ;;  %v7486_v7 = vld [vmem:[#allocation6_spill] sm:$0xff]  ;;  %v7487_v11 = vld [vmem:[#allocation5_spill] sm:$0xff] }
 0x8d3   :  { %5294 = vmatmul.mubr.msk.bf16.vlgmr.msra.gmra.mrb[64].mxu0 %vm266_vm2, %v2220_v8  ;;  %v7488_v60 = vpack.c.bf16 %v7486_v7, %v7487_v11 }
 0x8d4   :  { %5310 = vmatpush3.bf16.msra.mxu0 %v2378_v14 }
 0x8d5   :  { %v1977_v10 = vpop.f32.mrb[52].mxu0  ;;  %5375 = vmatprep.subr.bf16.mxu0 %v7480_v46 }
 0x8d6   :  { %v5259_v57 = vpop.f32.mrb[53].mxu0 }
 0x8d7   :  { %v1980_v24 = vpop.f32.mrb[54].mxu0 }
 0x8d8   :  { %v2221_v53 = vpack.c.bf16 %v1980_v24, %v1977_v10  ;;  %v5260_v54 = vpop.f32.mrb[55].mxu0 }
 0x8da   :  { %v2949_v42 = vpop.xlane.xlu1 %2948  ;;  %5297 = vmatprep.mubr.msk.bf16.mxu0 %vm266_vm2, %v2221_v53 }
 0x8db   :  { %v2965_v3 = vsub.f32 %v6863_v47, %v2949_v42  ;;  %5298 = vmatmul.mubr.msk.bf16.gmra.mrb[68].mxu0 %vm266_vm2, %v2222_v5 }
 0x8dd   :  { %v2996_v61 = vmul.f32 1.442695, %v2965_v3  ;;  %v2071_v12 = vpop.f32.mrb[56].mxu0 }
 0x8de   :  { %v5271_v8 = vpop.f32.mrb[57].mxu0  ;;  %v7046_v1 = vpop.permute.xlu1 %3321 }
 0x8df   :  { %5795 = vpow2.f32 %v2996_v61  ;;  %v2074_v17 = vpop.f32.mrb[58].mxu0 }
 0x8e0   :  { %v2223_v59 = vpack.c.bf16 %v2074_v17, %v2071_v12  ;;  %v5272_v63 = vpop.f32.mrb[59].mxu0 }
 0x8e2   :  { %5301 = vmatprep.mubr.msk.bf16.mxu0 %vm266_vm2, %v2223_v59 }
 0x8e3   :  { %5302 = vmatmul.mubr.msk.bf16.gmra.mrb[72].mxu0 %vm266_vm2, %v2224_v52  ;;  %v3087_v52 = vpop.permute.xlu0 %3086 }
 0x8e4   :  { %3368 = vrot.lane.b32.xlu0 %v6043_v51, %s5929_s12 }
 0x8e5   :  { %v2165_v2 = vpop.f32.mrb[60].mxu0 }
 0x8e6   :  { %v5283_v58 = vpop.f32.mrb[61].mxu0 }
 0x8e7   :  { %v2168_v5 = vpop.f32.mrb[62].mxu0  ;;  %v3275_v33 = vpop.permute.xlu0 %3274 }
 0x8e8   :  { %v2225_v47 = vpack.c.bf16 %v2168_v5, %v2165_v2  ;;  %v5284_v4 = vpop.f32.mrb[63].mxu0  ;;  %3630 = vrot.lane.b32.xlu0 %v6031_v30, %s5930_s5 }
 0x8e9   :  { %v6986_v35 = vpop.eup %5795 }
 0x8ea   :  { %5305 = vmatprep.mubr.msk.bf16.mxu0 %vm266_vm2, %v2225_v47  ;;  %v3043_v45 = vsel %vm664_vm3, %v6986_v35, 0.0 }
 0x8eb   :  { %3044 = vadd.xlane.f32.xlu1 %v3043_v45  ;;  %5306 = vmatmul.mubr.msk.bf16.gmra.mrb[76].mxu0 %vm266_vm2, %v2226_v40  ;;  %v7492_v40 = vld [vmem:[#allocation8_spill] sm:$0xff] }
 0x8ec   :  { %5311 = vmatprep.mubr.msk.bf16.mxu0 %vm266_vm2, %v7481_v43  ;;  %3681 = vrot.lane.b32.xlu0 %v6027_v28, %s5930_s5  ;;  %v7494_v14 = vpack.c.bf16 %v7492_v40, %v7493_v23 }
 0x8f0   :  { %3732 = vrot.lane.b32.xlu0 %v6041_v50, %s5930_s5 }
 0x8f3   :  { %5312 = vmatmul.mubr.msk.bf16.vlgmr.msra.gmra.mrb[64].mxu0 %vm266_vm2, %v7482_v9 }
 0x8f4   :  { %5376 = vmatpush3.bf16.msra.mxu0 %v3087_v52  ;;  %5315 = vmatprep.mubr.msk.bf16.mxu0 %vm266_vm2, %v7483_v6 }
 0x8f5   :  { %3783 = vrot.lane.b32.xlu0 %v6037_v48, %s5930_s5  ;;  %5387 = vmatprep.subr.bf16.mxu0 %v7480_v46 }
 0x8f9   :  { %3781 = vrot.lane.b32.xlu0 %v6037_v48, %s5931_s17 }
 0x8fb   :  { %5316 = vmatmul.mubr.msk.bf16.gmra.mrb[68].mxu0 %vm266_vm2, %v7484_v62 }
 0x8fc   :  { %3415 = vrot.lane.b32.xlu1 %v6039_v49, %s5929_s12  ;;  %5319 = vmatprep.mubr.msk.bf16.mxu0 %vm266_vm2, %v7485_v0 }
 0x8fd   :  { %3832 = vrot.lane.b32.xlu0 %v6033_v31, %s5931_s17 }
 0x900   :  { %3628 = vrot.lane.b32.xlu1 %v6031_v30, %s5931_s17 }
 0x901   :  { %3883 = vrot.lane.b32.xlu0 %v6029_v29, %s5931_s17 }
 0x903   :  { %5320 = vmatmul.mubr.msk.bf16.gmra.mrb[72].mxu0 %vm266_vm2, %v7488_v60 }
 0x904   :  { %3679 = vrot.lane.b32.xlu1 %v6027_v28, %s5931_s17  ;;  %5323 = vmatprep.mubr.msk.bf16.mxu0 %vm266_vm2, %v7491_v21 }
 0x905   :  { %3934 = vrot.lane.b32.xlu0 %v6043_v51, %s5931_s17 }
 0x908   :  { %3730 = vrot.lane.b32.xlu1 %v6041_v50, %s5931_s17 }
 0x909   :  { %v3000_v19 = vpop.xlane.xlu0 %2999 }
 0x90a   :  { %5797 = vrcp.f32 %v3000_v19 }
 0x90b   :  { %5324 = vmatmul.mubr.msk.bf16.gmra.mrb[76].mxu0 %vm266_vm2, %v7494_v14  ;;  %v3470_v14 = vld [vmem:[%s7462_s3 + $0x8] sm:$0xf] }
 0x90c   :  { %3834 = vrot.lane.b32.xlu1 %v6033_v31, %s5930_s5  ;;  %5377 = vmatprep.mubr.msk.bf16.mxu0 %vm5921_vm1, %v7480_v46 }
 0x90f   :  { %v3003_v10 = vpop.xlane.xlu1 %3002 }
 0x910   :  { %5799 = vrcp.f32 %v3003_v10  ;;  %3885 = vrot.lane.b32.xlu1 %v6029_v29, %s5930_s5  ;;  %v3496_v10 = vsel %vm2252_vm4, %v3470_v14, 0 }
 0x911   :  { %v3006_v57 = vpop.xlane.xlu0 %3005 }
 0x912   :  { %5801 = vrcp.f32 %v3006_v57 }
 0x914   :  { %3936 = vrot.lane.b32.xlu1 %v6043_v51, %s5930_s5  ;;  %v5798_v53 = vpop.eup %5797 }
 0x915   :  { %v3009_v24 = vpop.xlane.xlu1 %3008  ;;  %v3062_v3 = vmul.f32 %v5798_v53, %v6887_v18 }
 0x916   :  { %5803 = vrcp.f32 %v3009_v24 }
 0x918   :  { %3987 = vrot.lane.b32.xlu1 %v6039_v49, %s5930_s5 }
 0x919   :  { %v3012_v54 = vpop.xlane.xlu0 %3011 }
 0x91a   :  { %v5800_v42 = vpop.eup %5799  ;;  %5805 = vrcp.f32 %v3012_v54 }
 0x91b   :  { %v3063_v61 = vmul.f32 %v5800_v42, %v6892_v36 }
 0x91c   :  { %3985 = vrot.lane.b32.xlu1 %v6039_v49, %s5931_s17  ;;  %v5802_v17 = vpop.eup %5801 }
 0x91d   :  { %v3078_v12 = vpack.c.bf16 %v3063_v61, %v3062_v3  ;;  %v3015_v8 = vpop.xlane.xlu1 %3014  ;;  %v3064_v18 = vmul.f32 %v5802_v17, %v6897_v37 }
 0x91e   :  { %5807 = vrcp.f32 %v3015_v8 }
 0x91f   :  { %5378 = vmatmul.mubr.msk.bf16.vlgmr.msra.gmra.mrb[80].mxu0 %vm664_vm3, %v3078_v12 }
 0x920   :  { %v5804_v59 = vpop.eup %5803  ;;  %5388 = vmatpush3.bf16.msra.mxu0 %v6959_v55  ;;  %5389 = vmatprep.mubr.msk.bf16.mxu0 %vm5921_vm1, %v7480_v46 }
 0x921   :  { %v3065_v36 = vmul.f32 %v5804_v59, %v6902_v56  ;;  %v3018_v63 = vpop.xlane.xlu0 %3017  ;;  %5399 = vmatprep.subr.bf16.mxu0 %v7480_v46 }
 0x922   :  { %5809 = vrcp.f32 %v3018_v63 }
 0x923   :  { %v3021_v2 = vpop.xlane.xlu1 %3020  ;;  %v3079_v58 = vpack.c.bf16 %v3065_v36, %v3064_v18 }
 0x924   :  { %5811 = vrcp.f32 %v3021_v2  ;;  %v5806_v5 = vpop.eup %5805 }
 0x925   :  { %5384 = vmatmul.mubr.msk.bf16.vlgmr.msra.gmra.mrb[112].mxu1 %vm664_vm3, %v3079_v58  ;;  %v3066_v56 = vmul.f32 %v5806_v5, %v6907_v32 }
 0x926   :  { %5394 = vmatpush3.bf16.msra.mxu1 %v6969_v16  ;;  %5395 = vmatprep.mubr.msk.bf16.mxu1 %vm5921_vm1, %v7480_v46 }
 0x927   :  { %5405 = vmatprep.subr.bf16.mxu1 %v7480_v46 }
 0x928   :  { %v5808_v37 = vpop.eup %5807 }
 0x929   :  { %v3067_v55 = vmul.f32 %v5808_v37, %v6912_v44  ;;  %v3024_v47 = vpop.xlane.xlu0 %3023 }
 0x92a   :  { %5813 = vrcp.f32 %v3024_v47 }
 0x92b   :  { %v3027_v4 = vpop.xlane.xlu1 %3026  ;;  %v3080_v45 = vpack.c.bf16 %v3067_v55, %v3066_v56 }
 0x92c   :  { %v5810_v43 = vpop.eup %5809  ;;  %5815 = vrcp.f32 %v3027_v4 }
 0x92d   :  { %5390 = vmatmul.mubr.msk.bf16.vlgmr.msra.gmra.mrb[84].mxu0 %vm664_vm3, %v3080_v45  ;;  %v3068_v16 = vmul.f32 %v5810_v43, %v6917_v26 }
 0x92e   :  { %v5812_v52 = vpop.eup %5811  ;;  %5400 = vmatpush3.bf16.msra.mxu0 %v3275_v33  ;;  %5401 = vmatprep.mubr.msk.bf16.mxu0 %vm5921_vm1, %v7480_v46 }
 0x92f   :  { %v3069_v9 = vmul.f32 %v5812_v52, %v6921_v15  ;;  %5411 = vmatprep.subr.bf16.mxu0 %v7480_v46 }
 0x931   :  { %v3030_v32 = vpop.xlane.xlu0 %3029  ;;  %v3081_v44 = vpack.c.bf16 %v3069_v9, %v3068_v16 }
 0x932   :  { %5817 = vrcp.f32 %v3030_v32 }
 0x933   :  { %v3033_v6 = vpop.xlane.xlu1 %3032  ;;  %5396 = vmatmul.mubr.msk.bf16.vlgmr.msra.gmra.mrb[116].mxu1 %vm664_vm3, %v3081_v44 }
 0x934   :  { %v5814_v62 = vpop.eup %5813  ;;  %5819 = vrcp.f32 %v3033_v6  ;;  %5406 = vmatpush3.bf16.msra.mxu1 %v7046_v1  ;;  %5407 = vmatprep.mubr.msk.bf16.mxu1 %vm5921_vm1, %v7480_v46 }
 0x935   :  { %5417 = vmatprep.subr.bf16.mxu1 %v7480_v46  ;;  %v3070_v15 = vmul.f32 %v5814_v62, %v6927_v39 }
 0x936   :  { %v5816_v26 = vpop.eup %5815 }
 0x937   :  { %v3071_v0 = vmul.f32 %v5816_v26, %v6931_v20 }
 0x939   :  { %v3082_v7 = vpack.c.bf16 %v3071_v0, %v3070_v15  ;;  %v3036_v20 = vpop.xlane.xlu0 %3035 }
 0x93b   :  { %5402 = vmatmul.mubr.msk.bf16.vlgmr.msra.gmra.mrb[88].mxu0 %vm664_vm3, %v3082_v7  ;;  %v3039_v39 = vpop.xlane.xlu1 %3038 }
 0x93c   :  { %v5818_v11 = vpop.eup %5817  ;;  %5413 = vmatprep.mubr.msk.bf16.mxu0 %vm5921_vm1, %v7480_v46  ;;  %5821 = vrcp.f32 %v3039_v39 }
 0x93d   :  { %v3072_v25 = vmul.f32 %v5818_v11, %v6937_v27  ;;  %5823 = vrcp.f32 %v3036_v20 }
 0x93e   :  { %v5820_v60 = vpop.eup %5819 }
 0x93f   :  { %v3073_v34 = vmul.f32 %v5820_v60, %v6942_v13 }
 0x941   :  { %v3083_v21 = vpack.c.bf16 %v3073_v34, %v3072_v25 }
 0x943   :  { %5408 = vmatmul.mubr.msk.bf16.vlgmr.msra.gmra.mrb[120].mxu1 %vm664_vm3, %v3083_v21 }
 0x944   :  { %5419 = vmatprep.mubr.msk.bf16.mxu1 %vm5921_vm1, %v7480_v46 }
 0x946   :  { %v5822_v33 = vpop.eup %5821 }
 0x947   :  { %v5824_v19 = vpop.eup %5823  ;;  %v3075_v40 = vmul.f32 %v5822_v33, %v6950_v22 }
 0x948   :  { %v3074_v23 = vmul.f32 %v5824_v19, %v6946_v41 }
 0x94a   :  { %v3084_v13 = vpack.c.bf16 %v3075_v40, %v3074_v23 }
 0x95b   :  { %v3042_v1 = vpop.xlane.xlu0 %3041 }
 0x95c   :  { %5825 = vrcp.f32 %v3042_v1 }
 0x95f   :  { %v3369_v27 = vpop.permute.xlu0 %3368 }
 0x960   :  { %5412 = vmatpush3.bf16.msra.mxu0 %v3369_v27 }
 0x961   :  { %5609 = vmatprep.subr.msk.bf16.mxu0 %vm2252_vm4, %v3470_v14 }
 0x963   :  { %5414 = vmatmul.mubr.msk.bf16.vlgmr.msra.gmra.mrb[92].mxu0 %vm664_vm3, %v3084_v13  ;;  %v3631_v42 = vpop.permute.xlu0 %3630 }
 0x964   :  { %5424 = vmatpush3.bf16.msra.mxu0 %v3496_v10  ;;  %v3636_v61 = vsel %vm266_vm2, %v3631_v42, 0 }
 0x965   :  { %5465 = vmatprep.subr.bf16.mxu0 %v7480_v46 }
 0x966   :  { %v5826_v57 = vpop.eup %5825 }
 0x967   :  { %v3076_v53 = vmul.f32 %v5826_v57, %v6955_v38  ;;  %v3682_v8 = vpop.permute.xlu0 %3681 }
 0x968   :  { %v3687_v59 = vsel %vm266_vm2, %v3682_v8, 0 }
 0x96b   :  { %v3733_v38 = vpop.permute.xlu0 %3732 }
 0x96c   :  { %v3738_v18 = vsel %vm266_vm2, %v3733_v38, 0 }
 0x96f   :  { %v3784_v63 = vpop.permute.xlu0 %3783 }
 0x970   :  { %v3789_v2 = vsel %vm266_vm2, %v3784_v63, 0 }
 0x973   :  { %v3782_v5 = vpop.permute.xlu0 %3781 }
 0x977   :  { %v7137_v55 = vpop.permute.xlu0 %3832 }
 0x978   :  { %v3045_v22 = vpop.xlane.xlu1 %3044 }
 0x979   :  { %5827 = vrcp.f32 %v3045_v22 }
 0x97b   :  { %v3884_v4 = vpop.permute.xlu0 %3883 }
 0x97c   :  { %v3416_v41 = vpop.permute.xlu1 %3415 }
 0x97d   :  { %5418 = vmatpush3.bf16.msra.mxu1 %v3416_v41 }
 0x97e   :  { %5441 = vmatprep.subr.bf16.mxu1 %v7480_v46 }
 0x980   :  { %v3629_v12 = vpop.permute.xlu1 %3628 }
 0x983   :  { %v5828_v24 = vpop.eup %5827 }
 0x984   :  { %v3077_v54 = vmul.f32 %v5828_v24, %v6986_v35  ;;  %v3680_v17 = vpop.permute.xlu1 %3679 }
 0x986   :  { %v3085_v3 = vpack.c.bf16 %v3077_v54, %v3076_v53 }
 0x988   :  { %5420 = vmatmul.mubr.msk.bf16.vlgmr.msra.gmra.mrb[124].mxu1 %vm664_vm3, %v3085_v3  ;;  %v3731_v35 = vpop.permute.xlu1 %3730 }
 0x989   :  { %5442 = vmatpush3.bf16.xpose.msra.mxu1 %v3636_v61  ;;  %5443 = vmatprep.mubr.msk.bf16.mxu1 %vm5921_vm1, %v7480_v46 }
 0x98a   :  { %5447 = vmatprep.subr.bf16.mxu1 %v7480_v46 }
 0x98c   :  { %v3835_v36 = vpop.permute.xlu1 %3834 }
 0x98d   :  { %v3840_v7 = vsel %vm266_vm2, %v3835_v36, 0  ;;  %v3613_v36 = vld [vmem:[#allocation2 + $0x188] sm:$0xff] }
 0x990   :  { %5444 = vmatmul.mubr.msk.bf16.vlgmr.msra.gmra.mrb[128].mxu1 %vm266_vm2, %v3629_v12  ;;  %v3886_v58 = vpop.permute.xlu1 %3885 }
 0x991   :  { %5448 = vmatpush3.bf16.xpose.msra.mxu1 %v3687_v59  ;;  %5449 = vmatprep.mubr.msk.bf16.mxu1 %vm5921_vm1, %v7480_v46  ;;  %v3891_v56 = vsel %vm266_vm2, %v3886_v58, 0 }
 0x992   :  { %5453 = vmatprep.subr.bf16.mxu1 %v7480_v46 }
 0x994   :  { %v7133_v37 = vpop.permute.xlu1 %3936 }
 0x998   :  { %5450 = vmatmul.mubr.msk.bf16.vlgmr.msra.gmra.mrb[132].mxu1 %vm266_vm2, %v3680_v17  ;;  %v3988_v47 = vpop.permute.xlu1 %3987 }
 0x999   :  { %5454 = vmatpush3.bf16.xpose.msra.mxu1 %v3738_v18  ;;  %5455 = vmatprep.mubr.msk.bf16.mxu1 %vm5921_vm1, %v7480_v46  ;;  %v3993_v45 = vsel %vm266_vm2, %v3988_v47, 0 }
 0x99a   :  { %5459 = vmatprep.subr.bf16.mxu1 %v7480_v46 }
 0x99c   :  { %v3986_v43 = vpop.permute.xlu1 %3985 }
 0x9a0   :  { %5456 = vmatmul.mubr.msk.bf16.vlgmr.msra.gmra.mrb[136].mxu1 %vm266_vm2, %v3731_v35  ;;  %v3612_v35 = vld [vmem:[#allocation2 + $0x180] sm:$0xff] }
 0x9a1   :  { %5460 = vmatpush3.bf16.xpose.msra.mxu1 %v3789_v2  ;;  %5461 = vmatprep.mubr.msk.bf16.mxu1 %vm5921_vm1, %v7480_v46 }
 0x9a2   :  { %5471 = vmatprep.subr.bf16.mxu1 %v7480_v46 }
 0x9a8   :  { %5462 = vmatmul.mubr.msk.bf16.vlgmr.msra.gmra.mrb[140].mxu1 %vm266_vm2, %v3782_v5 }
 0x9a9   :  { %5472 = vmatpush3.bf16.xpose.msra.mxu1 %v3891_v56  ;;  %5473 = vmatprep.mubr.msk.bf16.mxu1 %vm5921_vm1, %v7480_v46 }
 0x9aa   :  { %5483 = vmatprep.subr.bf16.mxu1 %v7480_v46 }
 0x9b0   :  { %5474 = vmatmul.mubr.msk.bf16.vlgmr.msra.gmra.mrb[144].mxu1 %vm266_vm2, %v3884_v4  ;;  %v3942_v4 = vsel %vm266_vm2, %v7133_v37, 0 }
 0x9b1   :  { %5484 = vmatpush3.bf16.xpose.msra.mxu1 %v3993_v45  ;;  %5485 = vmatprep.mubr.msk.bf16.mxu1 %vm5921_vm1, %v7480_v46 }
 0x9b2   :  { %5495 = vmatprep.subr.bf16.mxu1 %v7480_v46 }
 0x9b8   :  { %5486 = vmatmul.mubr.msk.bf16.vlgmr.msra.gmra.mrb[148].mxu1 %vm266_vm2, %v3986_v43  ;;  %v3614_v43 = vld [vmem:[#allocation2 + $0x190] sm:$0xff] }
 0x9b9   :  { %5497 = vmatprep.mubr.msk.bf16.mxu1 %vm5921_vm1, %v7480_v46 }
 0x9f2   :  { %v3126_v52 = vpop.f32.mrb[80].mxu0 }
 0x9f3   :  { %v5379_v16 = vpop.f32.mrb[81].mxu0 }
 0x9f4   :  { %v3129_v9 = vpop.f32.mrb[82].mxu0  ;;  %v3615_v16 = vld [vmem:[#allocation2 + $0x198] sm:$0xff] }
 0x9f5   :  { %v3462_v32 = vpack.c.bf16 %v3129_v9, %v3126_v52  ;;  %v5380_v44 = vpop.f32.mrb[83].mxu0 }
 0x9f7   :  { %5425 = vmatprep.mubr.msk.bf16.mxu0 %vm266_vm2, %v3462_v32 }
 0x9f8   :  { %v3173_v6 = vpop.f32.mrb[112].mxu1 }
 0x9f9   :  { %v5385_v62 = vpop.f32.mrb[113].mxu1 }
 0x9fa   :  { %v3176_v26 = vpop.f32.mrb[114].mxu1  ;;  %v3935_v62 = vpop.permute.xlu0 %3934 }
 0x9fb   :  { %v3463_v15 = vpack.c.bf16 %v3176_v26, %v3173_v6  ;;  %v5386_v0 = vpop.f32.mrb[115].mxu1  ;;  %v3616_v26 = vld [vmem:[#allocation2 + $0x1a0] sm:$0xff] }
 0x9fd   :  { %5426 = vmatmul.mubr.msk.bf16.vlgmr.msra.gmra.mrb[64].mxu0 %vm266_vm2, %v3463_v15 }
 0x9fe   :  { %5466 = vmatpush3.bf16.xpose.msra.mxu0 %v3840_v7  ;;  %v3617_v7 = vld [vmem:[#allocation2 + $0x1a8] sm:$0xff] }
 0x9ff   :  { %5477 = vmatprep.subr.bf16.mxu0 %v7480_v46 }
 0xa00   :  { %v3220_v11 = vpop.f32.mrb[84].mxu0 }
 0xa01   :  { %v5391_v60 = vpop.f32.mrb[85].mxu0 }
 0xa02   :  { %v3223_v25 = vpop.f32.mrb[86].mxu0 }
 0xa03   :  { %v3464_v34 = vpack.c.bf16 %v3223_v25, %v3220_v11  ;;  %v5392_v21 = vpop.f32.mrb[87].mxu0 }
 0xa05   :  { %5429 = vmatprep.mubr.msk.bf16.mxu0 %vm266_vm2, %v3464_v34 }
 0xa06   :  { %v3267_v39 = vpop.f32.mrb[116].mxu1 }
 0xa07   :  { %v5397_v20 = vpop.f32.mrb[117].mxu1 }
 0xa08   :  { %v3270_v33 = vpop.f32.mrb[118].mxu1 }
 0xa09   :  { %v3465_v1 = vpack.c.bf16 %v3270_v33, %v3267_v39  ;;  %v5398_v19 = vpop.f32.mrb[119].mxu1  ;;  %v3618_v33 = vld [vmem:[#allocation2 + $0x1b0] sm:$0xff] }
 0xa0a   :  { %v3619_v19 = vld [vmem:[#allocation2 + $0x1b8] sm:$0xff] }
 0xa0b   :  { %5430 = vmatmul.mubr.msk.bf16.gmra.mrb[68].mxu0 %vm266_vm2, %v3465_v1 }
 0xa0e   :  { %v3314_v40 = vpop.f32.mrb[88].mxu0 }
 0xa0f   :  { %v5403_v23 = vpop.f32.mrb[89].mxu0 }
 0xa10   :  { %v3317_v27 = vpop.f32.mrb[90].mxu0 }
 0xa11   :  { %v3466_v13 = vpack.c.bf16 %v3317_v27, %v3314_v40  ;;  %v5404_v14 = vpop.f32.mrb[91].mxu0 }
 0xa13   :  { %5433 = vmatprep.mubr.msk.bf16.mxu0 %vm266_vm2, %v3466_v13 }
 0xa16   :  { %v3361_v10 = vpop.f32.mrb[120].mxu1 }
 0xa17   :  { %v5409_v22 = vpop.f32.mrb[121].mxu1 }
 0xa18   :  { %v3364_v41 = vpop.f32.mrb[122].mxu1 }
 0xa19   :  { %v3467_v57 = vpack.c.bf16 %v3364_v41, %v3361_v10  ;;  %v5410_v24 = vpop.f32.mrb[123].mxu1  ;;  %v3622_v41 = vld [vmem:[#allocation2 + $0x1d0] sm:$0xff] }
 0xa1a   :  { %v3623_v24 = vld [vmem:[#allocation2 + $0x1d8] sm:$0xff] }
 0xa1b   :  { %5434 = vmatmul.mubr.msk.bf16.gmra.mrb[72].mxu0 %vm266_vm2, %v3467_v57 }
 0xa36   :  { %v3408_v53 = vpop.f32.mrb[92].mxu0 }
 0xa37   :  { %v5415_v54 = vpop.f32.mrb[93].mxu0 }
 0xa38   :  { %v3411_v42 = vpop.f32.mrb[94].mxu0 }
 0xa39   :  { %v3468_v3 = vpack.c.bf16 %v3411_v42, %v3408_v53  ;;  %v5416_v61 = vpop.f32.mrb[95].mxu0 }
 0xa3b   :  { %5437 = vmatprep.mubr.msk.bf16.mxu0 %vm266_vm2, %v3468_v3 }
 0xa5b   :  { %v3455_v12 = vpop.f32.mrb[124].mxu1 }
 0xa5c   :  { %v5421_v8 = vpop.f32.mrb[125].mxu1 }
 0xa5d   :  { %v3458_v17 = vpop.f32.mrb[126].mxu1 }
 0xa5e   :  { %v3469_v59 = vpack.c.bf16 %v3458_v17, %v3455_v12  ;;  %v5422_v38 = vpop.f32.mrb[127].mxu1 }
 0xa60   :  { %5438 = vmatmul.mubr.msk.bf16.gmra.mrb[76].mxu0 %vm266_vm2, %v3469_v59  ;;  %v3627_v59 = vld [vmem:[#allocation2 + $0x1f8] sm:$0xff] }
 0xa61   :  { %5467 = vmatprep.mubr.msk.bf16.mxu0 %vm5921_vm1, %v7480_v46 }
 0xa63   :  { %v3672_v18 = vpop.f32.mrb[128].mxu1 }
 0xa64   :  { %v7162_v63 = vadd.f32 %v3672_v18, %v3612_v35  ;;  %v5445_v2 = vpop.f32.mrb[129].mxu1 }
 0xa65   :  { %v3675_v58 = vpop.f32.mrb[130].mxu1 }
 0xa66   :  { %v7164_v5 = vadd.f32 %v3675_v58, %v3613_v36  ;;  %v5446_v56 = vpop.f32.mrb[131].mxu1  ;;  %v4036_v47 = vsel %vm664_vm3, %v7162_v63, -inf }
 0xa67   :  { %4037 = vmax.xlane.f32.xlu0 %v4036_v47 }
 0xa68   :  { %5468 = vmatmul.mubr.msk.bf16.vlgmr.msra.gmra.mrb[96].mxu0 %vm266_vm2, %v7137_v55  ;;  %v4039_v45 = vsel %vm664_vm3, %v7164_v5, -inf }
 0xa69   :  { %5478 = vmatpush3.bf16.xpose.msra.mxu0 %v3942_v4  ;;  %4040 = vmax.xlane.f32.xlu1 %v4039_v45 }
 0xa6a   :  { %5479 = vmatprep.mubr.msk.bf16.mxu0 %vm5921_vm1, %v7480_v46  ;;  %5489 = vmatprep.subr.bf16.mxu0 %v7480_v46 }
 0xa6b   :  { %v3723_v52 = vpop.f32.mrb[132].mxu1 }
 0xa6c   :  { %v7177_v9 = vadd.f32 %v3723_v52, %v3614_v43  ;;  %v5451_v32 = vpop.f32.mrb[133].mxu1 }
 0xa6d   :  { %v3726_v37 = vpop.f32.mrb[134].mxu1 }
 0xa6e   :  { %v7179_v44 = vadd.f32 %v3726_v37, %v3615_v16  ;;  %v5452_v55 = vpop.f32.mrb[135].mxu1  ;;  %v4042_v6 = vsel %vm664_vm3, %v7177_v9, -inf }
 0xa6f   :  { %4043 = vmax.xlane.f32.xlu0 %v4042_v6 }
 0xa70   :  { %5480 = vmatmul.mubr.msk.bf16.vlgmr.msra.gmra.mrb[100].mxu0 %vm266_vm2, %v3935_v62  ;;  %v4045_v15 = vsel %vm664_vm3, %v7179_v44, -inf }
 0xa71   :  { %5491 = vmatprep.mubr.msk.bf16.mxu0 %vm5921_vm1, %v7480_v46 }
 0xa73   :  { %4046 = vmax.xlane.f32.xlu0 %v4045_v15  ;;  %v3774_v0 = vpop.f32.mrb[136].mxu1 }
 0xa74   :  { %v7188_v11 = vadd.f32 %v3774_v0, %v3616_v26  ;;  %v5457_v60 = vpop.f32.mrb[137].mxu1  ;;  %v3620_v26 = vld [vmem:[#allocation2 + $0x1c0] sm:$0xff]  ;;  %v3626_v0 = vld [vmem:[#allocation2 + $0x1f0] sm:$0xff] }
 0xa75   :  { %v3777_v25 = vpop.f32.mrb[138].mxu1 }
 0xa76   :  { %v3778_v34 = vadd.f32 %v3777_v25, %v3617_v7  ;;  %v5458_v21 = vpop.f32.mrb[139].mxu1  ;;  %v4048_v39 = vsel %vm664_vm3, %v7188_v11, -inf }
 0xa77   :  { %4049 = vmax.xlane.f32.xlu0 %v4048_v39 }
 0xa78   :  { %v4051_v20 = vsel %vm664_vm3, %v3778_v34, -inf }
 0xa79   :  { %4052 = vmax.xlane.f32.xlu1 %v4051_v20 }
 0xa7b   :  { %v3825_v1 = vpop.f32.mrb[140].mxu1 }
 0xa7c   :  { %v7193_v40 = vadd.f32 %v3825_v1, %v3618_v33  ;;  %v5463_v23 = vpop.f32.mrb[141].mxu1 }
 0xa7d   :  { %v3828_v27 = vpop.f32.mrb[142].mxu1 }
 0xa7e   :  { %v7195_v13 = vadd.f32 %v3828_v27, %v3619_v19  ;;  %v5464_v14 = vpop.f32.mrb[143].mxu1  ;;  %v4054_v10 = vsel %vm664_vm3, %v7193_v40, -inf }
 0xa7f   :  { %4055 = vmax.xlane.f32.xlu0 %v4054_v10 }
 0xa80   :  { %v4057_v22 = vsel %vm664_vm3, %v7195_v13, -inf }
 0xa81   :  { %4058 = vmax.xlane.f32.xlu1 %v4057_v22 }
 0xa83   :  { %v3927_v57 = vpop.f32.mrb[144].mxu1 }
 0xa84   :  { %v7201_v53 = vadd.f32 %v3927_v57, %v3622_v41  ;;  %v5475_v54 = vpop.f32.mrb[145].mxu1  ;;  %v3624_v41 = vld [vmem:[#allocation2 + $0x1e0] sm:$0xff] }
 0xa85   :  { %v3930_v42 = vpop.f32.mrb[146].mxu1 }
 0xa86   :  { %v7203_v3 = vadd.f32 %v3930_v42, %v3623_v24  ;;  %v5476_v61 = vpop.f32.mrb[147].mxu1  ;;  %v4066_v12 = vsel %vm664_vm3, %v7201_v53, -inf }
 0xa87   :  { %4067 = vmax.xlane.f32.xlu0 %v4066_v12 }
 0xa88   :  { %v4069_v8 = vsel %vm664_vm3, %v7203_v3, -inf }
 0xa89   :  { %4070 = vmax.xlane.f32.xlu1 %v4069_v8 }
 0xa8b   :  { %v4029_v17 = vpop.f32.mrb[148].mxu1 }
 0xa8c   :  { %v5487_v38 = vpop.f32.mrb[149].mxu1 }
 0xa8d   :  { %v4032_v35 = vpop.f32.mrb[150].mxu1 }
 0xa8e   :  { %v7209_v18 = vadd.f32 %v4032_v35, %v3627_v59  ;;  %v5488_v36 = vpop.f32.mrb[151].mxu1 }
 0xa90   :  { %v4081_v2 = vsel %vm664_vm3, %v7209_v18, -inf }
 0xa91   :  { %4082 = vmax.xlane.f32.xlu1 %v4081_v2 }
 0xaf4   :  { %v4038_v58 = vpop.xlane.xlu0 %4037 }
 0xaf5   :  { %v4084_v32 = vsub.f32 %v7162_v63, %v4038_v58 }
 0xaf6   :  { %v4041_v47 = vpop.xlane.xlu1 %4040 }
 0xaf7   :  { %v4085_v4 = vsub.f32 %v7164_v5, %v4041_v47  ;;  %v4100_v6 = vmul.f32 1.442695, %v4084_v32  ;;  %v3621_v5 = vld [vmem:[#allocation2 + $0x1c8] sm:$0xff] }
 0xaf9   :  { %v4102_v43 = vmul.f32 1.442695, %v4085_v4 }
 0xafb   :  { %5829 = vpow2.f32 %v4102_v43 }
 0xafc   :  { %v4044_v56 = vpop.xlane.xlu0 %4043 }
 0xafd   :  { %v4086_v62 = vsub.f32 %v7177_v9, %v4044_v56 }
 0xaff   :  { %v4104_v39 = vmul.f32 1.442695, %v4086_v62 }
 0xb00   :  { %v4047_v45 = vpop.xlane.xlu0 %4046 }
 0xb01   :  { %v4087_v52 = vsub.f32 %v7179_v44, %v4047_v45  ;;  %v3625_v45 = vld [vmem:[#allocation2 + $0x1e8] sm:$0xff] }
 0xb03   :  { %v4106_v37 = vmul.f32 1.442695, %v4087_v52 }
 0xb04   :  { %v4050_v15 = vpop.xlane.xlu0 %4049 }
 0xb05   :  { %5831 = vpow2.f32 %v4106_v37  ;;  %v4088_v63 = vsub.f32 %v7188_v11, %v4050_v15  ;;  %v7229_v10 = vpop.eup %5829 }
 0xb06   :  { %v4053_v16 = vpop.xlane.xlu1 %4052  ;;  %5833 = vpow2.f32 %v4100_v6 }
 0xb07   :  { %v4089_v55 = vsub.f32 %v3778_v34, %v4053_v16  ;;  %v7220_v34 = vadd.f32 %v4029_v17, %v3626_v0  ;;  %v4108_v11 = vmul.f32 1.442695, %v4088_v63  ;;  %v4135_v17 = vsel %vm664_vm3, %v7229_v10, 0.0 }
 0xb09   :  { %v4110_v7 = vmul.f32 1.442695, %v4089_v55  ;;  %v4078_v24 = vsel %vm664_vm3, %v7220_v34, -inf }
 0xb0b   :  { %5835 = vpow2.f32 %v4110_v7 }
 0xb0c   :  { %v4056_v33 = vpop.xlane.xlu0 %4055  ;;  %5837 = vpow2.f32 %v4104_v39 }
 0xb0d   :  { %v4090_v22 = vsub.f32 %v7193_v40, %v4056_v33  ;;  %5839 = vpow2.f32 %v4108_v11 }
 0xb0e   :  { %v4059_v25 = vpop.xlane.xlu1 %4058 }
 0xb0f   :  { %v4091_v23 = vsub.f32 %v7195_v13, %v4059_v25  ;;  %v7239_v59 = vpop.eup %5831  ;;  %v4112_v40 = vmul.f32 1.442695, %v4090_v22 }
 0xb10   :  { %v7244_v2 = vpop.eup %5833  ;;  %v4141_v47 = vsel %vm664_vm3, %v7239_v59, 0.0 }
 0xb11   :  { %v4114_v54 = vmul.f32 1.442695, %v4091_v23  ;;  %v4132_v43 = vsel %vm664_vm3, %v7244_v2, 0.0 }
 0xb13   :  { %5841 = vpow2.f32 %v4114_v54 }
 0xb14   :  { %v4068_v57 = vpop.xlane.xlu0 %4067  ;;  %5843 = vpow2.f32 %v4112_v40 }
 0xb15   :  { %v4094_v38 = vsub.f32 %v7201_v53, %v4068_v57  ;;  %v7249_v4 = vpop.eup %5835 }
 0xb16   :  { %v4071_v27 = vpop.xlane.xlu1 %4070  ;;  %v7253_v52 = vpop.eup %5837 }
 0xb17   :  { %v4095_v13 = vsub.f32 %v7203_v3, %v4071_v27  ;;  %v4120_v53 = vmul.f32 1.442695, %v4094_v38  ;;  %v4138_v37 = vsel %vm664_vm3, %v7253_v52, 0.0  ;;  %v7259_v55 = vpop.eup %5839 }
 0xb19   :  { %v4122_v58 = vmul.f32 1.442695, %v4095_v13 }
 0xb1b   :  { %5845 = vpow2.f32 %v4122_v58 }
 0xb1c   :  { %5847 = vpow2.f32 %v4120_v53 }
 0xb1d   :  { %v7262_v62 = vpop.eup %5841 }
 0xb1e   :  { %v4083_v61 = vpop.xlane.xlu1 %4082  ;;  %v7266_v15 = vpop.eup %5843  ;;  %v4153_v0 = vsel %vm664_vm3, %v7262_v62, 0.0 }
 0xb1f   :  { %v4099_v56 = vsub.f32 %v7209_v18, %v4083_v61  ;;  %v4147_v18 = vsel %vm664_vm3, %v7249_v4, 0.0 }
 0xb21   :  { %v4130_v16 = vmul.f32 1.442695, %v4099_v56 }
 0xb23   :  { %5849 = vpow2.f32 %v4130_v16 }
 0xb25   :  { %v7270_v7 = vpop.eup %5845 }
 0xb26   :  { %v4165_v25 = vsel %vm664_vm3, %v7270_v7, 0.0 }
 0xb3b   :  { %v3876_v60 = vpop.f32.mrb[96].mxu0 }
 0xb3c   :  { %v7217_v21 = vadd.f32 %v3876_v60, %v3620_v26  ;;  %v5469_v44 = vpop.f32.mrb[97].mxu0  ;;  %v4144_v26 = vsel %vm664_vm3, %v7259_v55, 0.0  ;;  %v4150_v60 = vsel %vm664_vm3, %v7266_v15, 0.0 }
 0xb3d   :  { %v3879_v20 = vpop.f32.mrb[98].mxu0 }
 0xb3e   :  { %v7222_v9 = vadd.f32 %v3879_v20, %v3621_v5  ;;  %v5470_v1 = vpop.f32.mrb[99].mxu0  ;;  %v4060_v19 = vsel %vm664_vm3, %v7217_v21, -inf  ;;  %v7274_v5 = vpop.eup %5847 }
 0xb3f   :  { %4061 = vmax.xlane.f32.xlu0 %v4060_v19  ;;  %v7278_v44 = vpop.eup %5849  ;;  %v4162_v39 = vsel %vm664_vm3, %v7274_v5, 0.0 }
 0xb40   :  { %v4063_v14 = vsel %vm664_vm3, %v7222_v9, -inf  ;;  %v4177_v63 = vsel %vm664_vm3, %v7278_v44, 0.0 }
 0xb41   :  { %4064 = vmax.xlane.f32.xlu1 %v4063_v14 }
 0xb43   :  { %4079 = vmax.xlane.f32.xlu0 %v4078_v24  ;;  %v3978_v42 = vpop.f32.mrb[100].mxu0 }
 0xb44   :  { %v7235_v12 = vadd.f32 %v3978_v42, %v3624_v41  ;;  %v5481_v8 = vpop.f32.mrb[101].mxu0 }
 0xb45   :  { %4136 = vadd.xlane.f32.xlu1 %v4135_v17  ;;  %v3981_v35 = vpop.f32.mrb[102].mxu0 }
 0xb46   :  { %v5482_v36 = vpop.f32.mrb[103].mxu0  ;;  %v4072_v3 = vsel %vm664_vm3, %v7235_v12, -inf  ;;  %v3982_v32 = vadd.f32 %v3981_v35, %v3625_v45 }
 0xb47   :  { %4073 = vmax.xlane.f32.xlu0 %v4072_v3 }
 0xb48   :  { %v4075_v6 = vsel %vm664_vm3, %v3982_v32, -inf }
 0xb49   :  { %4142 = vadd.xlane.f32.xlu1 %v4141_v47 }
 0xb4b   :  { %4133 = vadd.xlane.f32.xlu0 %v4132_v43 }
 0xb4d   :  { %4148 = vadd.xlane.f32.xlu1 %v4147_v18 }
 0xb4f   :  { %4139 = vadd.xlane.f32.xlu0 %v4138_v37 }
 0xb51   :  { %4076 = vmax.xlane.f32.xlu1 %v4075_v6 }
 0xb53   :  { %4145 = vadd.xlane.f32.xlu0 %v4144_v26 }
 0xb55   :  { %4154 = vadd.xlane.f32.xlu1 %v4153_v0 }
 0xb57   :  { %4151 = vadd.xlane.f32.xlu0 %v4150_v60 }
 0xb59   :  { %4166 = vadd.xlane.f32.xlu1 %v4165_v25 }
 0xb5b   :  { %4163 = vadd.xlane.f32.xlu0 %v4162_v39 }
 0xb5d   :  { %4178 = vadd.xlane.f32.xlu1 %v4177_v63 }
 0xb6e   :  { %4267 = vrot.lane.b32.xlu1 %v6027_v28, %s5932_s1 }
 0xb72   :  { %4314 = vrot.lane.b32.xlu1 %v6041_v50, %s5932_s1 }
 0xb76   :  { %4361 = vrot.lane.b32.xlu1 %v6037_v48, %s5932_s1 }
 0xb7a   :  { %4455 = vrot.lane.b32.xlu1 %v6029_v29, %s5932_s1 }
 0xbcc   :  { %v7292_v20 = vpop.xlane.xlu0 %4061 }
 0xbce   :  { %v4065_v33 = vpop.xlane.xlu1 %4064 }
 0xbcf   :  { %v4093_v1 = vsub.f32 %v7222_v9, %v4065_v33 }
 0xbd0   :  { %v4080_v19 = vpop.xlane.xlu0 %4079 }
 0xbd1   :  { %v4118_v23 = vmul.f32 1.442695, %v4093_v1  ;;  %v4098_v27 = vsub.f32 %v7220_v34, %v4080_v19 }
 0xbd2   :  { %v4137_v14 = vpop.xlane.xlu1 %4136 }
 0xbd3   :  { %5851 = vpow2.f32 %v4118_v23  ;;  %v4128_v28 = vmul.f32 1.442695, %v4098_v27 }
 0xbd4   :  { %v7296_v11 = vpop.xlane.xlu0 %4073 }
 0xbd5   :  { %5853 = vpow2.f32 %v4128_v28  ;;  %v4096_v19 = vsub.f32 %v7235_v12, %v7296_v11 }
 0xbd6   :  { %v4143_v50 = vpop.xlane.xlu1 %4142  ;;  %5855 = vrcp.f32 %v4137_v14 }
 0xbd7   :  { %v4124_v23 = vmul.f32 1.442695, %v4096_v19 }
 0xbd8   :  { %v4134_v48 = vpop.xlane.xlu0 %4133 }
 0xbd9   :  { %5857 = vrcp.f32 %v4134_v48 }
 0xbda   :  { %v4149_v29 = vpop.xlane.xlu1 %4148 }
 0xbdb   :  { %5859 = vrcp.f32 %v4149_v29 }
 0xbdc   :  { %v4140_v22 = vpop.xlane.xlu0 %4139 }
 0xbdd   :  { %v7298_v41 = vpop.eup %5851  ;;  %5861 = vrcp.f32 %v4140_v22 }
 0xbde   :  { %v4077_v9 = vpop.xlane.xlu1 %4076  ;;  %v4159_v57 = vsel %vm664_vm3, %v7298_v41, 0.0  ;;  %5863 = vrcp.f32 %v4143_v50 }
 0xbdf   :  { %v7302_v34 = vpop.eup %5853  ;;  %v4097_v24 = vsub.f32 %v3982_v32, %v4077_v9  ;;  %4160 = vadd.xlane.f32.xlu1 %v4159_v57 }
 0xbe0   :  { %v4146_v54 = vpop.xlane.xlu0 %4145  ;;  %v4174_v13 = vsel %vm664_vm3, %v7302_v34, 0.0  ;;  %v5856_v61 = vpop.eup %5855 }
 0xbe1   :  { %v4126_v42 = vmul.f32 1.442695, %v4097_v24  ;;  %5865 = vrcp.f32 %v4146_v54  ;;  %4175 = vadd.xlane.f32.xlu0 %v4174_v13  ;;  %v7307_v38 = vmul.f32 %v5856_v61, %v7229_v10 }
 0xbe2   :  { %v4155_v8 = vpop.xlane.xlu1 %4154 }
 0xbe3   :  { %5867 = vpow2.f32 %v4126_v42  ;;  %v5858_v17 = vpop.eup %5857 }
 0xbe4   :  { %v4152_v40 = vpop.xlane.xlu0 %4151  ;;  %v7310_v35 = vmul.f32 %v5858_v17, %v7244_v2 }
 0xbe5   :  { %5869 = vrcp.f32 %v4152_v40  ;;  %v5860_v58 = vpop.eup %5859 }
 0xbe6   :  { %v4167_v36 = vpop.xlane.xlu1 %4166  ;;  %v4212_v3 = vpack.c.bf16 %v7307_v38, %v7310_v35  ;;  %5871 = vrcp.f32 %v4155_v8  ;;  %v7315_v43 = vmul.f32 %v5860_v58, %v7249_v4 }
 0xbe7   :  { %v5862_v56 = vpop.eup %5861 }
 0xbe8   :  { %v5864_v47 = vpop.eup %5863  ;;  %v4198_v10 = vmul.f32 %v5862_v56, %v7253_v52  ;;  %v4164_v2 = vpop.xlane.xlu0 %4163 }
 0xbe9   :  { %v4199_v18 = vmul.f32 %v5864_v47, %v7239_v59  ;;  %5873 = vrcp.f32 %v4164_v2  ;;  %v4604_v47 = vld [vmem:[%s7462_s3 + $0xc] sm:$0xf] }
 0xbea   :  { %v4179_v53 = vpop.xlane.xlu1 %4178  ;;  %5875 = vrcp.f32 %v4167_v36 }
 0xbeb   :  { %v5866_v45 = vpop.eup %5865  ;;  %v4213_v4 = vpack.c.bf16 %v4199_v18, %v4198_v10 }
 0xbec   :  { %v7319_v16 = vmul.f32 %v5866_v45, %v7259_v55 }
 0xbed   :  { %v7321_v32 = vpop.eup %5867 }
 0xbee   :  { %v4268_v37 = vpop.permute.xlu1 %4267  ;;  %v4171_v6 = vsel %vm664_vm3, %v7321_v32, 0.0  ;;  %v4214_v26 = vpack.c.bf16 %v7315_v43, %v7319_v16 }
 0xbef   :  { %4172 = vadd.xlane.f32.xlu1 %v4171_v6  ;;  %5496 = vmatpush3.bf16.msra.mxu1 %v4268_v37  ;;  %v5870_v52 = vpop.eup %5869 }
 0xbf0   :  { %5507 = vmatprep.subr.bf16.mxu1 %v7480_v46  ;;  %v5872_v0 = vpop.eup %5871  ;;  %v4202_v59 = vmul.f32 %v5870_v52, %v7266_v15 }
 0xbf1   :  { %v4203_v60 = vmul.f32 %v5872_v0, %v7262_v62 }
 0xbf2   :  { %v4315_v55 = vpop.permute.xlu1 %4314  ;;  %5498 = vmatmul.mubr.msk.bf16.vlgmr.msra.gmra.mrb[152].mxu1 %vm664_vm3, %v4213_v4 }
 0xbf3   :  { %5509 = vmatprep.mubr.msk.bf16.mxu1 %vm5921_vm1, %v7480_v46  ;;  %v4215_v39 = vpack.c.bf16 %v4203_v60, %v4202_v59  ;;  %v5874_v63 = vpop.eup %5873 }
 0xbf4   :  { %v5876_v1 = vpop.eup %5875  ;;  %v4206_v15 = vmul.f32 %v5874_v63, %v7274_v5 }
 0xbf6   :  { %v4362_v25 = vpop.permute.xlu1 %4361 }
 0xbf7   :  { %4220 = vrot.lane.b32.xlu0 %v6031_v30, %s5932_s1  ;;  %5508 = vmatpush3.bf16.msra.mxu1 %v4362_v25  ;;  %v4207_v30 = vmul.f32 %v5876_v1, %v7270_v7 }
 0xbf8   :  { %5519 = vmatprep.subr.bf16.mxu1 %v7480_v46 }
 0xbf9   :  { %v4217_v62 = vpack.c.bf16 %v4207_v30, %v4206_v15 }
 0xbfa   :  { %v4456_v33 = vpop.permute.xlu1 %4455  ;;  %5510 = vmatmul.mubr.msk.bf16.vlgmr.msra.gmra.mrb[156].mxu1 %vm664_vm3, %v4215_v39 }
 0xbfb   :  { %4408 = vrot.lane.b32.xlu0 %v6033_v31, %s5932_s1  ;;  %5520 = vmatpush3.bf16.msra.mxu1 %v4456_v33  ;;  %v4092_v31 = vsub.f32 %v7217_v21, %v7292_v20 }
 0xbfc   :  { %5521 = vmatprep.mubr.msk.bf16.mxu1 %vm5921_vm1, %v7480_v46  ;;  %5531 = vmatprep.subr.bf16.mxu1 %v7480_v46 }
 0xbfd   :  { %v4116_v5 = vmul.f32 1.442695, %v4092_v31 }
 0xbff   :  { %5877 = vpow2.f32 %v4116_v5 }
 0xc00   :  { %4549 = vrot.lane.b32.xlu1 %v6039_v49, %s5932_s1  ;;  %5879 = vpow2.f32 %v4124_v23 }
 0xc02   :  { %5522 = vmatmul.mubr.msk.bf16.vlgmr.msra.gmra.mrb[160].mxu1 %vm664_vm3, %v4217_v62 }
 0xc03   :  { %5533 = vmatprep.mubr.msk.bf16.mxu1 %vm5921_vm1, %v7480_v46 }
 0xc09   :  { %v5878_v7 = vpop.eup %5877 }
 0xc0a   :  { %v4156_v27 = vsel %vm664_vm3, %v5878_v7, 0.0  ;;  %v5880_v49 = vpop.eup %5879 }
 0xc0b   :  { %v4168_v14 = vsel %vm664_vm3, %v5880_v49, 0.0 }
 0xc1a   :  { %4157 = vadd.xlane.f32.xlu0 %v4156_v27 }
 0xc1e   :  { %4169 = vadd.xlane.f32.xlu0 %v4168_v14 }
 0xc34   :  { %4502 = vrot.lane.b32.xlu0 %v6043_v51, %s5932_s1 }
 0xc6c   :  { %v4161_v12 = vpop.xlane.xlu1 %4160 }
 0xc6e   :  { %v4176_v28 = vpop.xlane.xlu0 %4175 }
 0xc6f   :  { %5881 = vrcp.f32 %v4176_v28 }
 0xc70   :  { %5883 = vrcp.f32 %v4179_v53  ;;  %v4630_v53 = vsel %vm2252_vm4, %v4604_v47, 0 }
 0xc71   :  { %5885 = vrcp.f32 %v4161_v12  ;;  %v4904_v12 = vld [vmem:[%s7463_s4] ss:$0 sm:$0xff] }
 0xc72   :  { %v4221_v21 = vpop.permute.xlu0 %4220 }
 0xc73   :  { %5490 = vmatpush3.bf16.msra.mxu0 %v4221_v21 }
 0xc74   :  { %5501 = vmatprep.subr.bf16.mxu0 %v7480_v46 }
 0xc76   :  { %5492 = vmatmul.mubr.msk.bf16.vlgmr.msra.gmra.mrb[104].mxu0 %vm664_vm3, %v4212_v3  ;;  %v4409_v48 = vpop.permute.xlu0 %4408 }
 0xc77   :  { %5502 = vmatpush3.bf16.msra.mxu0 %v4315_v55  ;;  %5503 = vmatprep.mubr.msk.bf16.mxu0 %vm5921_vm1, %v7480_v46 }
 0xc78   :  { %5513 = vmatprep.subr.bf16.mxu0 %v7480_v46 }
 0xc79   :  { %v5882_v51 = vpop.eup %5881 }
 0xc7a   :  { %v5884_v11 = vpop.eup %5883  ;;  %v4210_v50 = vmul.f32 %v5882_v51, %v7302_v34 }
 0xc7b   :  { %v4211_v29 = vmul.f32 %v5884_v11, %v7278_v44  ;;  %v5886_v24 = vpop.eup %5885 }
 0xc7c   :  { %v4173_v20 = vpop.xlane.xlu1 %4172  ;;  %v4205_v13 = vmul.f32 %v5886_v24, %v7298_v41 }
 0xc7d   :  { %v4219_v9 = vpack.c.bf16 %v4211_v29, %v4210_v50 }
 0xc7e   :  { %5504 = vmatmul.mubr.msk.bf16.vlgmr.msra.gmra.mrb[108].mxu0 %vm664_vm3, %v4214_v26 }
 0xc7f   :  { %5514 = vmatpush3.bf16.msra.mxu0 %v4409_v48  ;;  %5515 = vmatprep.mubr.msk.bf16.mxu0 %vm5921_vm1, %v7480_v46 }
 0xc80   :  { %v4550_v22 = vpop.permute.xlu1 %4549  ;;  %5525 = vmatprep.subr.bf16.mxu0 %v7480_v46 }
 0xc81   :  { %5532 = vmatpush3.bf16.msra.mxu1 %v4550_v22 }
 0xc84   :  { %5534 = vmatmul.mubr.msk.bf16.vlgmr.msra.gmra.mrb[164].mxu1 %vm664_vm3, %v4219_v9 }
 0xca7   :  { %v4158_v57 = vpop.xlane.xlu0 %4157 }
 0xca8   :  { %5887 = vrcp.f32 %v4158_v57 }
 0xcab   :  { %v4170_v34 = vpop.xlane.xlu0 %4169 }
 0xcac   :  { %5889 = vrcp.f32 %v4170_v34 }
 0xcad   :  { %5891 = vrcp.f32 %v4173_v20 }
 0xcaf   :  { %v4503_v8 = vpop.permute.xlu0 %4502 }
 0xcb2   :  { %v5888_v54 = vpop.eup %5887 }
 0xcb3   :  { %v4204_v42 = vmul.f32 %v5888_v54, %v5878_v7 }
 0xcb5   :  { %v4216_v61 = vpack.c.bf16 %v4205_v13, %v4204_v42 }
 0xcb6   :  { %v5890_v44 = vpop.eup %5889 }
 0xcb7   :  { %5516 = vmatmul.mubr.msk.bf16.vlgmr.msra.gmra.mrb[112].mxu0 %vm664_vm3, %v4216_v61  ;;  %v5892_v17 = vpop.eup %5891  ;;  %v4208_v40 = vmul.f32 %v5890_v44, %v5880_v49 }
 0xcb8   :  { %5526 = vmatpush3.bf16.msra.mxu0 %v4503_v8  ;;  %5527 = vmatprep.mubr.msk.bf16.mxu0 %vm5921_vm1, %v7480_v46  ;;  %v4209_v38 = vmul.f32 %v5892_v17, %v7321_v32 }
 0xcb9   :  { %5610 = vmatprep.subr.msk.bf16.mxu0 %vm2252_vm4, %v4604_v47 }
 0xcba   :  { %v4218_v35 = vpack.c.bf16 %v4209_v38, %v4208_v40 }
 0xcbf   :  { %5528 = vmatmul.mubr.msk.bf16.vlgmr.msra.gmra.mrb[116].mxu0 %vm664_vm3, %v4218_v35 }
 0xcc0   :  { %5538 = vmatpush3.bf16.msra.mxu0 %v4630_v53 }
 0xcc5   :  { %v4307_v36 = vpop.f32.mrb[152].mxu1 }
 0xcc6   :  { %v5499_v3 = vpop.f32.mrb[153].mxu1 }
 0xcc7   :  { %v4310_v41 = vpop.f32.mrb[154].mxu1 }
 0xcc8   :  { %v4597_v58 = vpack.c.bf16 %v4310_v41, %v4307_v36  ;;  %v5500_v56 = vpop.f32.mrb[155].mxu1 }
 0xccd   :  { %v4401_v46 = vpop.f32.mrb[156].mxu1 }
 0xcce   :  { %v5511_v45 = vpop.f32.mrb[157].mxu1 }
 0xccf   :  { %v4404_v43 = vpop.f32.mrb[158].mxu1 }
 0xcd0   :  { %v4599_v10 = vpack.c.bf16 %v4404_v43, %v4401_v46  ;;  %v5512_v16 = vpop.f32.mrb[159].mxu1 }
 0xcd5   :  { %v4495_v2 = vpop.f32.mrb[160].mxu1 }
 0xcd6   :  { %v5523_v32 = vpop.f32.mrb[161].mxu1 }
 0xcd7   :  { %v4498_v18 = vpop.f32.mrb[162].mxu1 }
 0xcd8   :  { %v4601_v37 = vpack.c.bf16 %v4498_v18, %v4495_v2  ;;  %v5524_v6 = vpop.f32.mrb[163].mxu1 }
 0xd49   :  { %v4260_v26 = vpop.f32.mrb[104].mxu0 }
 0xd4a   :  { %v5493_v4 = vpop.f32.mrb[105].mxu0 }
 0xd4b   :  { %v4263_v52 = vpop.f32.mrb[106].mxu0 }
 0xd4c   :  { %v4596_v55 = vpack.c.bf16 %v4263_v52, %v4260_v26  ;;  %v5494_v0 = vpop.f32.mrb[107].mxu0 }
 0xd4e   :  { %5539 = vmatprep.mubr.msk.bf16.mxu0 %vm266_vm2, %v4596_v55 }
 0xd4f   :  { %5540 = vmatmul.mubr.msk.bf16.vlgmr.msra.gmra.mrb[64].mxu0 %vm266_vm2, %v4597_v58 }
 0xd51   :  { %v4354_v59 = vpop.f32.mrb[108].mxu0 }
 0xd52   :  { %v5505_v60 = vpop.f32.mrb[109].mxu0 }
 0xd53   :  { %v4357_v25 = vpop.f32.mrb[110].mxu0 }
 0xd54   :  { %v4598_v39 = vpack.c.bf16 %v4357_v25, %v4354_v59  ;;  %v5506_v63 = vpop.f32.mrb[111].mxu0 }
 0xd56   :  { %5543 = vmatprep.mubr.msk.bf16.mxu0 %vm266_vm2, %v4598_v39 }
 0xd57   :  { %v4589_v33 = vpop.f32.mrb[164].mxu1  ;;  %5544 = vmatmul.mubr.msk.bf16.gmra.mrb[68].mxu0 %vm266_vm2, %v4599_v10 }
 0xd58   :  { %v5535_v1 = vpop.f32.mrb[165].mxu1 }
 0xd59   :  { %v4592_v15 = vpop.f32.mrb[166].mxu1 }
 0xd5a   :  { %v4603_v30 = vpack.c.bf16 %v4592_v15, %v4589_v33  ;;  %v5536_v62 = vpop.f32.mrb[167].mxu1 }
 0xd8a   :  { %v4448_v31 = vpop.f32.mrb[112].mxu0 }
 0xd8b   :  { %v5517_v5 = vpop.f32.mrb[113].mxu0 }
 0xd8c   :  { %v4451_v19 = vpop.f32.mrb[114].mxu0 }
 0xd8d   :  { %v4600_v23 = vpack.c.bf16 %v4451_v19, %v4448_v31  ;;  %v5518_v7 = vpop.f32.mrb[115].mxu0 }
 0xd8f   :  { %5547 = vmatprep.mubr.msk.bf16.mxu0 %vm266_vm2, %v4600_v23 }
 0xd90   :  { %5548 = vmatmul.mubr.msk.bf16.gmra.mrb[72].mxu0 %vm266_vm2, %v4601_v37 }
 0xd92   :  { %v4542_v27 = vpop.f32.mrb[116].mxu0 }
 0xd93   :  { %v5529_v49 = vpop.f32.mrb[117].mxu0 }
 0xd94   :  { %v4545_v14 = vpop.f32.mrb[118].mxu0 }
 0xd95   :  { %v4602_v28 = vpack.c.bf16 %v4545_v14, %v4542_v27  ;;  %v5530_v21 = vpop.f32.mrb[119].mxu0 }
 0xd97   :  { %5551 = vmatprep.mubr.msk.bf16.mxu0 %vm266_vm2, %v4602_v28 }
 0xd98   :  { %5552 = vmatmul.mubr.msk.bf16.gmra.mrb[76].mxu0 %vm266_vm2, %v4603_v30 }
 0xe22   :  { %v5541_v51 = vpop.f32.mrb[64].mxu0 }
 0xe23   :  { %v4754_v20 = vadd.f32 %v5541_v51, %v4904_v12  ;;  %v4666_v11 = vpop.f32.mrb[65].mxu0 }
 0xe24   :  { %v4752_v50 = vadd.f32 %v4904_v12, %v4666_v11  ;;  %v5542_v48 = vpop.f32.mrb[66].mxu0 }
 0xe25   :  { %4770 = vst.msk [vmem:[%s7465_s6 + $0x10] sm:$0xff] %vm117_vm0, %v4754_v20  ;;  %v4755_v29 = vadd.f32 %v5542_v48, %v4904_v12  ;;  %v4669_v22 = vpop.f32.mrb[67].mxu0 }
 0xe26   :  { %4768 = vst.msk [vmem:[%s7465_s6] sm:$0xff] %vm117_vm0, %v4752_v50  ;;  %v4753_v9 = vadd.f32 %v4904_v12, %v4669_v22 }
 0xe27   :  { %4771 = vst.msk [vmem:[%s7465_s6 + $0x18] sm:$0xff] %vm117_vm0, %v4755_v29 }
 0xe28   :  { %4769 = vst.msk [vmem:[%s7465_s6 + $0x8] sm:$0xff] %vm117_vm0, %v4753_v9 }
 0xe2a   :  { %v5545_v57 = vpop.f32.mrb[68].mxu0 }
 0xe2b   :  { %v4758_v34 = vadd.f32 %v5545_v57, %v4904_v12  ;;  %v4682_v24 = vpop.f32.mrb[69].mxu0 }
 0xe2c   :  { %v4756_v54 = vadd.f32 %v4904_v12, %v4682_v24  ;;  %v5546_v13 = vpop.f32.mrb[70].mxu0 }
 0xe2d   :  { %4774 = vst.msk [vmem:[%s7465_s6 + $0x30] sm:$0xff] %vm117_vm0, %v4758_v34  ;;  %v4759_v42 = vadd.f32 %v5546_v13, %v4904_v12  ;;  %v4685_v61 = vpop.f32.mrb[71].mxu0 }
 0xe2e   :  { %4772 = vst.msk [vmem:[%s7465_s6 + $0x20] sm:$0xff] %vm117_vm0, %v4756_v54  ;;  %v4757_v44 = vadd.f32 %v4904_v12, %v4685_v61 }
 0xe2f   :  { %4775 = vst.msk [vmem:[%s7465_s6 + $0x38] sm:$0xff] %vm117_vm0, %v4759_v42 }
 0xe30   :  { %4773 = vst.msk [vmem:[%s7465_s6 + $0x28] sm:$0xff] %vm117_vm0, %v4757_v44 }
 0xe63   :  { %v5549_v8 = vpop.f32.mrb[72].mxu0 }
 0xe64   :  { %v4762_v17 = vadd.f32 %v5549_v8, %v4904_v12  ;;  %v4698_v40 = vpop.f32.mrb[73].mxu0 }
 0xe65   :  { %v4760_v38 = vadd.f32 %v4904_v12, %v4698_v40  ;;  %v5550_v35 = vpop.f32.mrb[74].mxu0 }
 0xe66   :  { %4778 = vst.msk [vmem:[%s7465_s6 + $0x50] sm:$0xff] %vm117_vm0, %v4762_v17  ;;  %v4763_v36 = vadd.f32 %v5550_v35, %v4904_v12  ;;  %v4701_v3 = vpop.f32.mrb[75].mxu0 }
 0xe67   :  { %4776 = vst.msk [vmem:[%s7465_s6 + $0x40] sm:$0xff] %vm117_vm0, %v4760_v38  ;;  %v4761_v41 = vadd.f32 %v4904_v12, %v4701_v3 }
 0xe68   :  { %4779 = vst.msk [vmem:[%s7465_s6 + $0x58] sm:$0xff] %vm117_vm0, %v4763_v36 }
 0xe69   :  { %4777 = vst.msk [vmem:[%s7465_s6 + $0x48] sm:$0xff] %vm117_vm0, %v4761_v41 }
 0xe6b   :  { %v5553_v58 = vpop.f32.mrb[76].mxu0 }
 0xe6c   :  { %v4766_v56 = vadd.f32 %v5553_v58, %v4904_v12  ;;  %v4714_v47 = vpop.f32.mrb[77].mxu0 }
 0xe6d   :  { %v4764_v53 = vadd.f32 %v4904_v12, %v4714_v47  ;;  %v5554_v46 = vpop.f32.mrb[78].mxu0 }
 0xe6e   :  { %4782 = vst.msk [vmem:[%s7465_s6 + $0x70] sm:$0xff] %vm117_vm0, %v4766_v56  ;;  %v4767_v45 = vadd.f32 %v5554_v46, %v4904_v12  ;;  %v4717_v43 = vpop.f32.mrb[79].mxu0 }
 0xe6f   :  { %4780 = vst.msk [vmem:[%s7465_s6 + $0x60] sm:$0xff] %vm117_vm0, %v4764_v53  ;;  %v4765_v10 = vadd.f32 %v4904_v12, %v4717_v43 }
 0xe70   :  { %4783 = vst.msk [vmem:[%s7465_s6 + $0x78] sm:$0xff] %vm117_vm0, %v4767_v45 }
 0xe71   :  { %4781 = vst.msk [vmem:[%s7465_s6 + $0x68] sm:$0xff] %vm117_vm0, %v4765_v10 }
 0xe72   :  { %4788 = vsyncpa [#allocation3], 1 }

</bundles_post_ra>
